<compile_context>
chip_gen: v6e
topology: v6e:2x2x1
jax: 0.10.0
libtpu: 0.0.40
codegen_flags: <defaults>
</compile_context>

<pallas_src>
import functools

import jax
import jax.numpy as jnp
from jax.experimental import pallas as pl
from jax.experimental.pallas import tpu as pltpu


# --------------------------------------------------------------------------
# Helpers
# --------------------------------------------------------------------------
def _refined_recip(d):
    """EUP approximate reciprocal + one Newton step (~f32-exact, VPU-cheap)."""
    x = pl.reciprocal(d, approx=True)
    return x * (2.0 - d * x)


def _pad_batch(x, b_pad, value=0.0):
    b = x.shape[-1]
    if b == b_pad:
        return x
    pad = [(0, 0)] * (x.ndim - 1) + [(0, b_pad - b)]
    return jnp.pad(x, pad, constant_values=value)


def _pick_batch_tile(b_pad, multi_core=False, max_bt=4096):
    """Pick a lane-dense (multiple-of-128) batch tile.

    Single-TC chips (v5e/v6e): largest tile dividing the (padded) batch —
    fewest grid steps, per-step overhead amortized.
    v7x (multi_core=True): keep an even number of >=2 steps so the
    "parallel" grid axis shards evenly across the two TensorCores.
    """
    best = 128
    bt = 128
    while bt <= min(b_pad, max_bt):
        if b_pad % bt == 0:
            steps = b_pad // bt
            if multi_core:
                if steps >= 2 and steps % 2 == 0:
                    best = bt
            else:
                best = bt
        bt += 128
    return best


# --------------------------------------------------------------------------
# Pallas kernel: one batch tile (BT lanes) per grid step; batch on lanes,
# menu axis K on sublanes for the welfare/softmax math, item axis m on
# sublanes for the (agent,item)-indexed slabs.
# --------------------------------------------------------------------------
def ramanet_kernel(vbb_ref, allocs_ref, w_ref, b_ref,
                   ac_ref, ia_ref, stats_ref, *, temp):
    f32 = jnp.float32
    vb = vbb_ref[0]                          # (n, m, BT)  value - bid
    bids = vbb_ref[1]                        # (n, m, BT)
    allocs = allocs_ref[...].astype(f32)     # (n, m, K, BT)  (bf16 on HBM)
    w = w_ref[...]                           # (n, 1, BT)
    bmenu = b_ref[...]                       # (1, K, BT)  (unpadded menu boosts)

    n = allocs.shape[0]

    # util[a, k] = sum_m allocs[a, m, k] * vb[a, m]   (sum over a MAJOR dim)
    vb4 = vb[:, :, None, :]                              # (n, m, 1, BT)
    util = jnp.sum(allocs * vb4, axis=1)                 # (n, K, BT)
    paw = w * util                                       # (n, K, BT)
    tw = jnp.sum(paw, axis=0, keepdims=True)             # (1, K, BT)

    # Menu softmax over K real entries + implicit "allocate nothing" entry
    # (its welfare and boost are both 0, so its logit is exactly 0).
    logits = (tw + bmenu) * temp                         # (1, K, BT)
    mx = jnp.maximum(jnp.max(logits, axis=1, keepdims=True), 0.0)   # (1,1,BT)
    e = jnp.exp(logits - mx)                             # (1, K, BT)
    e0 = jnp.exp(-mx)                                    # (1, 1, BT)
    inv_den = _refined_recip(jnp.sum(e, axis=1, keepdims=True) + e0)
    ac = e * inv_den                                     # (1, K, BT)
    ac0 = e0 * inv_den                                   # (1, 1, BT)  "no alloc" prob

    # Expected allocation / chosen welfare (zero menu entry contributes 0).
    ia = jnp.sum(ac[:, None, :, :] * allocs, axis=2)     # (n, m, BT)
    chosen = jnp.sum(paw * ac, axis=1, keepdims=True)    # (n, 1, BT)
    chosen_sum = jnp.sum(chosen, axis=0, keepdims=True)  # (1, 1, BT)
    ab = jnp.sum(ac * bmenu, axis=1, keepdims=True)      # (1, 1, BT)

    # "agent i removed" welfare: trem[i, k] = tw[k] - paw[i, k]
    trem = tw - paw                                      # (n, K, BT)
    rlog = (trem + bmenu) * temp
    rmx = jnp.maximum(jnp.max(rlog, axis=1, keepdims=True), 0.0)    # (n,1,BT)
    re = jnp.exp(rlog - rmx)                             # (n, K, BT)
    re0 = jnp.exp(-rmx)                                  # (n, 1, BT)
    rinv = _refined_recip(jnp.sum(re, axis=1, keepdims=True) + re0)
    rc = re * rinv                                       # (n, K, BT)
    rem_sum = jnp.sum(rc * trem, axis=1, keepdims=True)  # (n, 1, BT)
    rb = jnp.sum(rc * bmenu, axis=1, keepdims=True)      # (n, 1, BT)

    # Payments / utility / revenue.  Exact divide for 1/w (payment precision).
    rev = jnp.sum(ia * bids, axis=1, keepdims=True)      # (n, 1, BT)
    inv_w = 1.0 / w
    x_term = chosen_sum + ab - rem_sum - rb              # (n, 1, BT)
    pay = x_term * inv_w + rev                           # (n, 1, BT)
    # utility = sum_m vals*item_alloc - pay == chosen/w + rev - pay
    uout = (chosen - x_term) * inv_w                     # (n, 1, BT)

    # Stores: all lane-dense, unmasked full-tile writes.
    ac_ref[...] = ac[0]                                  # (K, BT)
    ia_ref[...] = ia                                     # (n, m, BT)
    stats = jnp.concatenate(
        [pay, uout, rev, jnp.broadcast_to(ac0, pay.shape),
         jnp.zeros((n, 4, pay.shape[2]), f32)], axis=1)  # (n, 8, BT)
    stats_ref[...] = stats


# --------------------------------------------------------------------------
# Wrapper: batch-last plumbing + pallas_call.
# --------------------------------------------------------------------------
def ramanet_forward_pallas(input_bids, input_values, allocs_bl, w_bl, b_bl,
                           softmax_temp, bool_rvcgnet=False, batch_tile=None,
                           multi_core=False, return_padded_allocs=True):
    """RAMANet.forward auction math on TPU.

    input_bids, input_values : (B, n, m) float32 (module-facing layout)
    allocs_bl                : (n, m, K, B) — mechanism output, batch-last
                               (bf16 preferred; upcast in-kernel)
    w_bl                     : (n, B) float32 (strictly positive)
    b_bl                     : (K, B) float32
    """
    B, n, m = input_bids.shape
    assert allocs_bl.shape[:2] == (n, m) and allocs_bl.shape[3] == B, allocs_bl.shape
    K = allocs_bl.shape[2]
    f32 = jnp.float32

    if bool_rvcgnet:
        w_bl = jnp.ones_like(w_bl)
        b_bl = jnp.zeros_like(b_bl)

    # Pad batch to a lane-dense multiple of 128 (avoids masked partial stores
    # for ragged batches); padded lanes get w=1 so 1/w stays finite.
    B_pad = ((B + 127) // 128) * 128
    BT = batch_tile if batch_tile is not None else _pick_batch_tile(B_pad, multi_core)
    assert B_pad % BT == 0 and BT % 128 == 0, (B_pad, BT)
    num_tiles = B_pad // BT

    # (value - bid) and bid stacked -> one input / one DMA per step.  `values`
    # itself is never read by the kernel (utility identity).
    vb = (input_values - input_bids).astype(f32)
    vbb = jnp.transpose(jnp.stack([vb, input_bids.astype(f32)], 0), (0, 2, 3, 1))  # (2,n,m,B)

    allocs_k = allocs_bl if allocs_bl.dtype == jnp.bfloat16 else allocs_bl.astype(jnp.bfloat16)
    w_t = w_bl.astype(f32)[:, None, :]        # (n, 1, B)
    b_t = b_bl.astype(f32)[None]              # (1, K, B)

    vbb = _pad_batch(vbb, B_pad)
    allocs_k = _pad_batch(allocs_k, B_pad)
    w_t = _pad_batch(w_t, B_pad, value=1.0)
    b_t = _pad_batch(b_t, B_pad)

    kernel = functools.partial(ramanet_kernel, temp=float(softmax_temp))

    out_shapes = (
        jax.ShapeDtypeStruct((K, B_pad), f32),       # menu probs (real entries)
        jax.ShapeDtypeStruct((n, m, B_pad), f32),    # item allocation
        jax.ShapeDtypeStruct((n, 8, B_pad), f32),    # packed stats: pay/util/rev/ac0
    )

    grid_spec = pltpu.PrefetchScalarGridSpec(
        num_scalar_prefetch=0,
        grid=(num_tiles,),
        in_specs=[
            pl.BlockSpec((2, n, m, BT), lambda i: (0, 0, 0, i)),   # vb / bids
            pl.BlockSpec((n, m, K, BT), lambda i: (0, 0, 0, i)),   # allocs (bf16)
            pl.BlockSpec((n, 1, BT), lambda i: (0, 0, i)),         # w
            pl.BlockSpec((1, K, BT), lambda i: (0, 0, i)),         # b
        ],
        out_specs=[
            pl.BlockSpec((K, BT), lambda i: (0, i)),
            pl.BlockSpec((n, m, BT), lambda i: (0, 0, i)),
            pl.BlockSpec((n, 8, BT), lambda i: (0, 0, i)),
        ],
    )

    ac_t, ia_t, stats_t = pl.pallas_call(
        kernel,
        out_shape=out_shapes,
        grid_spec=grid_spec,
        compiler_params=pltpu.CompilerParams(
            dimension_semantics=("parallel",),
            vmem_limit_bytes=32 * 1024 * 1024),
    )(vbb, allocs_k, w_t, b_t)

    # Strip batch padding, slice the packed stats, restore module-facing layouts.
    ac_t = ac_t[:, :B]
    ia_t = ia_t[..., :B]
    stats_t = stats_t[..., :B]

    alloc_choice = jnp.concatenate([ac_t.T, stats_t[0, 3, :][:, None]], axis=1)  # (B, K+1)
    item_allocation = jnp.transpose(ia_t, (2, 0, 1))                             # (B, n, m)
    payments = stats_t[:, 0, :]                                                  # (n, B)
    utility = stats_t[:, 1, :]                                                   # (n, B)
    revenue = stats_t[:, 2, :]                                                   # (n, B)

    # Padded allocs is part of the module's return signature only; the kernel
    # never reads it.  Built lazily so callers that do not consume it skip the
    # extra HBM pass on the largest tensor.
    allocs_p = None
    if return_padded_allocs:
        a_f32 = jnp.transpose(allocs_bl.astype(f32), (3, 2, 0, 1))               # (B, K, n, m)
        allocs_p = jnp.concatenate([a_f32, jnp.zeros((B, 1, n, m), f32)], axis=1)

    return alloc_choice, item_allocation, utility, payments, allocs_p, revenue


# --------------------------------------------------------------------------
# Pure-JAX reference (mirrors the PyTorch forward exactly) for validation.
# --------------------------------------------------------------------------
def ramanet_forward_ref(input_bids, input_values, allocs, w, b, softmax_temp):
    B, n, m = input_bids.shape
    allocs_p = jnp.concatenate(
        [allocs, jnp.zeros((B, 1, n, m), allocs.dtype)], axis=1)
    b_p = jnp.concatenate([b, jnp.zeros((B, 1), b.dtype)], axis=1)

    vb = input_values - input_bids
    util = jnp.sum(allocs_p * vb[:, None], axis=-1)                 # (B, K1, n)
    paw = w[:, None, :] * util                                      # (B, K1, n)
    tw = paw.sum(-1)                                                # (B, K1)
    ac = jax.nn.softmax((tw + b_p) * softmax_temp, axis=-1)         # (B, K1)
    item_alloc = jnp.sum(ac[:, :, None, None] * allocs_p, axis=1)   # (B, n, m)
    chosen = jnp.sum(paw * ac[:, :, None], axis=1)                  # (B, n)

    mask = 1.0 - jnp.eye(n, dtype=paw.dtype)                        # (n, n)
    rem = paw[:, None] * mask[None, :, None, :]                     # (B, n, K1, n)
    trem = rem.sum(-1)                                              # (B, n, K1)
    rc = jax.nn.softmax((trem + b_p[:, None]) * softmax_temp, -1)   # (B, n, K1)
    rem_chosen = jnp.sum(rem * rc[..., None], axis=2)               # (B, n, n)
    ab = jnp.sum(ac * b_p, axis=-1)                                 # (B,)
    rb = jnp.sum(rc * b_p[:, None], axis=-1)                        # (B, n)

    pay = (1.0 / w) * (chosen.sum(-1, keepdims=True) + ab[:, None]
                       - (rem_chosen.sum(-1) + rb))                 # (B, n)
    rev = jnp.sum(item_alloc * input_bids, axis=-1)                 # (B, n)
    pay = pay + rev
    utility = jnp.sum(input_values * item_alloc, axis=-1) - pay
    return ac, item_alloc, utility.T, pay.T, allocs_p, rev.T


# --------------------------------------------------------------------------
# Deterministic stand-in for TransformerMechanism (produces allocs, w, b).
# It emits batch-LAST tensors directly in the kernel's layout, so no wrapper
# relayout of the dominant allocs tensor is needed; allocs is handed over as
# bf16 (softmax probabilities, well within tolerance).
# --------------------------------------------------------------------------
# TODO(synk): TransformerMechanism source is not provided with the module;
# this deterministic MLP stand-in only reproduces its output shapes/ranges.
def init_mechanism_params(key, n, m, d_hidden, menu_size):
    k1, k2, k3, k4 = jax.random.split(key, 4)
    d_in = 2 * n * m
    return {
        "W1": 0.1 * jax.random.normal(k1, (d_in, d_hidden), jnp.float32),
        "b1": jnp.zeros((d_hidden,), jnp.float32),
        "W_alloc": 0.1 * jax.random.normal(k2, (d_hidden, (n + 1) * m * menu_size), jnp.float32),
        "W_w": 0.1 * jax.random.normal(k3, (d_hidden, n), jnp.float32),
        "W_b": 0.1 * jax.random.normal(k4, (d_hidden, menu_size), jnp.float32),
    }


def synthetic_mechanism(params, bids, values, alloc_softmax_temperature):
    B, n, m = bids.shape
    K = params["W_b"].shape[-1]
    x = jnp.concatenate([bids.reshape(B, -1), values.reshape(B, -1)], axis=-1)
    h = jnp.tanh(x @ params["W1"] + params["b1"])                   # (B, H)
    hT = h.T                                                        # (H, B)
    # Final projections computed transposed so the outputs land batch-last in
    # the exact layout the Pallas kernel consumes (no relayout pass).
    logits = (params["W_alloc"].T @ hT).reshape(n + 1, m, K, B)
    # softmax over agents (+1 dummy "no winner" row) -> feasible allocations
    allocs = jax.nn.softmax(logits * alloc_softmax_temperature, axis=0)[:n]   # (n, m, K, B)
    w = jax.nn.softplus(params["W_w"].T @ hT) + 0.1                 # (n, B) strictly positive
    b = params["W_b"].T @ hT                                        # (K, B)
    return allocs.astype(jnp.bfloat16), w, b


# --------------------------------------------------------------------------
if __name__ == "__main__":
    key = jax.random.PRNGKey(0)
    B, n, m = 256, 4, 6            # batch, n_agents, m_items
    menu_size, d_hidden = 8, 32
    alloc_softmax_temperature = 1.0
    softmax_temp = 5.0

    kb, kv, kp = jax.random.split(key, 3)
    input_bids = jax.random.uniform(kb, (B, n, m), jnp.float32)
    input_values = jax.random.uniform(kv, (B, n, m), jnp.float32)

    params = init_mechanism_params(kp, n, m, d_hidden, menu_size)
    allocs_bl, w_bl, b_bl = synthetic_mechanism(
        params, input_bids, input_values, alloc_softmax_temperature)

    outs = ramanet_forward_pallas(input_bids, input_values, allocs_bl, w_bl,
                                  b_bl, softmax_temp)
    outs = jax.tree_util.tree_map(jax.block_until_ready, outs)

    # Reference consumes the SAME (bf16-rounded) allocs in the module layout.
    allocs_ref = jnp.transpose(allocs_bl.astype(jnp.float32), (3, 2, 0, 1))   # (B, K, n, m)
    refs = ramanet_forward_ref(input_bids, input_values, allocs_ref,
                               w_bl.T, b_bl.T, softmax_temp)

    names = ["alloc_choice", "item_allocation", "utility", "payments",
             "allocs", "revenue"]
    for name, o, r in zip(names, outs, refs):
        assert o.shape == r.shape, (name, o.shape, r.shape)
        assert jnp.allclose(o, r, rtol=2e-3, atol=2e-3), (
            name, float(jnp.max(jnp.abs(o - r))))

    print("KERNEL_OK")
</pallas_src>

<mosaic_0001>
module attributes {stable_mosaic.version = 11 : i64} {
  func.func @ramanet_kernel(%arg0: i32, %arg1: memref<2x4x6x256xf32, #tpu.memory_space<vmem>>, %arg2: memref<4x6x8x256xbf16, #tpu.memory_space<vmem>>, %arg3: memref<4x1x256xf32, #tpu.memory_space<vmem>>, %arg4: memref<1x8x256xf32, #tpu.memory_space<vmem>>, %arg5: memref<8x256xf32, #tpu.memory_space<vmem>>, %arg6: memref<4x6x256xf32, #tpu.memory_space<vmem>>, %arg7: memref<4x8x256xf32, #tpu.memory_space<vmem>>) attributes {dimension_semantics = [#tpu.dimension_semantics<parallel>], iteration_bounds = array<i64: 1>, scalar_prefetch = 0 : i64, scratch_operands = 0 : i64, tpu.core_type = #tpu.core_type<tc>, window_params = [{transform_indices = @transform_0, window_bounds = array<i64: 2, 4, 6, 256>}, {transform_indices = @transform_1, window_bounds = array<i64: 4, 6, 8, 256>}, {transform_indices = @transform_2, window_bounds = array<i64: 4, 1, 256>}, {transform_indices = @transform_3, window_bounds = array<i64: 1, 8, 256>}, {transform_indices = @transform_4, window_bounds = array<i64: 8, 256>}, {transform_indices = @transform_5, window_bounds = array<i64: 4, 6, 256>}, {transform_indices = @transform_6, window_bounds = array<i64: 4, 8, 256>}]} {
    %c0 = arith.constant 0 : index
    %c0_0 = arith.constant 0 : index
    %c0_1 = arith.constant 0 : index
    %c0_2 = arith.constant 0 : index
    %0 = vector.load %arg1[%c0, %c0_0, %c0_1, %c0_2] : memref<2x4x6x256xf32, #tpu.memory_space<vmem>>, vector<1x4x6x256xf32>
    %1 = vector.shape_cast %0 : vector<1x4x6x256xf32> to vector<4x6x256xf32>
    %c1 = arith.constant 1 : index
    %c0_3 = arith.constant 0 : index
    %c0_4 = arith.constant 0 : index
    %c0_5 = arith.constant 0 : index
    %2 = vector.load %arg1[%c1, %c0_3, %c0_4, %c0_5] : memref<2x4x6x256xf32, #tpu.memory_space<vmem>>, vector<1x4x6x256xf32>
    %3 = vector.shape_cast %2 : vector<1x4x6x256xf32> to vector<4x6x256xf32>
    %c0_6 = arith.constant 0 : index
    %c0_7 = arith.constant 0 : index
    %c0_8 = arith.constant 0 : index
    %c0_9 = arith.constant 0 : index
    %4 = vector.load %arg2[%c0_6, %c0_7, %c0_8, %c0_9] : memref<4x6x8x256xbf16, #tpu.memory_space<vmem>>, vector<4x6x8x256xbf16>
    %5 = arith.extf %4 : vector<4x6x8x256xbf16> to vector<4x6x8x256xf32>
    %c0_10 = arith.constant 0 : index
    %c0_11 = arith.constant 0 : index
    %c0_12 = arith.constant 0 : index
    %6 = vector.load %arg3[%c0_10, %c0_11, %c0_12] : memref<4x1x256xf32, #tpu.memory_space<vmem>>, vector<4x1x256xf32>
    %c0_13 = arith.constant 0 : index
    %c0_14 = arith.constant 0 : index
    %c0_15 = arith.constant 0 : index
    %7 = vector.load %arg4[%c0_13, %c0_14, %c0_15] : memref<1x8x256xf32, #tpu.memory_space<vmem>>, vector<1x8x256xf32>
    %8 = vector.shape_cast %1 : vector<4x6x256xf32> to vector<4x6x1x256xf32>
    %9 = vector.broadcast %8 : vector<4x6x1x256xf32> to vector<4x6x8x256xf32>
    %10 = arith.mulf %5, %9 : vector<4x6x8x256xf32>
    %cst = arith.constant dense<0.000000e+00> : vector<4x8x256xf32>
    %11 = vector.multi_reduction <add>, %10, %cst [1] : vector<4x6x8x256xf32> to vector<4x8x256xf32>
    %12 = vector.broadcast %6 : vector<4x1x256xf32> to vector<4x8x256xf32>
    %13 = arith.mulf %12, %11 : vector<4x8x256xf32>
    %cst_16 = arith.constant dense<0.000000e+00> : vector<8x256xf32>
    %14 = vector.multi_reduction <add>, %13, %cst_16 [0] : vector<4x8x256xf32> to vector<8x256xf32>
    %15 = vector.shape_cast %14 : vector<8x256xf32> to vector<1x8x256xf32>
    %16 = arith.addf %15, %7 : vector<1x8x256xf32>
    %cst_17 = arith.constant 5.000000e+00 : f32
    %17 = vector.broadcast %cst_17 : f32 to vector<1x8x256xf32>
    %18 = arith.mulf %16, %17 : vector<1x8x256xf32>
    %cst_18 = arith.constant dense<0xFF800000> : vector<1x256xf32>
    %19 = vector.multi_reduction <maximumf>, %18, %cst_18 [1] : vector<1x8x256xf32> to vector<1x256xf32>
    %20 = vector.shape_cast %19 : vector<1x256xf32> to vector<1x1x256xf32>
    %cst_19 = arith.constant 0.000000e+00 : f32
    %21 = vector.broadcast %cst_19 : f32 to vector<1x1x256xf32>
    %22 = arith.maximumf %20, %21 : vector<1x1x256xf32>
    %23 = vector.broadcast %22 : vector<1x1x256xf32> to vector<1x8x256xf32>
    %24 = arith.subf %18, %23 : vector<1x8x256xf32>
    %25 = math.exp %24 : vector<1x8x256xf32>
    %cst_20 = arith.constant 0.000000e+00 : f32
    %26 = vector.broadcast %cst_20 : f32 to vector<1x1x256xf32>
    %27 = arith.subf %26, %22 : vector<1x1x256xf32>
    %28 = math.exp %27 : vector<1x1x256xf32>
    %cst_21 = arith.constant dense<0.000000e+00> : vector<1x256xf32>
    %29 = vector.multi_reduction <add>, %25, %cst_21 [1] : vector<1x8x256xf32> to vector<1x256xf32>
    %30 = vector.shape_cast %29 : vector<1x256xf32> to vector<1x1x256xf32>
    %31 = arith.addf %30, %28 : vector<1x1x256xf32>
    %32 = tpu.reciprocal %31 {approx = true} : vector<1x1x256xf32> -> vector<1x1x256xf32>
    %33 = arith.mulf %31, %32 : vector<1x1x256xf32>
    %cst_22 = arith.constant 2.000000e+00 : f32
    %34 = vector.broadcast %cst_22 : f32 to vector<1x1x256xf32>
    %35 = arith.subf %34, %33 : vector<1x1x256xf32>
    %36 = arith.mulf %32, %35 : vector<1x1x256xf32>
    %37 = vector.broadcast %36 : vector<1x1x256xf32> to vector<1x8x256xf32>
    %38 = arith.mulf %25, %37 : vector<1x8x256xf32>
    %39 = arith.mulf %28, %36 : vector<1x1x256xf32>
    %40 = vector.shape_cast %38 : vector<1x8x256xf32> to vector<1x1x8x256xf32>
    %41 = vector.broadcast %40 : vector<1x1x8x256xf32> to vector<4x6x8x256xf32>
    %42 = arith.mulf %41, %5 : vector<4x6x8x256xf32>
    %cst_23 = arith.constant dense<0.000000e+00> : vector<4x6x256xf32>
    %43 = vector.multi_reduction <add>, %42, %cst_23 [2] : vector<4x6x8x256xf32> to vector<4x6x256xf32>
    %44 = vector.broadcast %38 : vector<1x8x256xf32> to vector<4x8x256xf32>
    %45 = arith.mulf %13, %44 : vector<4x8x256xf32>
    %cst_24 = arith.constant dense<0.000000e+00> : vector<4x256xf32>
    %46 = vector.multi_reduction <add>, %45, %cst_24 [1] : vector<4x8x256xf32> to vector<4x256xf32>
    %47 = vector.shape_cast %46 : vector<4x256xf32> to vector<4x1x256xf32>
    %cst_25 = arith.constant dense<0.000000e+00> : vector<1x256xf32>
    %48 = vector.multi_reduction <add>, %47, %cst_25 [0] : vector<4x1x256xf32> to vector<1x256xf32>
    %49 = vector.shape_cast %48 : vector<1x256xf32> to vector<1x1x256xf32>
    %50 = arith.mulf %38, %7 : vector<1x8x256xf32>
    %cst_26 = arith.constant dense<0.000000e+00> : vector<1x256xf32>
    %51 = vector.multi_reduction <add>, %50, %cst_26 [1] : vector<1x8x256xf32> to vector<1x256xf32>
    %52 = vector.shape_cast %51 : vector<1x256xf32> to vector<1x1x256xf32>
    %53 = vector.broadcast %15 : vector<1x8x256xf32> to vector<4x8x256xf32>
    %54 = arith.subf %53, %13 : vector<4x8x256xf32>
    %55 = vector.broadcast %7 : vector<1x8x256xf32> to vector<4x8x256xf32>
    %56 = arith.addf %54, %55 : vector<4x8x256xf32>
    %cst_27 = arith.constant 5.000000e+00 : f32
    %57 = vector.broadcast %cst_27 : f32 to vector<4x8x256xf32>
    %58 = arith.mulf %56, %57 : vector<4x8x256xf32>
    %cst_28 = arith.constant dense<0xFF800000> : vector<4x256xf32>
    %59 = vector.multi_reduction <maximumf>, %58, %cst_28 [1] : vector<4x8x256xf32> to vector<4x256xf32>
    %60 = vector.shape_cast %59 : vector<4x256xf32> to vector<4x1x256xf32>
    %cst_29 = arith.constant 0.000000e+00 : f32
    %61 = vector.broadcast %cst_29 : f32 to vector<4x1x256xf32>
    %62 = arith.maximumf %60, %61 : vector<4x1x256xf32>
    %63 = vector.broadcast %62 : vector<4x1x256xf32> to vector<4x8x256xf32>
    %64 = arith.subf %58, %63 : vector<4x8x256xf32>
    %65 = math.exp %64 : vector<4x8x256xf32>
    %cst_30 = arith.constant 0.000000e+00 : f32
    %66 = vector.broadcast %cst_30 : f32 to vector<4x1x256xf32>
    %67 = arith.subf %66, %62 : vector<4x1x256xf32>
    %68 = math.exp %67 : vector<4x1x256xf32>
    %cst_31 = arith.constant dense<0.000000e+00> : vector<4x256xf32>
    %69 = vector.multi_reduction <add>, %65, %cst_31 [1] : vector<4x8x256xf32> to vector<4x256xf32>
    %70 = vector.shape_cast %69 : vector<4x256xf32> to vector<4x1x256xf32>
    %71 = arith.addf %70, %68 : vector<4x1x256xf32>
    %72 = tpu.reciprocal %71 {approx = true} : vector<4x1x256xf32> -> vector<4x1x256xf32>
    %73 = arith.mulf %71, %72 : vector<4x1x256xf32>
    %cst_32 = arith.constant 2.000000e+00 : f32
    %74 = vector.broadcast %cst_32 : f32 to vector<4x1x256xf32>
    %75 = arith.subf %74, %73 : vector<4x1x256xf32>
    %76 = arith.mulf %72, %75 : vector<4x1x256xf32>
    %77 = vector.broadcast %76 : vector<4x1x256xf32> to vector<4x8x256xf32>
    %78 = arith.mulf %65, %77 : vector<4x8x256xf32>
    %79 = arith.mulf %78, %54 : vector<4x8x256xf32>
    %cst_33 = arith.constant dense<0.000000e+00> : vector<4x256xf32>
    %80 = vector.multi_reduction <add>, %79, %cst_33 [1] : vector<4x8x256xf32> to vector<4x256xf32>
    %81 = vector.shape_cast %80 : vector<4x256xf32> to vector<4x1x256xf32>
    %82 = vector.broadcast %7 : vector<1x8x256xf32> to vector<4x8x256xf32>
    %83 = arith.mulf %78, %82 : vector<4x8x256xf32>
    %cst_34 = arith.constant dense<0.000000e+00> : vector<4x256xf32>
    %84 = vector.multi_reduction <add>, %83, %cst_34 [1] : vector<4x8x256xf32> to vector<4x256xf32>
    %85 = vector.shape_cast %84 : vector<4x256xf32> to vector<4x1x256xf32>
    %86 = arith.mulf %43, %3 : vector<4x6x256xf32>
    %cst_35 = arith.constant dense<0.000000e+00> : vector<4x256xf32>
    %87 = vector.multi_reduction <add>, %86, %cst_35 [1] : vector<4x6x256xf32> to vector<4x256xf32>
    %88 = vector.shape_cast %87 : vector<4x256xf32> to vector<4x1x256xf32>
    %cst_36 = arith.constant 1.000000e+00 : f32
    %89 = vector.broadcast %cst_36 : f32 to vector<4x1x256xf32>
    %90 = arith.divf %89, %6 : vector<4x1x256xf32>
    %91 = arith.addf %49, %52 : vector<1x1x256xf32>
    %92 = vector.broadcast %91 : vector<1x1x256xf32> to vector<4x1x256xf32>
    %93 = arith.subf %92, %81 : vector<4x1x256xf32>
    %94 = arith.subf %93, %85 : vector<4x1x256xf32>
    %95 = arith.mulf %94, %90 : vector<4x1x256xf32>
    %96 = arith.addf %95, %88 : vector<4x1x256xf32>
    %97 = arith.subf %47, %94 : vector<4x1x256xf32>
    %98 = arith.mulf %97, %90 : vector<4x1x256xf32>
    %99 = vector.shape_cast %38 : vector<1x8x256xf32> to vector<8x256xf32>
    %c0_37 = arith.constant 0 : index
    %c0_38 = arith.constant 0 : index
    %100 = vector.load %arg5[%c0_37, %c0_38] : memref<8x256xf32, #tpu.memory_space<vmem>>, vector<8x256xf32>
    tpu.vector_store %arg5[%c0_37, %c0_38], %99 {strides = array<i32>} : memref<8x256xf32, #tpu.memory_space<vmem>>, vector<8x256xf32>,
    %c0_39 = arith.constant 0 : index
    %c0_40 = arith.constant 0 : index
    %c0_41 = arith.constant 0 : index
    %101 = vector.load %arg6[%c0_39, %c0_40, %c0_41] : memref<4x6x256xf32, #tpu.memory_space<vmem>>, vector<4x6x256xf32>
    tpu.vector_store %arg6[%c0_39, %c0_40, %c0_41], %43 {strides = array<i32>} : memref<4x6x256xf32, #tpu.memory_space<vmem>>, vector<4x6x256xf32>,
    %102 = vector.shape_cast %39 : vector<1x1x256xf32> to vector<1x1x256xf32>
    %103 = vector.broadcast %102 : vector<1x1x256xf32> to vector<4x1x256xf32>
    %cst_42 = arith.constant 0.000000e+00 : f32
    %104 = vector.broadcast %cst_42 : f32 to vector<4x4x256xf32>
    %105 = tpu.concatenate %96, %98, %88, %103, %104 in 1 : vector<4x1x256xf32>, vector<4x1x256xf32>, vector<4x1x256xf32>, vector<4x1x256xf32>, vector<4x4x256xf32> -> vector<4x8x256xf32>
    %c0_43 = arith.constant 0 : index
    %c0_44 = arith.constant 0 : index
    %c0_45 = arith.constant 0 : index
    %106 = vector.load %arg7[%c0_43, %c0_44, %c0_45] : memref<4x8x256xf32, #tpu.memory_space<vmem>>, vector<4x8x256xf32>
    tpu.vector_store %arg7[%c0_43, %c0_44, %c0_45], %105 {strides = array<i32>} : memref<4x8x256xf32, #tpu.memory_space<vmem>>, vector<4x8x256xf32>,
    return
  }
  func.func @transform_0(%arg0: i32) -> (i32, i32, i32, i32) {
    %c0_i32 = arith.constant 0 : i32
    %c0_i32_0 = arith.constant 0 : i32
    %c0_i32_1 = arith.constant 0 : i32
    %c0_i32_2 = arith.constant 0 : i32
    return %c0_i32, %c0_i32_0, %c0_i32_1, %arg0 : i32, i32, i32, i32
  }
  func.func @transform_1(%arg0: i32) -> (i32, i32, i32, i32) {
    %c0_i32 = arith.constant 0 : i32
    %c0_i32_0 = arith.constant 0 : i32
    %c0_i32_1 = arith.constant 0 : i32
    %c0_i32_2 = arith.constant 0 : i32
    return %c0_i32, %c0_i32_0, %c0_i32_1, %arg0 : i32, i32, i32, i32
  }
  func.func @transform_2(%arg0: i32) -> (i32, i32, i32) {
    %c0_i32 = arith.constant 0 : i32
    %c0_i32_0 = arith.constant 0 : i32
    %c0_i32_1 = arith.constant 0 : i32
    return %c0_i32, %c0_i32_0, %arg0 : i32, i32, i32
  }
  func.func @transform_3(%arg0: i32) -> (i32, i32, i32) {
    %c0_i32 = arith.constant 0 : i32
    %c0_i32_0 = arith.constant 0 : i32
    %c0_i32_1 = arith.constant 0 : i32
    return %c0_i32, %c0_i32_0, %arg0 : i32, i32, i32
  }
  func.func @transform_4(%arg0: i32) -> (i32, i32) {
    %c0_i32 = arith.constant 0 : i32
    %c0_i32_0 = arith.constant 0 : i32
    return %c0_i32, %arg0 : i32, i32
  }
  func.func @transform_5(%arg0: i32) -> (i32, i32, i32) {
    %c0_i32 = arith.constant 0 : i32
    %c0_i32_0 = arith.constant 0 : i32
    %c0_i32_1 = arith.constant 0 : i32
    return %c0_i32, %c0_i32_0, %arg0 : i32, i32, i32
  }
  func.func @transform_6(%arg0: i32) -> (i32, i32, i32) {
    %c0_i32 = arith.constant 0 : i32
    %c0_i32_0 = arith.constant 0 : i32
    %c0_i32_1 = arith.constant 0 : i32
    return %c0_i32, %c0_i32_0, %arg0 : i32, i32, i32
  }
}

</mosaic_0001>

<bundles_post_ra>
// kernel: tpu_custom_call.1
= control target key start
LH: loop header
LB: loop body
LE: loop exit
PB: predicated region body
PF: predicated region fallthrough
CT: control target
= control target key end

     0   :  { %12 = vsyncpa [#allocation3], 0  ;;  %s4311_s0 = inlined_call_operand.vmem [shape: f32[2,4,6,256], index: 0, kind: input, shape index: {}]   ;;  %s4312_s1 = inlined_call_operand.vmem [shape: bf16[4,6,8,256], index: 1, kind: input, shape index: {}]   ;;  %s4313_s2 = inlined_call_operand.vmem [shape: f32[4,1,256], index: 2, kind: input, shape index: {}]   ;;  %s4314_s3 = inlined_call_operand.vmem [shape: f32[1,8,256], index: 3, kind: input, shape index: {}]   ;;  %s4315_s4 = inlined_call_operand.hbm [shape: f32[8,256], index: 4, kind: output, shape index: {0}]   ;;  %s4316_s5 = inlined_call_operand.vmem [shape: f32[4,6,256], index: 5, kind: output, shape index: {1}]   ;;  %s4317_s6 = inlined_call_operand.hbm [shape: f32[4,8,256], index: 6, kind: output, shape index: {2}]  }
   0x1   :  { %13 = vsyncpa [#allocation5], 0  ;;  %v130_v0 = vlaneseq  ;;  %v2373_v1 = vld [vmem:[%s4312_s1] sm:$0xff]  ;;  %v2378_v2 = vld [vmem:[%s4312_s1 + $0x8] sm:$0xff]  ;;  %v2330_v54 = vmov 1966171168  }
   0x2   :  { %4516 = vst [vmem:[#allocation8_spill] sm:$0xff] %v2373_v1  ;;  %4517 = vst [vmem:[#allocation9_spill] sm:$0xff] %v2378_v2  ;;  %v2383_v3 = vld [vmem:[%s4312_s1 + $0x10] sm:$0xff]  ;;  %v2388_v4 = vld [vmem:[%s4312_s1 + $0x18] sm:$0xff]  ;;  %v128_v50 = vunpack.c.l.s4 %v2330_v54 }
   0x3   :  { %4518 = vst [vmem:[#allocation10_spill] sm:$0xff] %v2383_v3  ;;  %4519 = vst [vmem:[#allocation11_spill] sm:$0xff] %v2388_v4  ;;  %v2393_v5 = vld [vmem:[%s4312_s1 + $0x20] sm:$0xff]  ;;  %v2398_v6 = vld [vmem:[%s4312_s1 + $0x28] sm:$0xff]  ;;  %v2407_v10 = vshrl.u32 %v130_v0, 7 }
   0x4   :  { %4520 = vst [vmem:[#allocation12_spill] sm:$0xff] %v2393_v5  ;;  %4521 = vst [vmem:[#allocation13_spill] sm:$0xff] %v2398_v6  ;;  %v2403_v7 = vld [vmem:[%s4312_s1 + $0x30] sm:$0xff]  ;;  %v2412_v11 = vld [vmem:[%s4312_s1 + $0x38] sm:$0xff]  ;;  %v129_v61 = vunpack.c.0.s8 %v128_v50  ;;  %v4549_v6 = vunpack.c.h.bf16 %v2378_v2 }
   0x5   :  { %4522 = vst [vmem:[#allocation14_spill] sm:$0xff] %v2403_v7  ;;  %4523 = vst [vmem:[#allocation15_spill] sm:$0xff] %v2412_v11  ;;  %v2417_v12 = vld [vmem:[%s4312_s1 + $0x40] sm:$0xff]  ;;  %v2425_v16 = vld [vmem:[%s4312_s1 + $0x48] sm:$0xff]  ;;  %v2568_v47 = vsub.s32 0, %v2407_v10  ;;  %v2579_v44 = vsub.s32 1, %v2407_v10 }
   0x6   :  { %4524 = vst [vmem:[#allocation16_spill] sm:$0xff] %v2417_v12  ;;  %4525 = vst [vmem:[#allocation17_spill] sm:$0xff] %v2425_v16  ;;  %v2430_v17 = vld [vmem:[%s4312_s1 + $0x50] sm:$0xff]  ;;  %v2439_v22 = vld [vmem:[%s4312_s1 + $0x58] sm:$0xff]  ;;  %v132_v38 = vsub.s32 %v129_v61, %v2407_v10  ;;  %v4547_v12 = vunpack.c.h.bf16 %v2373_v1 }
   0x7   :  { %4526 = vst [vmem:[#allocation18_spill] sm:$0xff] %v2430_v17  ;;  %4527 = vst [vmem:[#allocation19_spill] sm:$0xff] %v2439_v22  ;;  %v2444_v23 = vld [vmem:[%s4312_s1 + $0x60] sm:$0xff]  ;;  %v2453_v28 = vld [vmem:[%s4312_s1 + $0x68] sm:$0xff] }
   0x8   :  { %4528 = vst [vmem:[#allocation20_spill] sm:$0xff] %v2444_v23  ;;  %4529 = vst [vmem:[#allocation21_spill] sm:$0xff] %v2453_v28  ;;  %v2458_v29 = vld [vmem:[%s4312_s1 + $0x70] sm:$0xff]  ;;  %v2467_v34 = vld [vmem:[%s4312_s1 + $0x78] sm:$0xff] }
   0x9   :  { %4530 = vst [vmem:[#allocation22_spill] sm:$0xff] %v2458_v29  ;;  %4531 = vst [vmem:[#allocation23_spill] sm:$0xff] %v2467_v34  ;;  %v2472_v35 = vld [vmem:[%s4312_s1 + $0x80] sm:$0xff]  ;;  %v2481_v40 = vld [vmem:[%s4312_s1 + $0x88] sm:$0xff] }
   0xa   :  { %4532 = vst [vmem:[#allocation24_spill] sm:$0xff] %v2472_v35  ;;  %4533 = vst [vmem:[#allocation25_spill] sm:$0xff] %v2481_v40  ;;  %v2486_v41 = vld [vmem:[%s4312_s1 + $0x90] sm:$0xff]  ;;  %v2495_v46 = vld [vmem:[%s4312_s1 + $0x98] sm:$0xff] }
   0xb   :  { %4534 = vst [vmem:[#allocation26_spill] sm:$0xff] %v2486_v41  ;;  %4535 = vst [vmem:[#allocation27_spill] sm:$0xff] %v2495_v46  ;;  %v2504_v51 = vld [vmem:[%s4312_s1 + $0xa0] sm:$0xff]  ;;  %v2509_v52 = vld [vmem:[%s4312_s1 + $0xa8] sm:$0xff] }
   0xc   :  { %4536 = vst [vmem:[#allocation28_spill] sm:$0xff] %v2504_v51  ;;  %4537 = vst [vmem:[#allocation29_spill] sm:$0xff] %v2509_v52  ;;  %v2514_v53 = vld [vmem:[%s4312_s1 + $0xb0] sm:$0xff]  ;;  %v2527_v62 = vld [vmem:[%s4313_s2] sm:$0x3] }
   0xd   :  { %4538 = vst [vmem:[#allocation30_spill] sm:$0xff] %v2514_v53  ;;  %4539 = vst [vmem:[#allocation31_spill] sm:$0xff] %v2527_v62  ;;  %v2532_v63 = vld [vmem:[%s4313_s2 + $0x2] sm:$0x3]  ;;  %v2537_v0 = vld [vmem:[%s4313_s2 + $0x4] sm:$0x3] }
   0xe   :  { %4540 = vst [vmem:[#allocation32_spill] sm:$0xff] %v2532_v63  ;;  %4541 = vst [vmem:[#allocation33_spill] sm:$0xff] %v2537_v0  ;;  %v2542_v60 = vld [vmem:[%s4312_s1 + $0xb8] sm:$0xff]  ;;  %v2550_v57 = vld [vmem:[%s4313_s2 + $0x6] sm:$0x3] }
   0xf   :  { %4542 = vst [vmem:[#allocation34_spill] sm:$0xff] %v2542_v60  ;;  %4543 = vst [vmem:[#allocation35_spill] sm:$0xff] %v2550_v57  ;;  %v2196_v56 = vld [vmem:[%s4311_s0] ss:$8 sps:$4 sm:$0xff]   ;;  %v2199_v49 = vld [vmem:[%s4311_s0 + $0x10] ss:$8 sps:$4 sm:$0xff]  }
  0x10   :  { %v2198_v55 = vld [vmem:[%s4311_s0 + $0x4] ss:$8 sps:$4 sm:$0x33]   ;;  %v2201_v48 = vld [vmem:[%s4311_s0 + $0x14] ss:$8 sps:$4 sm:$0x33]   ;;  %v133_v61 = vrot.slane %v2196_v56, %v132_v38  ;;  %v181_v33 = vrot.slane %v2199_v49, %v132_v38 }
  0x11   :  { %4544 = vst [vmem:[#allocation36_spill] sm:$0xff] %v2568_v47  ;;  %v2202_v58 = vld [vmem:[%s4311_s0 + $0x20] ss:$8 sps:$4 sm:$0xff]   ;;  %v2204_v59 = vld [vmem:[%s4311_s0 + $0x24] ss:$8 sps:$4 sm:$0x33]   ;;  %v140_v43 = vrot.slane %v2198_v55, %v132_v38  ;;  %v188_v32 = vrot.slane %v2201_v48, %v132_v38 }
  0x12   :  { %4545 = vst [vmem:[#allocation37_spill] sm:$0xff] %v2579_v44  ;;  %v2205_v50 = vld [vmem:[%s4311_s0 + $0x30] ss:$8 sps:$4 sm:$0xff]   ;;  %v2207_v54 = vld [vmem:[%s4311_s0 + $0x34] ss:$8 sps:$4 sm:$0x33]   ;;  %v229_v42 = vrot.slane %v2202_v58, %v132_v38  ;;  %v236_v31 = vrot.slane %v2204_v59, %v132_v38  ;;  %v141_v27 = vcombine.high %v133_v61, %v133_v61  ;;  %v2607_v37 = vrot.slane %v133_v61, %v132_v38 }
  0x13   :  { %v277_v30 = vrot.slane %v2205_v50, %v132_v38  ;;  %v284_v45 = vrot.slane %v2207_v54, %v132_v38  ;;  %v142_v26 = vcombine.high %v140_v43, %v140_v43  ;;  %v2609_v25 = vrot.slane %v140_v43, %v132_v38 }
  0x14   :  { %v189_v36 = vcombine.high %v181_v33, %v181_v33  ;;  %v190_v24 = vcombine.high %v188_v32, %v188_v32  ;;  %v2611_v39 = vrot.slane %v181_v33, %v132_v38  ;;  %v2613_v21 = vrot.slane %v188_v32, %v132_v38 }
  0x15   :  { %v2615_v56 = vrot.slane %v141_v27, %v132_v38  ;;  %v2617_v49 = vrot.slane %v142_v26, %v132_v38  ;;  %v2621_v48 = vcombine.high %v2607_v37, %v2607_v37  ;;  %v237_v55 = vcombine.high %v229_v42, %v229_v42 }
  0x16   :  { %v2623_v58 = vrot.slane %v189_v36, %v132_v38  ;;  %v2625_v59 = vrot.slane %v190_v24, %v132_v38  ;;  %v2629_v43 = vcombine.high %v2611_v39, %v2611_v39  ;;  %v238_v33 = vcombine.high %v236_v31, %v236_v31 }
  0x17   :  { %v2633_v27 = vcombine.high %v2615_v56, %v2615_v56  ;;  %v2635_v26 = vrot.slane %v229_v42, %v132_v38  ;;  %v2637_v32 = vrot.slane %v236_v31, %v132_v38  ;;  %v2639_v54 = vrot.slane %v237_v55, %v132_v38 }
  0x18   :  { %v2643_v36 = vcombine.high %v2623_v58, %v2623_v58  ;;  %v2645_v24 = vrot.slane %v238_v33, %v132_v38  ;;  %v285_v50 = vcombine.high %v277_v30, %v277_v30  ;;  %v286_v61 = vcombine.high %v284_v45, %v284_v45 }
  0x19   :  { %v2649_v10 = vcombine.high %v2635_v26, %v2635_v26  ;;  %v2653_v42 = vcombine.high %v2639_v54, %v2639_v54  ;;  %v2655_v31 = vrot.slane %v277_v30, %v132_v38  ;;  %v2657_v55 = vrot.slane %v284_v45, %v132_v38 }
  0x1a   :  { %v2659_v20 = vrot.slane %v285_v50, %v132_v38  ;;  %v2661_v19 = vrot.slane %v286_v61, %v132_v38  ;;  %v320_v33 = vrot.slane %v2607_v37, %v2568_v47  ;;  %v324_v18 = vrot.slane %v2607_v37, %v2579_v44 }
  0x1b   :  { %v2669_v15 = vcombine.high %v2655_v31, %v2655_v31  ;;  %v328_v30 = vrot.slane %v2615_v56, %v2568_v47  ;;  %v332_v45 = vrot.slane %v2615_v56, %v2579_v44  ;;  %v336_v38 = vrot.slane %v2621_v48, %v2568_v47 }
  0x1c   :  { %v2679_v50 = vcombine.high %v2659_v20, %v2659_v20  ;;  %v340_v37 = vrot.slane %v2621_v48, %v2579_v44  ;;  %v344_v61 = vrot.slane %v2633_v27, %v2568_v47  ;;  %v348_v14 = vrot.slane %v2633_v27, %v2579_v44 }
  0x1d   :  { %v352_v13 = vrot.slane %v2609_v25, %v2568_v47  ;;  %v356_v56 = vrot.slane %v2609_v25, %v2579_v44  ;;  %v360_v9 = vrot.slane %v2617_v49, %v2568_v47  ;;  %v364_v8 = vrot.slane %v2617_v49, %v2579_v44 }
  0x1e   :  { %v368_v48 = vrot.slane %v2611_v39, %v2568_v47  ;;  %v372_v57 = vrot.slane %v2611_v39, %v2579_v44  ;;  %v376_v27 = vrot.slane %v2623_v58, %v2568_v47  ;;  %v380_v0 = vrot.slane %v2623_v58, %v2579_v44 }
  0x1f   :  { %v384_v25 = vrot.slane %v2629_v43, %v2568_v47  ;;  %v388_v63 = vrot.slane %v2629_v43, %v2579_v44  ;;  %v392_v49 = vrot.slane %v2643_v36, %v2568_v47  ;;  %v396_v62 = vrot.slane %v2643_v36, %v2579_v44 }
  0x20   :  { %v400_v39 = vrot.slane %v2613_v21, %v2568_v47  ;;  %v404_v60 = vrot.slane %v2613_v21, %v2579_v44  ;;  %v408_v58 = vrot.slane %v2625_v59, %v2568_v47  ;;  %v412_v53 = vrot.slane %v2625_v59, %v2579_v44 }
  0x21   :  { %v416_v43 = vrot.slane %v2635_v26, %v2568_v47  ;;  %v420_v52 = vrot.slane %v2635_v26, %v2579_v44  ;;  %v424_v36 = vrot.slane %v2639_v54, %v2568_v47  ;;  %v428_v51 = vrot.slane %v2639_v54, %v2579_v44 }
  0x22   :  { %v432_v21 = vrot.slane %v2649_v10, %v2568_v47  ;;  %v436_v46 = vrot.slane %v2649_v10, %v2579_v44  ;;  %v440_v59 = vrot.slane %v2653_v42, %v2568_v47  ;;  %v444_v41 = vrot.slane %v2653_v42, %v2579_v44 }
  0x23   :  { %v448_v26 = vrot.slane %v2637_v32, %v2568_v47  ;;  %v452_v40 = vrot.slane %v2637_v32, %v2579_v44  ;;  %v456_v54 = vrot.slane %v2645_v24, %v2568_v47  ;;  %v460_v35 = vrot.slane %v2645_v24, %v2579_v44 }
  0x24   :  { %v464_v10 = vrot.slane %v2655_v31, %v2568_v47  ;;  %v468_v34 = vrot.slane %v2655_v31, %v2579_v44  ;;  %v472_v42 = vrot.slane %v2659_v20, %v2568_v47  ;;  %v476_v29 = vrot.slane %v2659_v20, %v2579_v44 }
  0x25   :  { %v480_v32 = vrot.slane %v2669_v15, %v2568_v47  ;;  %v484_v28 = vrot.slane %v2669_v15, %v2579_v44  ;;  %v488_v24 = vrot.slane %v2679_v50, %v2568_v47  ;;  %v492_v23 = vrot.slane %v2679_v50, %v2579_v44 }
  0x26   :  { %v496_v31 = vrot.slane %v2657_v55, %v2568_v47  ;;  %v500_v22 = vrot.slane %v2657_v55, %v2579_v44  ;;  %v504_v20 = vrot.slane %v2661_v19, %v2568_v47  ;;  %v508_v17 = vrot.slane %v2661_v19, %v2579_v44  ;;  %v4552_v44 = vld [vmem:[#allocation11_spill] sm:$0xff] }
  0x27   :  { %v4546_v15 = vunpack.c.l.bf16 %v2373_v1  ;;  %v558_v11 = vmul.f32 %v324_v18, %v4547_v12  ;;  %v4548_v50 = vunpack.c.l.bf16 %v2378_v2  ;;  %v560_v5 = vmul.f32 %v332_v45, %v4549_v6  ;;  %v4555_v18 = vld [vmem:[#allocation12_spill] sm:$0xff]  ;;  %v4560_v45 = vld [vmem:[#allocation13_spill] sm:$0xff] }
  0x28   :  { %v4550_v55 = vunpack.c.l.bf16 %v2383_v3  ;;  %v4551_v47 = vunpack.c.h.bf16 %v2383_v3  ;;  %v4554_v1 = vunpack.c.h.bf16 %v4552_v44  ;;  %v4558_v2 = vunpack.c.h.bf16 %v4555_v18 }
  0x29   :  { %v557_v16 = vmul.f32 %v320_v33, %v4546_v15  ;;  %v559_v7 = vmul.f32 %v328_v30, %v4548_v50  ;;  %v4553_v15 = vunpack.c.l.bf16 %v4552_v44  ;;  %v4556_v30 = vunpack.c.l.bf16 %v4555_v18  ;;  %v4571_v18 = vld [vmem:[#allocation16_spill] sm:$0xff] }
  0x2a   :  { %v561_v4 = vmul.f32 %v336_v38, %v4550_v55  ;;  %v562_v19 = vmul.f32 %v340_v37, %v4551_v47  ;;  %v564_v12 = vmul.f32 %v348_v14, %v4554_v1  ;;  %v2789_v6 = vmul.f32 %v356_v56, %v4558_v2 }
  0x2b   :  { %v563_v33 = vmul.f32 %v344_v61, %v4553_v15  ;;  %v2785_v50 = vmul.f32 %v352_v13, %v4556_v30  ;;  %v4561_v38 = vunpack.c.l.bf16 %v4560_v45  ;;  %v4563_v47 = vunpack.c.h.bf16 %v4560_v45  ;;  %v4565_v61 = vld [vmem:[#allocation14_spill] sm:$0xff]  ;;  %v4568_v13 = vld [vmem:[#allocation15_spill] sm:$0xff] }
  0x2c   :  { %4559 = vst [vmem:[#allocation39_spill] sm:$0xff] %v2789_v6  ;;  %v4566_v15 = vunpack.c.l.bf16 %v4565_v61  ;;  %v4567_v1 = vunpack.c.h.bf16 %v4565_v61  ;;  %v4569_v30 = vunpack.c.l.bf16 %v4568_v13  ;;  %v4570_v2 = vunpack.c.h.bf16 %v4568_v13  ;;  %v4577_v61 = vld [vmem:[#allocation18_spill] sm:$0xff]  ;;  %v4580_v13 = vld [vmem:[#allocation19_spill] sm:$0xff] }
  0x2d   :  { %4557 = vst [vmem:[#allocation38_spill] sm:$0xff] %v2785_v50  ;;  %v2793_v55 = vmul.f32 %v360_v9, %v4561_v38  ;;  %v2797_v37 = vmul.f32 %v364_v8, %v4563_v47  ;;  %v4572_v6 = vunpack.c.l.bf16 %v4571_v18  ;;  %v4573_v38 = vunpack.c.h.bf16 %v4571_v18  ;;  %v4574_v8 = vld [vmem:[#allocation17_spill] sm:$0xff]  ;;  %v4583_v18 = vld [vmem:[#allocation20_spill] sm:$0xff] }
  0x2e   :  { %v569_v44 = vmul.f32 %v368_v48, %v4566_v15  ;;  %v570_v14 = vmul.f32 %v372_v57, %v4567_v1  ;;  %v571_v3 = vmul.f32 %v376_v27, %v4569_v30  ;;  %v572_v56 = vmul.f32 %v380_v0, %v4570_v2 }
  0x2f   :  { %4562 = vst [vmem:[#allocation40_spill] sm:$0xff] %v2793_v55  ;;  %4564 = vst [vmem:[#allocation41_spill] sm:$0xff] %v2797_v37  ;;  %v573_v9 = vmul.f32 %v384_v25, %v4572_v6  ;;  %v574_v45 = vmul.f32 %v388_v63, %v4573_v38  ;;  %v4575_v47 = vunpack.c.l.bf16 %v4574_v8  ;;  %v4576_v48 = vunpack.c.h.bf16 %v4574_v8  ;;  %v4586_v8 = vld [vmem:[#allocation21_spill] sm:$0xff] }
  0x30   :  { %v4578_v57 = vunpack.c.l.bf16 %v4577_v61  ;;  %v4579_v27 = vunpack.c.h.bf16 %v4577_v61  ;;  %v4581_v0 = vunpack.c.l.bf16 %v4580_v13  ;;  %v4582_v25 = vunpack.c.h.bf16 %v4580_v13  ;;  %v4589_v61 = vld [vmem:[#allocation22_spill] sm:$0xff]  ;;  %v4592_v13 = vld [vmem:[#allocation23_spill] sm:$0xff] }
  0x31   :  { %v575_v37 = vmul.f32 %v392_v49, %v4575_v47  ;;  %v576_v15 = vmul.f32 %v396_v62, %v4576_v48  ;;  %v4584_v63 = vunpack.c.l.bf16 %v4583_v18  ;;  %v4585_v49 = vunpack.c.h.bf16 %v4583_v18  ;;  %v4595_v18 = vld [vmem:[#allocation24_spill] sm:$0xff] }
  0x32   :  { %v577_v1 = vmul.f32 %v400_v39, %v4578_v57  ;;  %v578_v30 = vmul.f32 %v404_v60, %v4579_v27  ;;  %v579_v2 = vmul.f32 %v408_v58, %v4581_v0  ;;  %v580_v6 = vmul.f32 %v412_v53, %v4582_v25 }
  0x33   :  { %v581_v38 = vmul.f32 %v416_v43, %v4584_v63  ;;  %v582_v47 = vmul.f32 %v420_v52, %v4585_v49  ;;  %v4587_v62 = vunpack.c.l.bf16 %v4586_v8  ;;  %v4588_v39 = vunpack.c.h.bf16 %v4586_v8  ;;  %v4598_v8 = vld [vmem:[#allocation25_spill] sm:$0xff] }
  0x34   :  { %v4590_v60 = vunpack.c.l.bf16 %v4589_v61  ;;  %v4591_v58 = vunpack.c.h.bf16 %v4589_v61  ;;  %v4593_v53 = vunpack.c.l.bf16 %v4592_v13  ;;  %v4594_v43 = vunpack.c.h.bf16 %v4592_v13  ;;  %v4601_v61 = vld [vmem:[#allocation26_spill] sm:$0xff]  ;;  %v4604_v13 = vld [vmem:[#allocation27_spill] sm:$0xff] }
  0x35   :  { %v583_v48 = vmul.f32 %v424_v36, %v4587_v62  ;;  %v584_v57 = vmul.f32 %v428_v51, %v4588_v39  ;;  %v4596_v52 = vunpack.c.l.bf16 %v4595_v18  ;;  %v4597_v36 = vunpack.c.h.bf16 %v4595_v18  ;;  %v4607_v18 = vld [vmem:[#allocation28_spill] sm:$0xff] }
  0x36   :  { %v585_v27 = vmul.f32 %v432_v21, %v4590_v60  ;;  %v586_v0 = vmul.f32 %v436_v46, %v4591_v58  ;;  %v587_v25 = vmul.f32 %v440_v59, %v4593_v53  ;;  %v588_v63 = vmul.f32 %v444_v41, %v4594_v43 }
  0x37   :  { %v589_v49 = vmul.f32 %v448_v26, %v4596_v52  ;;  %v590_v62 = vmul.f32 %v452_v40, %v4597_v36  ;;  %v4599_v51 = vunpack.c.l.bf16 %v4598_v8  ;;  %v4600_v21 = vunpack.c.h.bf16 %v4598_v8  ;;  %v4610_v8 = vld [vmem:[#allocation29_spill] sm:$0xff] }
  0x38   :  { %v4602_v46 = vunpack.c.l.bf16 %v4601_v61  ;;  %v4603_v59 = vunpack.c.h.bf16 %v4601_v61  ;;  %v4605_v41 = vunpack.c.l.bf16 %v4604_v13  ;;  %v4606_v26 = vunpack.c.h.bf16 %v4604_v13  ;;  %v4613_v61 = vld [vmem:[#allocation30_spill] sm:$0xff] }
  0x39   :  { %v591_v39 = vmul.f32 %v456_v54, %v4599_v51  ;;  %v592_v60 = vmul.f32 %v460_v35, %v4600_v21  ;;  %v4608_v40 = vunpack.c.l.bf16 %v4607_v18  ;;  %v4609_v54 = vunpack.c.h.bf16 %v4607_v18  ;;  %v4616_v13 = vld [vmem:[#allocation34_spill] sm:$0xff] }
  0x3a   :  { %v593_v58 = vmul.f32 %v464_v10, %v4602_v46  ;;  %v594_v53 = vmul.f32 %v468_v34, %v4603_v59  ;;  %v595_v43 = vmul.f32 %v472_v42, %v4605_v41  ;;  %v596_v52 = vmul.f32 %v476_v29, %v4606_v26 }
  0x3b   :  { %v597_v36 = vmul.f32 %v480_v32, %v4608_v40  ;;  %v598_v51 = vmul.f32 %v484_v28, %v4609_v54  ;;  %v4611_v35 = vunpack.c.l.bf16 %v4610_v8  ;;  %v4612_v10 = vunpack.c.h.bf16 %v4610_v8 }
  0x3c   :  { %v4614_v34 = vunpack.c.l.bf16 %v4613_v61  ;;  %v4615_v42 = vunpack.c.h.bf16 %v4613_v61  ;;  %v4617_v29 = vunpack.c.l.bf16 %v4616_v13  ;;  %v4618_v32 = vunpack.c.h.bf16 %v4616_v13 }
  0x3d   :  { %v599_v21 = vmul.f32 %v488_v24, %v4611_v35  ;;  %v600_v46 = vmul.f32 %v492_v23, %v4612_v10  ;;  %v605_v18 = vadd.f32 %v559_v7, %v557_v16  ;;  %v610_v28 = vadd.f32 %v560_v5, %v558_v11  ;;  %v4619_v16 = vld [vmem:[#allocation38_spill] sm:$0xff] }
  0x3e   :  { %v601_v59 = vmul.f32 %v496_v31, %v4614_v34  ;;  %v602_v41 = vmul.f32 %v500_v22, %v4615_v42  ;;  %v603_v26 = vmul.f32 %v504_v20, %v4617_v29  ;;  %v604_v40 = vmul.f32 %v508_v17, %v4618_v32 }
  0x3f   :  { %v615_v54 = vadd.f32 %v571_v3, %v569_v44  ;;  %v620_v55 = vadd.f32 %v572_v56, %v570_v14  ;;  %v625_v24 = vadd.f32 %v583_v48, %v581_v38  ;;  %v630_v35 = vadd.f32 %v584_v57, %v582_v47  ;;  %v4620_v14 = vld [vmem:[#allocation39_spill] sm:$0xff] }
  0x40   :  { %v635_v8 = vadd.f32 %v595_v43, %v593_v58  ;;  %v640_v23 = vadd.f32 %v596_v52, %v594_v53  ;;  %v606_v10 = vadd.f32 %v605_v18, %v561_v4  ;;  %v611_v50 = vadd.f32 %v610_v28, %v562_v19  ;;  %v4623_v57 = vld [vmem:[#allocation31_spill] sm:$0xff]  ;;  %v115_v28 = vld [vmem:[%s4314_s3] sm:$0xff] }
  0x41   :  { %v616_v31 = vadd.f32 %v615_v54, %v573_v9  ;;  %v621_v34 = vadd.f32 %v620_v55, %v574_v45  ;;  %v626_v61 = vadd.f32 %v625_v24, %v585_v27  ;;  %v631_v22 = vadd.f32 %v630_v35, %v586_v0  ;;  %v4624_v27 = vld [vmem:[#allocation36_spill] sm:$0xff]  ;;  %v4640_v52 = vld [vmem:[#allocation35_spill] sm:$0xff] }
  0x42   :  { %v636_v42 = vadd.f32 %v635_v8, %v597_v36  ;;  %v641_v20 = vadd.f32 %v640_v23, %v598_v51  ;;  %v607_v29 = vadd.f32 %v606_v10, %v563_v33  ;;  %v612_v13 = vadd.f32 %v611_v50, %v564_v12  ;;  %v4621_v8 = vld [vmem:[#allocation40_spill] sm:$0xff]  ;;  %v4622_v33 = vld [vmem:[#allocation41_spill] sm:$0xff]  ;;  %v116_v54 = vld [vmem:[%s4314_s3 + $0x8] sm:$0xff] }
  0x43   :  { %v617_v17 = vadd.f32 %v616_v31, %v575_v37  ;;  %v622_v32 = vadd.f32 %v621_v34, %v576_v15  ;;  %v627_v7 = vadd.f32 %v626_v61, %v587_v25  ;;  %v632_v5 = vadd.f32 %v631_v22, %v588_v63  ;;  %v4630_v63 = vld [vmem:[#allocation32_spill] sm:$0xff] }
  0x44   :  { %v637_v3 = vadd.f32 %v636_v42, %v599_v21  ;;  %v642_v11 = vadd.f32 %v641_v20, %v600_v46  ;;  %v608_v44 = vadd.f32 %v607_v29, %v4619_v16  ;;  %v613_v56 = vadd.f32 %v612_v13, %v4620_v14 }
  0x45   :  { %v618_v4 = vadd.f32 %v617_v17, %v577_v1  ;;  %v623_v19 = vadd.f32 %v622_v32, %v578_v30  ;;  %v628_v18 = vadd.f32 %v627_v7, %v589_v49  ;;  %v633_v45 = vadd.f32 %v632_v5, %v590_v62  ;;  %v4627_v1 = vld [vmem:[#allocation37_spill] sm:$0xff] }
  0x46   :  { %v638_v55 = vadd.f32 %v637_v3, %v601_v59  ;;  %v643_v9 = vadd.f32 %v642_v11, %v602_v41  ;;  %v609_v38 = vadd.f32 %v608_v44, %v4621_v8  ;;  %v614_v12 = vadd.f32 %v613_v56, %v4622_v33 }
  0x47   :  { %v619_v50 = vadd.f32 %v618_v4, %v579_v2  ;;  %v624_v37 = vadd.f32 %v623_v19, %v580_v6  ;;  %v629_v61 = vadd.f32 %v628_v18, %v591_v39  ;;  %v634_v15 = vadd.f32 %v633_v45, %v592_v60  ;;  %v4635_v39 = vld [vmem:[#allocation33_spill] sm:$0xff] }
  0x48   :  { %v639_v47 = vadd.f32 %v638_v55, %v603_v26  ;;  %v644_v48 = vadd.f32 %v643_v9, %v604_v40  ;;  %v4625_v0 = vrot.slane %v4623_v57, %v4624_v27  ;;  %v4628_v30 = vrot.slane %v4623_v57, %v4627_v1 }
  0x49   :  { %v4631_v49 = vrot.slane %v4630_v63, %v4624_v27  ;;  %v4633_v2 = vrot.slane %v4630_v63, %v4627_v1  ;;  %v4636_v60 = vrot.slane %v4635_v39, %v4624_v27  ;;  %v4638_v53 = vrot.slane %v4635_v39, %v4627_v1 }
  0x4a   :  { %v2878_v13 = vmul.f32 %v4625_v0, %v609_v38  ;;  %v2883_v25 = vmul.f32 %v4628_v30, %v614_v12  ;;  %v4641_v36 = vrot.slane %v4640_v52, %v4624_v27  ;;  %v4643_v21 = vrot.slane %v4640_v52, %v4627_v1 }
  0x4b   :  { %v2888_v62 = vmul.f32 %v4631_v49, %v619_v50  ;;  %v2893_v6 = vmul.f32 %v4633_v2, %v624_v37  ;;  %v2898_v58 = vmul.f32 %v4636_v60, %v629_v61  ;;  %v2903_v43 = vmul.f32 %v4638_v53, %v634_v15 }
  0x4c   :  { %4626 = vst [vmem:[#allocation38_spill] sm:$0xff] %v2878_v13  ;;  %4629 = vst [vmem:[#allocation39_spill] sm:$0xff] %v2883_v25  ;;  %v2908_v51 = vmul.f32 %v4641_v36, %v639_v47  ;;  %v2913_v46 = vmul.f32 %v4643_v21, %v644_v48 }
  0x4d   :  { %4632 = vst [vmem:[#allocation40_spill] sm:$0xff] %v2888_v62  ;;  %4634 = vst [vmem:[#allocation41_spill] sm:$0xff] %v2893_v6  ;;  %v697_v59 = vadd.f32 %v2888_v62, %v2878_v13  ;;  %v700_v41 = vadd.f32 %v2893_v6, %v2883_v25 }
  0x4e   :  { %4637 = vst [vmem:[#allocation31_spill] sm:$0xff] %v2898_v58  ;;  %4639 = vst [vmem:[#allocation32_spill] sm:$0xff] %v2903_v43 }
  0x4f   :  { %4642 = vst [vmem:[#allocation33_spill] sm:$0xff] %v2908_v51  ;;  %4644 = vst [vmem:[#allocation35_spill] sm:$0xff] %v2913_v46  ;;  %v698_v26 = vadd.f32 %v697_v59, %v2898_v58  ;;  %v701_v40 = vadd.f32 %v700_v41, %v2903_v43 }
  0x51   :  { %v699_v24 = vadd.f32 %v698_v26, %v2908_v51  ;;  %v702_v35 = vadd.f32 %v701_v40, %v2913_v46 }
  0x53   :  { %v703_v23 = vadd.f32 %v699_v24, %v115_v28  ;;  %v704_v10 = vadd.f32 %v702_v35, %v116_v54  ;;  %v2930_v31 = vsub.f32 %v699_v24, %v2878_v13  ;;  %v2933_v34 = vsub.f32 %v702_v35, %v2883_v25 }
  0x54   :  { %v2936_v22 = vsub.f32 %v699_v24, %v2888_v62  ;;  %v2939_v42 = vsub.f32 %v702_v35, %v2893_v6  ;;  %v2942_v20 = vsub.f32 %v699_v24, %v2898_v58  ;;  %v2945_v29 = vsub.f32 %v702_v35, %v2903_v43 }
  0x55   :  { %4645 = vst [vmem:[#allocation42_spill] sm:$0xff] %v2930_v31  ;;  %4646 = vst [vmem:[#allocation43_spill] sm:$0xff] %v2933_v34  ;;  %v2947_v17 = vmul.f32 5.0, %v703_v23  ;;  %v2949_v32 = vmul.f32 5.0, %v704_v10  ;;  %v2952_v7 = vsub.f32 %v699_v24, %v2908_v51  ;;  %v2955_v5 = vsub.f32 %v702_v35, %v2913_v46 }
  0x56   :  { %4647 = vst [vmem:[#allocation44_spill] sm:$0xff] %v2936_v22  ;;  %4648 = vst [vmem:[#allocation45_spill] sm:$0xff] %v2939_v42  ;;  %v1179_v3 = vadd.f32 %v2930_v31, %v115_v28  ;;  %v1180_v11 = vadd.f32 %v2933_v34, %v116_v54  ;;  %v1181_v16 = vadd.f32 %v2936_v22, %v115_v28  ;;  %v4719_v34 = vld [vmem:[#allocation20_spill] sm:$0xff] }
  0x57   :  { %4649 = vst [vmem:[#allocation46_spill] sm:$0xff] %v2942_v20  ;;  %4650 = vst [vmem:[#allocation47_spill] sm:$0xff] %v2945_v29  ;;  %v1182_v44 = vadd.f32 %v2939_v42, %v116_v54  ;;  %v707_v14 = vrot.slane %v2947_v17, 4  ;;  %v713_v56 = vrot.slane %v2949_v32, 4  ;;  %v1183_v4 = vadd.f32 %v2942_v20, %v115_v28  ;;  %v4715_v20 = vld [vmem:[#allocation19_spill] sm:$0xff] }
  0x58   :  { %4651 = vst [vmem:[#allocation48_spill] sm:$0xff] %v2952_v7  ;;  %4652 = vst [vmem:[#allocation49_spill] sm:$0xff] %v2955_v5  ;;  %v1184_v19 = vadd.f32 %v2945_v29, %v116_v54  ;;  %v1185_v18 = vadd.f32 %v2952_v7, %v115_v28  ;;  %v1186_v45 = vadd.f32 %v2955_v5, %v116_v54  ;;  %v2967_v55 = vmul.f32 5.0, %v1179_v3  ;;  %v4712_v7 = vld [vmem:[#allocation18_spill] sm:$0xff] }
  0x59   :  { %v2969_v9 = vmul.f32 5.0, %v1180_v11  ;;  %v708_v8 = vmax.f32 %v2947_v17, %v707_v14  ;;  %v714_v38 = vmax.f32 %v2949_v32, %v713_v56  ;;  %v2973_v33 = vmul.f32 5.0, %v1181_v16 }
  0x5a   :  { %v2975_v12 = vmul.f32 5.0, %v1182_v44  ;;  %v2977_v50 = vmul.f32 5.0, %v1183_v4  ;;  %v2979_v37 = vmul.f32 5.0, %v1184_v19  ;;  %v2981_v61 = vmul.f32 5.0, %v1185_v18 }
  0x5b   :  { %v2983_v15 = vmul.f32 5.0, %v1186_v45  ;;  %v709_v47 = vrot.slane %v708_v8, 2  ;;  %v715_v48 = vrot.slane %v714_v38, 2  ;;  %v1195_v57 = vrot.slane %v2967_v55, 4 }
  0x5c   :  { %v1201_v0 = vrot.slane %v2969_v9, 4  ;;  %v1207_v30 = vrot.slane %v2973_v33, 4  ;;  %v1213_v63 = vrot.slane %v2975_v12, 4  ;;  %v1219_v49 = vrot.slane %v2977_v50, 4 }
  0x5d   :  { %v1225_v2 = vrot.slane %v2979_v37, 4  ;;  %v710_v39 = vmax.f32 %v708_v8, %v709_v47  ;;  %v716_v60 = vmax.f32 %v714_v38, %v715_v48  ;;  %v1196_v53 = vmax.f32 %v2967_v55, %v1195_v57 }
  0x5e   :  { %v1202_v52 = vmax.f32 %v2969_v9, %v1201_v0  ;;  %v1208_v36 = vmax.f32 %v2973_v33, %v1207_v30  ;;  %v1214_v21 = vmax.f32 %v2975_v12, %v1213_v63  ;;  %v1220_v59 = vmax.f32 %v2977_v50, %v1219_v49 }
  0x5f   :  { %v1226_v41 = vmax.f32 %v2979_v37, %v1225_v2  ;;  %v711_v26 = vrot.slane %v710_v39, 1  ;;  %v717_v40 = vrot.slane %v716_v60, 1  ;;  %v1197_v28 = vrot.slane %v1196_v53, 2 }
  0x60   :  { %v1203_v54 = vrot.slane %v1202_v52, 2  ;;  %v1209_v24 = vrot.slane %v1208_v36, 2  ;;  %v1215_v35 = vrot.slane %v1214_v21, 2  ;;  %v1221_v23 = vrot.slane %v1220_v59, 2 }
  0x61   :  { %v1227_v10 = vrot.slane %v1226_v41, 2  ;;  %v712_v3 = vmax.f32 %v710_v39, %v711_v26  ;;  %v718_v11 = vmax.f32 %v716_v60, %v717_v40  ;;  %v1198_v16 = vmax.f32 %v1196_v53, %v1197_v28 }
  0x62   :  { %v1204_v44 = vmax.f32 %v1202_v52, %v1203_v54  ;;  %v1210_v14 = vmax.f32 %v1208_v36, %v1209_v24  ;;  %v1216_v56 = vmax.f32 %v1214_v21, %v1215_v35  ;;  %v1222_v4 = vmax.f32 %v1220_v59, %v1221_v23 }
  0x63   :  { %v1228_v19 = vmax.f32 %v1226_v41, %v1227_v10  ;;  %v719_v18 = vmax.f32 %v712_v3, 0.0  ;;  %v720_v45 = vmax.f32 %v718_v11, 0.0  ;;  %v1199_v8 = vrot.slane %v1198_v16, 1 }
  0x64   :  { %v1205_v38 = vrot.slane %v1204_v44, 1  ;;  %v1211_v47 = vrot.slane %v1210_v14, 1  ;;  %v1217_v48 = vrot.slane %v1216_v56, 1  ;;  %v1223_v57 = vrot.slane %v1222_v4, 1 }
  0x65   :  { %v1229_v0 = vrot.slane %v1228_v19, 1  ;;  %v721_v30 = vsub.f32 %v2947_v17, %v719_v18  ;;  %v722_v63 = vsub.f32 %v2949_v32, %v720_v45  ;;  %v727_v49 = vsub.f32 0.0, %v719_v18 }
  0x66   :  { %v1200_v2 = vmax.f32 %v1198_v16, %v1199_v8  ;;  %v1206_v39 = vmax.f32 %v1204_v44, %v1205_v38  ;;  %v1212_v60 = vmax.f32 %v1210_v14, %v1211_v47  ;;  %v1218_v53 = vmax.f32 %v1216_v56, %v1217_v48 }
  0x67   :  { %v723_v52 = vmul.f32 1.442695, %v721_v30  ;;  %v725_v36 = vmul.f32 1.442695, %v722_v63  ;;  %v728_v21 = vsub.f32 0.0, %v720_v45  ;;  %v1224_v59 = vmax.f32 %v1222_v4, %v1223_v57 }
  0x68   :  { %v729_v41 = vmul.f32 1.442695, %v727_v49  ;;  %v1230_v26 = vmax.f32 %v1228_v19, %v1229_v0  ;;  %v1231_v40 = vrot.slane %v2981_v61, 4  ;;  %v1237_v28 = vrot.slane %v2983_v15, 4 }
  0x69   :  { %2208 = vpow2.f32 %v723_v52  ;;  %v1243_v54 = vmax.f32 %v1200_v2, 0.0  ;;  %v1244_v17 = vmax.f32 %v1206_v39, 0.0  ;;  %v1245_v24 = vmax.f32 %v1212_v60, 0.0 }
  0x6a   :  { %2210 = vpow2.f32 %v725_v36  ;;  %v1232_v32 = vmax.f32 %v2981_v61, %v1231_v40  ;;  %v1238_v35 = vmax.f32 %v2983_v15, %v1237_v28  ;;  %v1246_v23 = vmax.f32 %v1218_v53, 0.0 }
  0x6b   :  { %v731_v10 = vmul.f32 1.442695, %v728_v21  ;;  %v1247_v3 = vmax.f32 %v1224_v59, 0.0  ;;  %v1248_v11 = vmax.f32 %v1230_v26, 0.0  ;;  %v1251_v16 = vsub.f32 %v2967_v55, %v1243_v54 }
  0x6c   :  { %2212 = vpow2.f32 %v729_v41  ;;  %v1233_v44 = vrot.slane %v1232_v32, 2  ;;  %v1239_v14 = vrot.slane %v1238_v35, 2  ;;  %v1252_v56 = vsub.f32 %v2969_v9, %v1244_v17 }
  0x6d   :  { %v1253_v4 = vsub.f32 %v2973_v33, %v1245_v24  ;;  %v1254_v19 = vsub.f32 %v2975_v12, %v1246_v23  ;;  %v1255_v18 = vsub.f32 %v2977_v50, %v1247_v3  ;;  %v1256_v45 = vsub.f32 %v2979_v37, %v1248_v11 }
  0x6e   :  { %v1234_v8 = vmax.f32 %v1232_v32, %v1233_v44  ;;  %v1240_v38 = vmax.f32 %v1238_v35, %v1239_v14  ;;  %v1259_v47 = vmul.f32 1.442695, %v1251_v16  ;;  %v1261_v48 = vmul.f32 1.442695, %v1252_v56 }
  0x6f   :  { %2214 = vpow2.f32 %v731_v10  ;;  %v1263_v57 = vmul.f32 1.442695, %v1253_v4  ;;  %v1265_v55 = vmul.f32 1.442695, %v1254_v19  ;;  %v1267_v63 = vmul.f32 1.442695, %v1255_v18 }
  0x70   :  { %v1235_v0 = vrot.slane %v1234_v8, 1  ;;  %v1241_v30 = vrot.slane %v1240_v38, 1  ;;  %2216 = vpow2.f32 %v1259_v47  ;;  %v1269_v9 = vmul.f32 1.442695, %v1256_v45 }
  0x71   :  { %2218 = vpow2.f32 %v1261_v48  ;;  %v1275_v33 = vsub.f32 0.0, %v1243_v54  ;;  %v1276_v49 = vsub.f32 0.0, %v1244_v17  ;;  %v1277_v50 = vsub.f32 0.0, %v1245_v24 }
  0x72   :  { %v1236_v12 = vmax.f32 %v1234_v8, %v1235_v0  ;;  %v1242_v2 = vmax.f32 %v1240_v38, %v1241_v30  ;;  %2220 = vpow2.f32 %v1263_v57  ;;  %v1278_v53 = vsub.f32 0.0, %v1246_v23 }
  0x73   :  { %2222 = vpow2.f32 %v1265_v55  ;;  %v1283_v60 = vmul.f32 1.442695, %v1275_v33  ;;  %v1285_v52 = vmul.f32 1.442695, %v1276_v49  ;;  %v1279_v41 = vsub.f32 0.0, %v1247_v3 }
  0x74   :  { %v1249_v37 = vmax.f32 %v1236_v12, 0.0  ;;  %v1250_v39 = vmax.f32 %v1242_v2, 0.0  ;;  %2224 = vpow2.f32 %v1267_v63  ;;  %v1280_v28 = vsub.f32 0.0, %v1248_v11 }
  0x75   :  { %2226 = vpow2.f32 %v1269_v9  ;;  %v1287_v17 = vmul.f32 1.442695, %v1277_v50  ;;  %v1291_v16 = vmul.f32 1.442695, %v1279_v41 }
  0x76   :  { %v3009_v36 = vpop.eup %2208  ;;  %v1257_v21 = vsub.f32 %v2981_v61, %v1249_v37  ;;  %v1258_v59 = vsub.f32 %v2983_v15, %v1250_v39  ;;  %v1281_v54 = vsub.f32 0.0, %v1249_v37  ;;  %2228 = vpow2.f32 %v1283_v60 }
  0x77   :  { %v3013_v26 = vpop.eup %2210  ;;  %v733_v40 = vrot.slane %v3009_v36, 4  ;;  %v1282_v61 = vsub.f32 0.0, %v1250_v39  ;;  %2230 = vpow2.f32 %v1285_v52  ;;  %v1289_v15 = vmul.f32 1.442695, %v1278_v53 }
  0x78   :  { %v739_v24 = vrot.slane %v3013_v26, 4  ;;  %v1271_v32 = vmul.f32 1.442695, %v1257_v21  ;;  %v1273_v35 = vmul.f32 1.442695, %v1258_v59 }
  0x79   :  { %v3017_v23 = vpop.eup %2212  ;;  %v734_v10 = vadd.f32 %v3009_v36, %v733_v40  ;;  %v1293_v11 = vmul.f32 1.442695, %v1280_v28  ;;  %v1295_v4 = vmul.f32 1.442695, %v1281_v54  ;;  %v1297_v45 = vmul.f32 1.442695, %v1282_v61 }
  0x7a   :  { %v740_v3 = vadd.f32 %v3013_v26, %v739_v24  ;;  %2232 = vpow2.f32 %v1271_v32 }
  0x7b   :  { %v735_v44 = vrot.slane %v734_v10, 2  ;;  %2234 = vpow2.f32 %v1273_v35 }
  0x7c   :  { %v3021_v14 = vpop.eup %2214  ;;  %v741_v56 = vrot.slane %v740_v3, 2  ;;  %2236 = vpow2.f32 %v1287_v17 }
  0x7d   :  { %v3023_v19 = vpop.eup %2216  ;;  %v736_v18 = vadd.f32 %v735_v44, %v734_v10  ;;  %2238 = vpow2.f32 %v1289_v15 }
  0x7e   :  { %4653 = vst [vmem:[#allocation50_spill] sm:$0xff] %v3023_v19  ;;  %v3025_v8 = vpop.eup %2218  ;;  %v742_v38 = vadd.f32 %v741_v56, %v740_v3  ;;  %2240 = vpow2.f32 %v1291_v16  ;;  %v1299_v47 = vrot.slane %v3023_v19, 4 }
  0x7f   :  { %4654 = vst [vmem:[#allocation51_spill] sm:$0xff] %v3025_v8  ;;  %v3028_v48 = vpop.eup %2220  ;;  %v737_v57 = vrot.slane %v736_v18, 1  ;;  %2242 = vpow2.f32 %v1293_v11  ;;  %v1305_v55 = vrot.slane %v3025_v8, 4 }
  0x80   :  { %4655 = vst [vmem:[#allocation52_spill] sm:$0xff] %v3028_v48  ;;  %v3031_v0 = vpop.eup %2222  ;;  %v743_v30 = vrot.slane %v742_v38, 1  ;;  %2244 = vpow2.f32 %v1295_v4  ;;  %v1300_v63 = vadd.f32 %v3023_v19, %v1299_v47  ;;  %v1311_v9 = vrot.slane %v3028_v48, 4  ;;  %v4732_v19 = vld [vmem:[#allocation24_spill] sm:$0xff] }
  0x81   :  { %4656 = vst [vmem:[#allocation53_spill] sm:$0xff] %v3031_v0  ;;  %v3035_v33 = vpop.eup %2224  ;;  %v738_v49 = vadd.f32 %v737_v57, %v736_v18  ;;  %2246 = vpow2.f32 %v1297_v45  ;;  %v1306_v12 = vadd.f32 %v3025_v8, %v1305_v55  ;;  %v1317_v2 = vrot.slane %v3031_v0, 4 }
  0x82   :  { %4657 = vst [vmem:[#allocation54_spill] sm:$0xff] %v3035_v33  ;;  %v3039_v50 = vpop.eup %2226  ;;  %v744_v37 = vadd.f32 %v743_v30, %v742_v38  ;;  %v1301_v39 = vrot.slane %v1300_v63, 2  ;;  %v1312_v60 = vadd.f32 %v3028_v48, %v1311_v9  ;;  %v1323_v53 = vrot.slane %v3035_v33, 4 }
  0x83   :  { %4658 = vst [vmem:[#allocation55_spill] sm:$0xff] %v3039_v50  ;;  %v3044_v52 = vadd.f32 %v3017_v23, %v738_v49  ;;  %v1307_v21 = vrot.slane %v1306_v12, 2  ;;  %v1318_v59 = vadd.f32 %v3031_v0, %v1317_v2  ;;  %v1329_v41 = vrot.slane %v3039_v50, 4  ;;  %v2229_v24 = vpop.eup %2228  ;;  %v4728_v0 = vld [vmem:[#allocation23_spill] sm:$0xff] }
  0x84   :  { %v3049_v40 = vadd.f32 %v3021_v14, %v744_v37  ;;  %v1302_v28 = vadd.f32 %v1301_v39, %v1300_v63  ;;  %v1313_v54 = vrot.slane %v1312_v60, 2  ;;  %v1324_v17 = vadd.f32 %v3035_v33, %v1323_v53  ;;  %v2231_v61 = vpop.eup %2230 }
  0x85   :  { %2248 = vrcp.f32 %v3044_v52  ;;  %v1308_v32 = vadd.f32 %v1307_v21, %v1306_v12  ;;  %v1319_v35 = vrot.slane %v1318_v59, 2  ;;  %v1330_v10 = vadd.f32 %v3039_v50, %v1329_v41  ;;  %v4725_v50 = vld [vmem:[#allocation22_spill] sm:$0xff] }
  0x86   :  { %2250 = vrcp.f32 %v3049_v40  ;;  %v1303_v15 = vrot.slane %v1302_v28, 1  ;;  %v1314_v3 = vadd.f32 %v1313_v54, %v1312_v60  ;;  %v1325_v16 = vrot.slane %v1324_v17, 2 }
  0x87   :  { %v3055_v44 = vpop.eup %2232  ;;  %v1309_v11 = vrot.slane %v1308_v32, 1  ;;  %v1320_v56 = vadd.f32 %v1319_v35, %v1318_v59  ;;  %v1331_v4 = vrot.slane %v1330_v10, 2  ;;  %v4726_v33 = vunpack.c.l.bf16 %v4725_v50 }
  0x88   :  { %4659 = vst [vmem:[#allocation56_spill] sm:$0xff] %v3055_v44  ;;  %v3057_v18 = vpop.eup %2234  ;;  %v1304_v45 = vadd.f32 %v1303_v15, %v1302_v28  ;;  %v1315_v38 = vrot.slane %v1314_v3, 1  ;;  %v1326_v47 = vadd.f32 %v1325_v16, %v1324_v17  ;;  %v1335_v57 = vrot.slane %v3055_v44, 4 }
  0x89   :  { %4660 = vst [vmem:[#allocation57_spill] sm:$0xff] %v3057_v18  ;;  %v2237_v55 = vpop.eup %2236  ;;  %v1310_v30 = vadd.f32 %v1309_v11, %v1308_v32  ;;  %v1321_v63 = vrot.slane %v1320_v56, 1  ;;  %v1332_v9 = vadd.f32 %v1331_v4, %v1330_v10  ;;  %v1341_v49 = vrot.slane %v3057_v18, 4 }
  0x8a   :  { %v2239_v12 = vpop.eup %2238  ;;  %v1316_v2 = vadd.f32 %v1315_v38, %v1314_v3  ;;  %v1327_v37 = vrot.slane %v1326_v47, 1  ;;  %v1336_v39 = vadd.f32 %v3055_v44, %v1335_v57  ;;  %v1347_v60 = vadd.f32 %v2229_v24, %v1304_v45  ;;  %v3078_v57 = vld [vmem:[%s4311_s0 + $0x40] sm:$0x3f] }
  0x8b   :  { %v2241_v53 = vpop.eup %2240  ;;  %v1322_v21 = vadd.f32 %v1321_v63, %v1320_v56  ;;  %v1333_v59 = vrot.slane %v1332_v9, 1  ;;  %v1342_v41 = vadd.f32 %v3057_v18, %v1341_v49  ;;  %v3063_v35 = vadd.f32 %v2231_v61, %v1310_v30  ;;  %4666 = vst [vmem:[#allocation63_spill] sm:$0xff] %v3078_v57  ;;  %v4722_v18 = vld [vmem:[#allocation21_spill] sm:$0xff] }
  0x8c   :  { %v2243_v28 = vpop.eup %2242  ;;  %v1328_v54 = vadd.f32 %v1327_v37, %v1326_v47  ;;  %v1337_v17 = vrot.slane %v1336_v39, 2  ;;  %2252 = vrcp.f32 %v1347_v60  ;;  %v3065_v16 = vadd.f32 %v2237_v55, %v1316_v2  ;;  %v3083_v55 = vld [vmem:[%s4311_s0 + $0x48] sm:$0x3f]  ;;  %v3095_v37 = vld [vmem:[%s4311_s0 + $0x50] sm:$0x3f] }
  0x8d   :  { %4661 = vst [vmem:[#allocation58_spill] sm:$0xff] %v3063_v35  ;;  %v2245_v32 = vpop.eup %2244  ;;  %v1334_v10 = vadd.f32 %v1333_v59, %v1332_v9  ;;  %v1343_v15 = vrot.slane %v1342_v41, 2  ;;  %v3067_v4 = vadd.f32 %v2239_v12, %v1322_v21  ;;  %2254 = vrcp.f32 %v3063_v35  ;;  %4667 = vst [vmem:[#allocation64_spill] sm:$0xff] %v3083_v55  ;;  %v4698_v21 = vld [vmem:[#allocation14_spill] sm:$0xff]  ;;  %v4708_v55 = vld [vmem:[#allocation17_spill] sm:$0xff] }
  0x8e   :  { %4662 = vst [vmem:[#allocation59_spill] sm:$0xff] %v3065_v16  ;;  %v2247_v3 = vpop.eup %2246  ;;  %v1338_v11 = vadd.f32 %v1337_v17, %v1336_v39  ;;  %v3069_v56 = vadd.f32 %v2241_v53, %v1328_v54  ;;  %2256 = vrcp.f32 %v3065_v16  ;;  %4669 = vst [vmem:[#allocation66_spill] sm:$0xff] %v3095_v37  ;;  %v4729_v48 = vunpack.c.l.bf16 %v4728_v0 }
  0x8f   :  { %4663 = vst [vmem:[#allocation60_spill] sm:$0xff] %v3067_v4  ;;  %v1344_v24 = vadd.f32 %v1343_v15, %v1342_v41  ;;  %v3071_v38 = vadd.f32 %v2243_v28, %v1334_v10  ;;  %2258 = vrcp.f32 %v3067_v4  ;;  %v3107_v28 = vld [vmem:[%s4311_s0 + $0x58] sm:$0x3f] }
  0x90   :  { %4664 = vst [vmem:[#allocation61_spill] sm:$0xff] %v3069_v56  ;;  %v1339_v45 = vrot.slane %v1338_v11, 1  ;;  %2260 = vrcp.f32 %v3069_v56  ;;  %4671 = vst [vmem:[#allocation68_spill] sm:$0xff] %v3107_v28  ;;  %v4705_v28 = vld [vmem:[#allocation16_spill] sm:$0xff] }
  0x91   :  { %4665 = vst [vmem:[#allocation62_spill] sm:$0xff] %v3071_v38  ;;  %v1345_v61 = vrot.slane %v1344_v24, 1  ;;  %2262 = vrcp.f32 %v3071_v38  ;;  %v4742_v38 = vld [vmem:[#allocation27_spill] sm:$0xff] }
  0x92   :  { %v2249_v47 = vpop.eup %2248  ;;  %v1340_v30 = vadd.f32 %v1339_v45, %v1338_v11 }
  0x93   :  { %v2251_v63 = vpop.eup %2250  ;;  %v749_v9 = vmul.f32 %v2249_v47, %v3044_v52  ;;  %v1346_v49 = vadd.f32 %v1345_v61, %v1344_v24 }
  0x94   :  { %v750_v12 = vmul.f32 %v2251_v63, %v3049_v40  ;;  %v3089_v2 = vadd.f32 %v2245_v32, %v1340_v30 }
  0x95   :  { %v751_v39 = vsub.f32 2.0, %v749_v9  ;;  %v3097_v53 = vadd.f32 %v2247_v3, %v1346_v49 }
  0x96   :  { %4668 = vst [vmem:[#allocation65_spill] sm:$0xff] %v3089_v2  ;;  %v752_v59 = vsub.f32 2.0, %v750_v12  ;;  %2264 = vrcp.f32 %v3089_v2  ;;  %v4739_v2 = vld [vmem:[#allocation26_spill] sm:$0xff] }
  0x97   :  { %4670 = vst [vmem:[#allocation67_spill] sm:$0xff] %v3097_v53  ;;  %v753_v54 = vmul.f32 %v2249_v47, %v751_v39  ;;  %2266 = vrcp.f32 %v3097_v53 }
  0x98   :  { %v754_v10 = vmul.f32 %v2251_v63, %v752_v59  ;;  %v4680_v59 = vld [vmem:[#allocation9_spill] sm:$0xff] }
  0x99   :  { %v3115_v24 = vpop.eup %2252  ;;  %v3118_v45 = vmul.f32 %v3009_v36, %v753_v54  ;;  %v3121_v61 = vmul.f32 %v3017_v23, %v753_v54  ;;  %v4678_v36 = vld [vmem:[#allocation8_spill] sm:$0xff]  ;;  %v4681_v54 = vunpack.c.l.bf16 %v4680_v59  ;;  %v4687_v3 = vunpack.c.h.bf16 %v4680_v59 }
  0x9a   :  { %4672 = vst [vmem:[#allocation69_spill] sm:$0xff] %v3115_v24  ;;  %v3126_v63 = vmul.f32 %v3013_v26, %v754_v10  ;;  %v3129_v9 = vmul.f32 %v3021_v14, %v754_v10  ;;  %v3132_v49 = vmul.f32 %v3115_v24, %v1347_v60  ;;  %v4679_v39 = vunpack.c.l.bf16 %v4678_v36  ;;  %v4682_v26 = vld [vmem:[#allocation10_spill] sm:$0xff]  ;;  %v4684_v10 = vld [vmem:[#allocation11_spill] sm:$0xff]  ;;  %v3173_v17 = vpop.eup %2254 }
  0x9b   :  { %4673 = vst [vmem:[#allocation70_spill] sm:$0xff] %v3118_v45  ;;  %4674 = vst [vmem:[#allocation71_spill] sm:$0xff] %v3121_v61  ;;  %v3143_v11 = vmul.f32 %v3118_v45, %v4681_v54  ;;  %v4683_v30 = vunpack.c.l.bf16 %v4682_v26  ;;  %v4685_v60 = vunpack.c.l.bf16 %v4684_v10  ;;  %v4688_v15 = vunpack.c.h.bf16 %v4682_v26  ;;  %v3195_v52 = vpop.eup %2256  ;;  %v4701_v61 = vld [vmem:[#allocation15_spill] sm:$0xff] }
  0x9c   :  { %4675 = vst [vmem:[#allocation72_spill] sm:$0xff] %v3126_v63  ;;  %4676 = vst [vmem:[#allocation73_spill] sm:$0xff] %v3129_v9  ;;  %v3138_v23 = vmul.f32 %v3118_v45, %v4679_v39  ;;  %v4686_v39 = vunpack.c.h.bf16 %v4678_v36  ;;  %v762_v54 = vmul.f32 %v3126_v63, %v4687_v3  ;;  %v4689_v32 = vunpack.c.h.bf16 %v4684_v10  ;;  %v4691_v36 = vld [vmem:[#allocation12_spill] sm:$0xff]  ;;  %v3217_v27 = vpop.eup %2258 }
  0x9d   :  { %4677 = vst [vmem:[#allocation74_spill] sm:$0xff] %v3132_v49  ;;  %v3148_v14 = vmul.f32 %v3118_v45, %v4683_v30  ;;  %v3153_v47 = vmul.f32 %v3118_v45, %v4685_v60  ;;  %1951 = vst [vmem:[#allocation2] sm:$0xff] %v3118_v45  ;;  %v3165_v30 = vmul.f32 %v3126_v63, %v4688_v15  ;;  %v4693_v3 = vunpack.c.h.bf16 %v4691_v36  ;;  %v4694_v15 = vld [vmem:[#allocation13_spill] sm:$0xff]  ;;  %v3239_v5 = vpop.eup %2260 }
  0x9e   :  { %v760_v12 = vmul.f32 %v3126_v63, %v4686_v39  ;;  %v3170_v60 = vmul.f32 %v3126_v63, %v4689_v32  ;;  %1952 = vst [vmem:[#allocation2 + $0x8] sm:$0xff] %v3126_v63  ;;  %4690 = vst [vmem:[#allocation8_spill] sm:$0xff] %v3173_v17  ;;  %v4692_v39 = vunpack.c.l.bf16 %v4691_v36  ;;  %v4695_v41 = vunpack.c.l.bf16 %v4694_v15  ;;  %v3261_v22 = vpop.eup %2262  ;;  %v4735_v49 = vld [vmem:[#allocation25_spill] sm:$0xff]  ;;  %v4762_v17 = vld [vmem:[#allocation34_spill] sm:$0xff] }
  0x9f   :  { %v3183_v26 = vmul.f32 %v3126_v63, %v4693_v3  ;;  %v4696_v32 = vunpack.c.h.bf16 %v4694_v15  ;;  %4697 = vst [vmem:[#allocation9_spill] sm:$0xff] %v3195_v52  ;;  %v4700_v36 = vunpack.c.h.bf16 %v4698_v21  ;;  %v4703_v15 = vunpack.c.h.bf16 %v4701_v61  ;;  %4704 = vst [vmem:[#allocation10_spill] sm:$0xff] %v3217_v27  ;;  %v4752_v27 = vld [vmem:[#allocation29_spill] sm:$0xff]  ;;  %v4757_v52 = vld [vmem:[#allocation30_spill] sm:$0xff] }
  0xa0   :  { %v3178_v59 = vmul.f32 %v3118_v45, %v4692_v39  ;;  %v3188_v10 = vmul.f32 %v3118_v45, %v4695_v41  ;;  %v4699_v39 = vunpack.c.l.bf16 %v4698_v21  ;;  %v4702_v41 = vunpack.c.l.bf16 %v4701_v61  ;;  %4711 = vst [vmem:[#allocation11_spill] sm:$0xff] %v3239_v5  ;;  %4718 = vst [vmem:[#allocation12_spill] sm:$0xff] %v3261_v22 }
  0xa1   :  { %v3193_v40 = vmul.f32 %v3126_v63, %v4696_v32  ;;  %v3205_v3 = vmul.f32 %v3126_v63, %v4700_v36  ;;  %v3215_v32 = vmul.f32 %v3126_v63, %v4703_v15  ;;  %v4707_v21 = vunpack.c.h.bf16 %v4705_v28 }
  0xa2   :  { %v3200_v9 = vmul.f32 %v3118_v45, %v4699_v39  ;;  %v3210_v1 = vmul.f32 %v3118_v45, %v4702_v41  ;;  %v4706_v39 = vunpack.c.l.bf16 %v4705_v28  ;;  %v4709_v41 = vunpack.c.l.bf16 %v4708_v55 }
  0xa3   :  { %v3227_v36 = vmul.f32 %v3126_v63, %v4707_v21  ;;  %v4710_v61 = vunpack.c.h.bf16 %v4708_v55  ;;  %v4714_v28 = vunpack.c.h.bf16 %v4712_v7  ;;  %v4717_v55 = vunpack.c.h.bf16 %v4715_v20  ;;  %v3303_v8 = vpop.eup %2264 }
  0xa4   :  { %v3222_v37 = vmul.f32 %v3118_v45, %v4706_v39  ;;  %v3232_v57 = vmul.f32 %v3118_v45, %v4709_v41  ;;  %v4713_v39 = vunpack.c.l.bf16 %v4712_v7  ;;  %v4716_v41 = vunpack.c.l.bf16 %v4715_v20  ;;  %4731 = vst [vmem:[#allocation13_spill] sm:$0xff] %v3303_v8  ;;  %v3325_v8 = vpop.eup %2266 }
  0xa5   :  { %v3237_v15 = vmul.f32 %v3126_v63, %v4710_v61  ;;  %v3249_v21 = vmul.f32 %v3126_v63, %v4714_v28  ;;  %v3259_v61 = vmul.f32 %v3126_v63, %v4717_v55  ;;  %v4721_v7 = vunpack.c.h.bf16 %v4719_v34  ;;  %4738 = vst [vmem:[#allocation14_spill] sm:$0xff] %v3325_v8  ;;  %v4747_v8 = vld [vmem:[#allocation28_spill] sm:$0xff] }
  0xa6   :  { %v3244_v29 = vmul.f32 %v3118_v45, %v4713_v39  ;;  %v3254_v42 = vmul.f32 %v3118_v45, %v4716_v41  ;;  %v4720_v39 = vunpack.c.l.bf16 %v4719_v34  ;;  %v4723_v41 = vunpack.c.l.bf16 %v4722_v18 }
  0xa7   :  { %v3271_v28 = vmul.f32 %v3126_v63, %v4721_v7  ;;  %v4724_v20 = vunpack.c.h.bf16 %v4722_v18  ;;  %v4727_v34 = vunpack.c.h.bf16 %v4725_v50  ;;  %v4730_v18 = vunpack.c.h.bf16 %v4728_v0 }
  0xa8   :  { %v3266_v31 = vmul.f32 %v3118_v45, %v4720_v39  ;;  %v3276_v44 = vmul.f32 %v3118_v45, %v4723_v41  ;;  %v3286_v39 = vmul.f32 %v3118_v45, %v4726_v33  ;;  %v3296_v41 = vmul.f32 %v3118_v45, %v4729_v48 }
  0xa9   :  { %v3281_v55 = vmul.f32 %v3126_v63, %v4724_v20  ;;  %v3291_v7 = vmul.f32 %v3126_v63, %v4727_v34  ;;  %v3301_v20 = vmul.f32 %v3126_v63, %v4730_v18  ;;  %v4733_v33 = vunpack.c.l.bf16 %v4732_v19 }
  0xaa   :  { %v4734_v50 = vunpack.c.h.bf16 %v4732_v19  ;;  %v4736_v48 = vunpack.c.l.bf16 %v4735_v49  ;;  %v4737_v0 = vunpack.c.h.bf16 %v4735_v49  ;;  %v4741_v19 = vunpack.c.h.bf16 %v4739_v2 }
  0xab   :  { %v3308_v24 = vmul.f32 %v3118_v45, %v4733_v33  ;;  %v4740_v33 = vunpack.c.l.bf16 %v4739_v2  ;;  %v4745_v49 = vunpack.c.h.bf16 %v4742_v38  ;;  %v4748_v56 = vunpack.c.l.bf16 %v4747_v8 }
  0xac   :  { %v3313_v34 = vmul.f32 %v3126_v63, %v4734_v50  ;;  %v3318_v53 = vmul.f32 %v3118_v45, %v4736_v48  ;;  %v3323_v18 = vmul.f32 %v3126_v63, %v4737_v0  ;;  %v3335_v50 = vmul.f32 %v3126_v63, %v4741_v19 }
  0xad   :  { %v3330_v22 = vmul.f32 %v3118_v45, %v4740_v33  ;;  %v4743_v48 = vunpack.c.l.bf16 %v4742_v38  ;;  %v3345_v0 = vmul.f32 %v3126_v63, %v4745_v49  ;;  %v3350_v33 = vmul.f32 %v3118_v45, %v4748_v56 }
  0xae   :  { %v4750_v2 = vunpack.c.h.bf16 %v4747_v8  ;;  %v4753_v4 = vunpack.c.l.bf16 %v4752_v27  ;;  %v4755_v38 = vunpack.c.h.bf16 %v4752_v27  ;;  %v4758_v16 = vunpack.c.l.bf16 %v4757_v52 }
  0xaf   :  { %v3340_v5 = vmul.f32 %v3118_v45, %v4743_v48  ;;  %4746 = vst [vmem:[#allocation16_spill] sm:$0xff] %v3345_v0  ;;  %4749 = vst [vmem:[#allocation17_spill] sm:$0xff] %v3350_v33  ;;  %v4760_v8 = vunpack.c.h.bf16 %v4757_v52  ;;  %v4763_v35 = vunpack.c.l.bf16 %v4762_v17  ;;  %v4765_v27 = vunpack.c.h.bf16 %v4762_v17 }
  0xb0   :  { %v3355_v19 = vmul.f32 %v3126_v63, %v4750_v2  ;;  %v3360_v48 = vmul.f32 %v3118_v45, %v4753_v4  ;;  %v3365_v49 = vmul.f32 %v3126_v63, %v4755_v38  ;;  %v3370_v56 = vmul.f32 %v3118_v45, %v4758_v16 }
  0xb1   :  { %4744 = vst [vmem:[#allocation15_spill] sm:$0xff] %v3340_v5  ;;  %v3375_v2 = vmul.f32 %v3126_v63, %v4760_v8  ;;  %v3380_v4 = vmul.f32 %v3118_v45, %v4763_v35  ;;  %v3385_v38 = vmul.f32 %v3126_v63, %v4765_v27  ;;  %v807_v46 = vrot.slane %v3138_v23, 4 }
  0xb2   :  { %4751 = vst [vmem:[#allocation18_spill] sm:$0xff] %v3355_v19  ;;  %4754 = vst [vmem:[#allocation19_spill] sm:$0xff] %v3360_v48  ;;  %v813_v51 = vrot.slane %v760_v12, 4  ;;  %v819_v16 = vrot.slane %v3143_v11, 4  ;;  %v825_v43 = vrot.slane %v762_v54, 4  ;;  %v831_v52 = vrot.slane %v3148_v14, 4 }
  0xb3   :  { %4756 = vst [vmem:[#allocation20_spill] sm:$0xff] %v3365_v49  ;;  %4759 = vst [vmem:[#allocation21_spill] sm:$0xff] %v3370_v56  ;;  %v837_v8 = vrot.slane %v3165_v30, 4  ;;  %v843_v58 = vrot.slane %v3153_v47, 4  ;;  %v849_v35 = vrot.slane %v3170_v60, 4  ;;  %v808_v6 = vadd.f32 %v807_v46, %v3138_v23 }
  0xb4   :  { %4761 = vst [vmem:[#allocation22_spill] sm:$0xff] %v3375_v2  ;;  %4764 = vst [vmem:[#allocation23_spill] sm:$0xff] %v3380_v4  ;;  %v814_v17 = vadd.f32 %v813_v51, %v760_v12  ;;  %v820_v27 = vadd.f32 %v819_v16, %v3143_v11  ;;  %v826_v62 = vadd.f32 %v825_v43, %v762_v54 }
  0xb5   :  { %4766 = vst [vmem:[#allocation24_spill] sm:$0xff] %v3385_v38  ;;  %v832_v63 = vadd.f32 %v831_v52, %v3148_v14  ;;  %v838_v25 = vadd.f32 %v837_v8, %v3165_v30  ;;  %v844_v45 = vadd.f32 %v843_v58, %v3153_v47  ;;  %v850_v13 = vadd.f32 %v849_v35, %v3170_v60 }
  0xb6   :  { %v809_v38 = vrot.slane %v808_v6, 2  ;;  %v815_v4 = vrot.slane %v814_v17, 2  ;;  %v821_v2 = vrot.slane %v820_v27, 2  ;;  %v827_v56 = vrot.slane %v826_v62, 2 }
  0xb7   :  { %v833_v49 = vrot.slane %v832_v63, 2  ;;  %v839_v48 = vrot.slane %v838_v25, 2  ;;  %v845_v19 = vrot.slane %v844_v45, 2  ;;  %v851_v46 = vrot.slane %v850_v13, 2 }
  0xb8   :  { %v810_v51 = vadd.f32 %v809_v38, %v808_v6  ;;  %v816_v12 = vadd.f32 %v815_v4, %v814_v17  ;;  %v822_v11 = vadd.f32 %v821_v2, %v820_v27  ;;  %v828_v43 = vadd.f32 %v827_v56, %v826_v62 }
  0xb9   :  { %v834_v23 = vadd.f32 %v833_v49, %v832_v63  ;;  %v840_v14 = vadd.f32 %v839_v48, %v838_v25  ;;  %v846_v54 = vadd.f32 %v845_v19, %v844_v45  ;;  %v852_v30 = vadd.f32 %v851_v46, %v850_v13 }
  0xba   :  { %v811_v16 = vrot.slane %v810_v51, 1  ;;  %v817_v58 = vrot.slane %v816_v12, 1  ;;  %v823_v47 = vrot.slane %v822_v11, 1  ;;  %v829_v60 = vrot.slane %v828_v43, 1 }
  0xbb   :  { %v835_v52 = vrot.slane %v834_v23, 1  ;;  %v841_v8 = vrot.slane %v840_v14, 1  ;;  %v847_v35 = vrot.slane %v846_v54, 1  ;;  %v853_v33 = vrot.slane %v852_v30, 1 }
  0xbc   :  { %v3399_v0 = vadd.f32 %v811_v16, %v810_v51  ;;  %v3401_v5 = vadd.f32 %v817_v58, %v816_v12  ;;  %v3403_v6 = vadd.f32 %v823_v47, %v822_v11  ;;  %v3405_v2 = vadd.f32 %v829_v60, %v828_v43 }
  0xbd   :  { %v3407_v62 = vadd.f32 %v835_v52, %v834_v23  ;;  %v3409_v25 = vadd.f32 %v841_v8, %v840_v14  ;;  %v3411_v13 = vadd.f32 %v847_v35, %v846_v54  ;;  %v3413_v45 = vadd.f32 %v853_v33, %v852_v30 }
  0xbe   :  { %4767 = vst [vmem:[#allocation25_spill] sm:$0xff] %v3399_v0  ;;  %4768 = vst [vmem:[#allocation26_spill] sm:$0xff] %v3401_v5  ;;  %v855_v63 = vrot.slane %v3178_v59, 4  ;;  %v861_v19 = vrot.slane %v3183_v26, 4  ;;  %v867_v48 = vrot.slane %v3188_v10, 4  ;;  %v873_v49 = vrot.slane %v3193_v40, 4 }
  0xbf   :  { %4769 = vst [vmem:[#allocation27_spill] sm:$0xff] %v3403_v6  ;;  %4770 = vst [vmem:[#allocation28_spill] sm:$0xff] %v3405_v2  ;;  %v879_v56 = vrot.slane %v3200_v9, 4  ;;  %v885_v4 = vrot.slane %v3205_v3, 4  ;;  %v891_v38 = vrot.slane %v3210_v1, 4  ;;  %v897_v17 = vrot.slane %v3215_v32, 4 }
  0xc0   :  { %4771 = vst [vmem:[#allocation29_spill] sm:$0xff] %v3407_v62  ;;  %4772 = vst [vmem:[#allocation30_spill] sm:$0xff] %v3409_v25  ;;  %v856_v27 = vadd.f32 %v855_v63, %v3178_v59  ;;  %v862_v33 = vadd.f32 %v861_v19, %v3183_v26  ;;  %v868_v46 = vadd.f32 %v867_v48, %v3188_v10 }
  0xc1   :  { %4773 = vst [vmem:[#allocation34_spill] sm:$0xff] %v3411_v13  ;;  %4774 = vst [vmem:[#allocation75_spill] sm:$0xff] %v3413_v45  ;;  %v874_v51 = vadd.f32 %v873_v49, %v3193_v40  ;;  %v880_v12 = vadd.f32 %v879_v56, %v3200_v9  ;;  %v886_v11 = vadd.f32 %v885_v4, %v3205_v3 }
  0xc2   :  { %v892_v43 = vadd.f32 %v891_v38, %v3210_v1  ;;  %v898_v23 = vadd.f32 %v897_v17, %v3215_v32  ;;  %v857_v14 = vrot.slane %v856_v27, 2  ;;  %v863_v54 = vrot.slane %v862_v33, 2 }
  0xc3   :  { %v869_v30 = vrot.slane %v868_v46, 2  ;;  %v875_v16 = vrot.slane %v874_v51, 2  ;;  %v881_v58 = vrot.slane %v880_v12, 2  ;;  %v887_v59 = vrot.slane %v886_v11, 2 }
  0xc4   :  { %v893_v47 = vrot.slane %v892_v43, 2  ;;  %v899_v26 = vrot.slane %v898_v23, 2  ;;  %v858_v60 = vadd.f32 %v857_v14, %v856_v27  ;;  %v864_v10 = vadd.f32 %v863_v54, %v862_v33 }
  0xc5   :  { %v870_v52 = vadd.f32 %v869_v30, %v868_v46  ;;  %v876_v40 = vadd.f32 %v875_v16, %v874_v51  ;;  %v882_v8 = vadd.f32 %v881_v58, %v880_v12  ;;  %v888_v9 = vadd.f32 %v887_v59, %v886_v11 }
  0xc6   :  { %v894_v35 = vadd.f32 %v893_v47, %v892_v43  ;;  %v900_v3 = vadd.f32 %v899_v26, %v898_v23  ;;  %v859_v63 = vrot.slane %v858_v60, 1  ;;  %v865_v1 = vrot.slane %v864_v10, 1 }
  0xc7   :  { %v871_v19 = vrot.slane %v870_v52, 1  ;;  %v877_v32 = vrot.slane %v876_v40, 1  ;;  %v883_v48 = vrot.slane %v882_v8, 1  ;;  %v889_v49 = vrot.slane %v888_v9, 1 }
  0xc8   :  { %v895_v56 = vrot.slane %v894_v35, 1  ;;  %v901_v4 = vrot.slane %v900_v3, 1  ;;  %v3431_v38 = vadd.f32 %v859_v63, %v858_v60  ;;  %v3433_v17 = vadd.f32 %v865_v1, %v864_v10 }
  0xc9   :  { %v3435_v27 = vadd.f32 %v871_v19, %v870_v52  ;;  %v3437_v33 = vadd.f32 %v877_v32, %v876_v40  ;;  %v3439_v46 = vadd.f32 %v883_v48, %v882_v8  ;;  %v3441_v51 = vadd.f32 %v889_v49, %v888_v9 }
  0xca   :  { %4775 = vst [vmem:[#allocation76_spill] sm:$0xff] %v3431_v38  ;;  %4776 = vst [vmem:[#allocation77_spill] sm:$0xff] %v3433_v17  ;;  %v3443_v12 = vadd.f32 %v895_v56, %v894_v35  ;;  %v3445_v11 = vadd.f32 %v901_v4, %v900_v3  ;;  %v903_v43 = vrot.slane %v3222_v37, 4  ;;  %v909_v23 = vrot.slane %v3227_v36, 4 }
  0xcb   :  { %4777 = vst [vmem:[#allocation78_spill] sm:$0xff] %v3435_v27  ;;  %4778 = vst [vmem:[#allocation79_spill] sm:$0xff] %v3437_v33  ;;  %v915_v14 = vrot.slane %v3232_v57, 4  ;;  %v921_v54 = vrot.slane %v3237_v15, 4  ;;  %v927_v30 = vrot.slane %v3244_v29, 4  ;;  %v933_v16 = vrot.slane %v3249_v21, 4 }
  0xcc   :  { %4779 = vst [vmem:[#allocation80_spill] sm:$0xff] %v3445_v11  ;;  %v939_v58 = vrot.slane %v3254_v42, 4  ;;  %v945_v59 = vrot.slane %v3259_v61, 4  ;;  %v904_v47 = vadd.f32 %v903_v43, %v3222_v37  ;;  %v910_v26 = vadd.f32 %v909_v23, %v3227_v36 }
  0xcd   :  { %v916_v60 = vadd.f32 %v915_v14, %v3232_v57  ;;  %v922_v10 = vadd.f32 %v921_v54, %v3237_v15  ;;  %v928_v52 = vadd.f32 %v927_v30, %v3244_v29  ;;  %v934_v40 = vadd.f32 %v933_v16, %v3249_v21 }
  0xce   :  { %v940_v8 = vadd.f32 %v939_v58, %v3254_v42  ;;  %v946_v9 = vadd.f32 %v945_v59, %v3259_v61  ;;  %v905_v35 = vrot.slane %v904_v47, 2  ;;  %v911_v3 = vrot.slane %v910_v26, 2 }
  0xcf   :  { %v917_v63 = vrot.slane %v916_v60, 2  ;;  %v923_v1 = vrot.slane %v922_v10, 2  ;;  %v929_v19 = vrot.slane %v928_v52, 2  ;;  %v935_v37 = vrot.slane %v934_v40, 2 }
  0xd0   :  { %v941_v32 = vrot.slane %v940_v8, 2  ;;  %v947_v36 = vrot.slane %v946_v9, 2  ;;  %v906_v48 = vadd.f32 %v905_v35, %v904_v47  ;;  %v912_v57 = vadd.f32 %v911_v3, %v910_v26 }
  0xd1   :  { %v918_v49 = vadd.f32 %v917_v63, %v916_v60  ;;  %v924_v15 = vadd.f32 %v923_v1, %v922_v10  ;;  %v930_v56 = vadd.f32 %v929_v19, %v928_v52  ;;  %v936_v29 = vadd.f32 %v935_v37, %v934_v40 }
  0xd2   :  { %v942_v4 = vadd.f32 %v941_v32, %v940_v8  ;;  %v948_v21 = vadd.f32 %v947_v36, %v946_v9  ;;  %v907_v43 = vrot.slane %v906_v48, 1  ;;  %v913_v42 = vrot.slane %v912_v57, 1 }
  0xd3   :  { %v919_v23 = vrot.slane %v918_v49, 1  ;;  %v925_v61 = vrot.slane %v924_v15, 1  ;;  %v931_v14 = vrot.slane %v930_v56, 1  ;;  %v937_v54 = vrot.slane %v936_v29, 1 }
  0xd4   :  { %v943_v30 = vrot.slane %v942_v4, 1  ;;  %v949_v16 = vrot.slane %v948_v21, 1  ;;  %v3463_v58 = vadd.f32 %v907_v43, %v906_v48  ;;  %v3465_v59 = vadd.f32 %v913_v42, %v912_v57 }
  0xd5   :  { %v3467_v47 = vadd.f32 %v919_v23, %v918_v49  ;;  %v3469_v26 = vadd.f32 %v925_v61, %v924_v15  ;;  %v3471_v60 = vadd.f32 %v931_v14, %v930_v56  ;;  %v3473_v10 = vadd.f32 %v937_v54, %v936_v29 }
  0xd6   :  { %4780 = vst [vmem:[#allocation81_spill] sm:$0xff] %v3463_v58  ;;  %4781 = vst [vmem:[#allocation82_spill] sm:$0xff] %v3465_v59  ;;  %v3475_v52 = vadd.f32 %v943_v30, %v942_v4  ;;  %v3477_v40 = vadd.f32 %v949_v16, %v948_v21  ;;  %v951_v8 = vrot.slane %v3266_v31, 4  ;;  %v957_v9 = vrot.slane %v3271_v28, 4 }
  0xd7   :  { %4782 = vst [vmem:[#allocation83_spill] sm:$0xff] %v3467_v47  ;;  %4783 = vst [vmem:[#allocation84_spill] sm:$0xff] %v3469_v26  ;;  %v963_v35 = vrot.slane %v3276_v44, 4  ;;  %v969_v3 = vrot.slane %v3281_v55, 4  ;;  %v975_v63 = vrot.slane %v3286_v39, 4  ;;  %v981_v1 = vrot.slane %v3291_v7, 4 }
  0xd8   :  { %4784 = vst [vmem:[#allocation85_spill] sm:$0xff] %v3471_v60  ;;  %4785 = vst [vmem:[#allocation86_spill] sm:$0xff] %v3473_v10  ;;  %v987_v19 = vrot.slane %v3296_v41, 4  ;;  %v993_v37 = vrot.slane %v3301_v20, 4  ;;  %v952_v32 = vadd.f32 %v951_v8, %v3266_v31  ;;  %v958_v36 = vadd.f32 %v957_v9, %v3271_v28 }
  0xd9   :  { %4786 = vst [vmem:[#allocation87_spill] sm:$0xff] %v3475_v52  ;;  %4787 = vst [vmem:[#allocation88_spill] sm:$0xff] %v3477_v40  ;;  %v964_v48 = vadd.f32 %v963_v35, %v3276_v44  ;;  %v970_v57 = vadd.f32 %v969_v3, %v3281_v55  ;;  %v976_v49 = vadd.f32 %v975_v63, %v3286_v39 }
  0xda   :  { %v982_v15 = vadd.f32 %v981_v1, %v3291_v7  ;;  %v988_v56 = vadd.f32 %v987_v19, %v3296_v41  ;;  %v994_v29 = vadd.f32 %v993_v37, %v3301_v20  ;;  %v953_v4 = vrot.slane %v952_v32, 2 }
  0xdb   :  { %v959_v21 = vrot.slane %v958_v36, 2  ;;  %v965_v43 = vrot.slane %v964_v48, 2  ;;  %v971_v42 = vrot.slane %v970_v57, 2  ;;  %v977_v23 = vrot.slane %v976_v49, 2 }
  0xdc   :  { %v983_v31 = vrot.slane %v982_v15, 2  ;;  %v989_v61 = vrot.slane %v988_v56, 2  ;;  %v995_v28 = vrot.slane %v994_v29, 2  ;;  %v954_v14 = vadd.f32 %v953_v4, %v952_v32 }
  0xdd   :  { %v960_v44 = vadd.f32 %v959_v21, %v958_v36  ;;  %v966_v54 = vadd.f32 %v965_v43, %v964_v48  ;;  %v972_v55 = vadd.f32 %v971_v42, %v970_v57  ;;  %v978_v30 = vadd.f32 %v977_v23, %v976_v49  ;;  %v4796_v23 = vld [vmem:[#allocation15_spill] sm:$0xff] }
  0xde   :  { %v984_v39 = vadd.f32 %v983_v31, %v982_v15  ;;  %v990_v16 = vadd.f32 %v989_v61, %v988_v56  ;;  %v996_v7 = vadd.f32 %v995_v28, %v994_v29  ;;  %v955_v8 = vrot.slane %v954_v14, 1  ;;  %v4797_v61 = vld [vmem:[#allocation16_spill] sm:$0xff] }
  0xdf   :  { %v961_v41 = vrot.slane %v960_v44, 1  ;;  %v967_v9 = vrot.slane %v966_v54, 1  ;;  %v973_v20 = vrot.slane %v972_v55, 1  ;;  %v979_v35 = vrot.slane %v978_v30, 1 }
  0xe0   :  { %v985_v3 = vrot.slane %v984_v39, 1  ;;  %v991_v63 = vrot.slane %v990_v16, 1  ;;  %v997_v1 = vrot.slane %v996_v7, 1  ;;  %v3495_v19 = vadd.f32 %v955_v8, %v954_v14 }
  0xe1   :  { %v3497_v37 = vadd.f32 %v961_v41, %v960_v44  ;;  %v3499_v32 = vadd.f32 %v967_v9, %v966_v54  ;;  %v3501_v36 = vadd.f32 %v973_v20, %v972_v55  ;;  %v3503_v48 = vadd.f32 %v979_v35, %v978_v30 }
  0xe2   :  { %4788 = vst [vmem:[#allocation89_spill] sm:$0xff] %v3495_v19  ;;  %v3505_v57 = vadd.f32 %v985_v3, %v984_v39  ;;  %v3507_v49 = vadd.f32 %v991_v63, %v990_v16  ;;  %v3509_v15 = vadd.f32 %v997_v1, %v996_v7  ;;  %v999_v56 = vrot.slane %v3308_v24, 4 }
  0xe3   :  { %4789 = vst [vmem:[#allocation90_spill] sm:$0xff] %v3497_v37  ;;  %4790 = vst [vmem:[#allocation91_spill] sm:$0xff] %v3499_v32  ;;  %v1005_v29 = vrot.slane %v3313_v34, 4  ;;  %v1011_v4 = vrot.slane %v3318_v53, 4  ;;  %v1017_v21 = vrot.slane %v3323_v18, 4  ;;  %v1023_v43 = vrot.slane %v3330_v22, 4 }
  0xe4   :  { %4791 = vst [vmem:[#allocation92_spill] sm:$0xff] %v3501_v36  ;;  %4792 = vst [vmem:[#allocation93_spill] sm:$0xff] %v3503_v48  ;;  %v1029_v42 = vrot.slane %v3335_v50, 4  ;;  %v1035_v31 = vrot.slane %v4796_v23, 4  ;;  %v1041_v28 = vrot.slane %v4797_v61, 4  ;;  %v1000_v14 = vadd.f32 %v999_v56, %v3308_v24  ;;  %v4857_v37 = vld [vmem:[#allocation69_spill] sm:$0xff] }
  0xe5   :  { %4793 = vst [vmem:[#allocation94_spill] sm:$0xff] %v3505_v57  ;;  %4794 = vst [vmem:[#allocation95_spill] sm:$0xff] %v3507_v49  ;;  %v1006_v44 = vadd.f32 %v1005_v29, %v3313_v34  ;;  %v1012_v54 = vadd.f32 %v1011_v4, %v3318_v53  ;;  %v1018_v55 = vadd.f32 %v1017_v21, %v3323_v18 }
  0xe6   :  { %4795 = vst [vmem:[#allocation96_spill] sm:$0xff] %v3509_v15  ;;  %v1024_v30 = vadd.f32 %v1023_v43, %v3330_v22  ;;  %v1030_v39 = vadd.f32 %v1029_v42, %v3335_v50  ;;  %v1036_v16 = vadd.f32 %v1035_v31, %v4796_v23  ;;  %v1042_v7 = vadd.f32 %v1041_v28, %v4797_v61 }
  0xe7   :  { %v1001_v8 = vrot.slane %v1000_v14, 2  ;;  %v1007_v41 = vrot.slane %v1006_v44, 2  ;;  %v1013_v9 = vrot.slane %v1012_v54, 2  ;;  %v1019_v20 = vrot.slane %v1018_v55, 2 }
  0xe8   :  { %v1025_v35 = vrot.slane %v1024_v30, 2  ;;  %v1031_v24 = vrot.slane %v1030_v39, 2  ;;  %v1037_v3 = vrot.slane %v1036_v16, 2  ;;  %v1043_v34 = vrot.slane %v1042_v7, 2 }
  0xe9   :  { %v1002_v63 = vadd.f32 %v1001_v8, %v1000_v14  ;;  %v1008_v53 = vadd.f32 %v1007_v41, %v1006_v44  ;;  %v1014_v1 = vadd.f32 %v1013_v9, %v1012_v54  ;;  %v1020_v18 = vadd.f32 %v1019_v20, %v1018_v55  ;;  %v4807_v8 = vld [vmem:[#allocation18_spill] sm:$0xff]  ;;  %v4808_v9 = vld [vmem:[#allocation19_spill] sm:$0xff] }
  0xea   :  { %v1026_v56 = vadd.f32 %v1025_v35, %v1024_v30  ;;  %v1032_v22 = vadd.f32 %v1031_v24, %v1030_v39  ;;  %v1038_v29 = vadd.f32 %v1037_v3, %v1036_v16  ;;  %v1044_v50 = vadd.f32 %v1043_v34, %v1042_v7  ;;  %v4806_v16 = vld [vmem:[#allocation17_spill] sm:$0xff]  ;;  %v4809_v35 = vld [vmem:[#allocation20_spill] sm:$0xff] }
  0xeb   :  { %v1003_v4 = vrot.slane %v1002_v63, 1  ;;  %v1009_v21 = vrot.slane %v1008_v53, 1  ;;  %v1015_v43 = vrot.slane %v1014_v1, 1  ;;  %v1021_v42 = vrot.slane %v1020_v18, 1  ;;  %v4810_v3 = vld [vmem:[#allocation21_spill] sm:$0xff] }
  0xec   :  { %v1027_v23 = vrot.slane %v1026_v56, 1  ;;  %v1033_v31 = vrot.slane %v1032_v22, 1  ;;  %v1039_v61 = vrot.slane %v1038_v29, 1  ;;  %v1045_v28 = vrot.slane %v1044_v50, 1 }
  0xed   :  { %v3527_v15 = vadd.f32 %v1003_v4, %v1002_v63  ;;  %v3529_v49 = vadd.f32 %v1009_v21, %v1008_v53  ;;  %v3531_v14 = vadd.f32 %v1015_v43, %v1014_v1  ;;  %v3533_v44 = vadd.f32 %v1021_v42, %v1020_v18  ;;  %v4811_v63 = vld [vmem:[#allocation22_spill] sm:$0xff]  ;;  %v4812_v1 = vld [vmem:[#allocation23_spill] sm:$0xff] }
  0xee   :  { %v3535_v54 = vadd.f32 %v1027_v23, %v1026_v56  ;;  %v3537_v55 = vadd.f32 %v1033_v31, %v1032_v22  ;;  %v3539_v30 = vadd.f32 %v1039_v61, %v1038_v29  ;;  %v3541_v39 = vadd.f32 %v1045_v28, %v1044_v50  ;;  %v4813_v56 = vld [vmem:[#allocation24_spill] sm:$0xff] }
  0xef   :  { %4798 = vst [vmem:[#allocation15_spill] sm:$0xff] %v3527_v15  ;;  %4799 = vst [vmem:[#allocation16_spill] sm:$0xff] %v3529_v49  ;;  %v1047_v7 = vrot.slane %v4806_v16, 4  ;;  %v1053_v41 = vrot.slane %v4807_v8, 4  ;;  %v1059_v20 = vrot.slane %v4808_v9, 4  ;;  %v1065_v24 = vrot.slane %v4809_v35, 4 }
  0xf0   :  { %4800 = vst [vmem:[#allocation97_spill] sm:$0xff] %v3531_v14  ;;  %4801 = vst [vmem:[#allocation98_spill] sm:$0xff] %v3533_v44  ;;  %v1071_v34 = vrot.slane %v4810_v3, 4  ;;  %v1077_v53 = vrot.slane %v4811_v63, 4  ;;  %v1083_v18 = vrot.slane %v4812_v1, 4  ;;  %v1089_v22 = vrot.slane %v4813_v56, 4 }
  0xf1   :  { %4802 = vst [vmem:[#allocation99_spill] sm:$0xff] %v3535_v54  ;;  %4803 = vst [vmem:[#allocation100_spill] sm:$0xff] %v3537_v55  ;;  %v1048_v29 = vadd.f32 %v1047_v7, %v4806_v16  ;;  %v1054_v50 = vadd.f32 %v1053_v41, %v4807_v8  ;;  %v1060_v4 = vadd.f32 %v1059_v20, %v4808_v9 }
  0xf2   :  { %4804 = vst [vmem:[#allocation101_spill] sm:$0xff] %v3539_v30  ;;  %4805 = vst [vmem:[#allocation102_spill] sm:$0xff] %v3541_v39  ;;  %v1066_v21 = vadd.f32 %v1065_v24, %v4809_v35  ;;  %v1072_v43 = vadd.f32 %v1071_v34, %v4810_v3  ;;  %v1078_v42 = vadd.f32 %v1077_v53, %v4811_v63 }
  0xf3   :  { %v1084_v23 = vadd.f32 %v1083_v18, %v4812_v1  ;;  %v1090_v31 = vadd.f32 %v1089_v22, %v4813_v56  ;;  %v1049_v61 = vrot.slane %v1048_v29, 2  ;;  %v1055_v28 = vrot.slane %v1054_v50, 2 }
  0xf4   :  { %v1061_v39 = vrot.slane %v1060_v4, 2  ;;  %v1067_v30 = vrot.slane %v1066_v21, 2  ;;  %v1073_v55 = vrot.slane %v1072_v43, 2  ;;  %v1079_v16 = vrot.slane %v1078_v42, 2 }
  0xf5   :  { %v1085_v7 = vrot.slane %v1084_v23, 2  ;;  %v1091_v8 = vrot.slane %v1090_v31, 2  ;;  %v1050_v41 = vadd.f32 %v1049_v61, %v1048_v29  ;;  %v1056_v9 = vadd.f32 %v1055_v28, %v1054_v50  ;;  %v4826_v28 = vld [vmem:[#allocation40_spill] sm:$0xff] }
  0xf6   :  { %v1062_v20 = vadd.f32 %v1061_v39, %v1060_v4  ;;  %v1068_v35 = vadd.f32 %v1067_v30, %v1066_v21  ;;  %v1074_v24 = vadd.f32 %v1073_v55, %v1072_v43  ;;  %v1080_v3 = vadd.f32 %v1079_v16, %v1078_v42  ;;  %v4822_v21 = vld [vmem:[#allocation38_spill] sm:$0xff] }
  0xf7   :  { %v1086_v34 = vadd.f32 %v1085_v7, %v1084_v23  ;;  %v1092_v63 = vadd.f32 %v1091_v8, %v1090_v31  ;;  %v1051_v53 = vrot.slane %v1050_v41, 1  ;;  %v1057_v1 = vrot.slane %v1056_v9, 1  ;;  %v4823_v43 = vld [vmem:[#allocation70_spill] sm:$0xff]  ;;  %v4824_v23 = vld [vmem:[#allocation39_spill] sm:$0xff]  ;;  %v4825_v31 = vld [vmem:[#allocation72_spill] sm:$0xff] }
  0xf8   :  { %v1063_v18 = vrot.slane %v1062_v20, 1  ;;  %v1069_v56 = vrot.slane %v1068_v35, 1  ;;  %v1075_v22 = vrot.slane %v1074_v24, 1  ;;  %v1081_v54 = vrot.slane %v1080_v3, 1  ;;  %v4827_v7 = vld [vmem:[#allocation41_spill] sm:$0xff] }
  0xf9   :  { %v1087_v44 = vrot.slane %v1086_v34, 1  ;;  %v1093_v14 = vrot.slane %v1092_v63, 1  ;;  %v3559_v49 = vadd.f32 %v1051_v53, %v1050_v41  ;;  %v3561_v15 = vadd.f32 %v1057_v1, %v1056_v9  ;;  %v4828_v41 = vld [vmem:[#allocation31_spill] sm:$0xff]  ;;  %v4829_v9 = vld [vmem:[#allocation32_spill] sm:$0xff] }
  0xfa   :  { %v3563_v29 = vadd.f32 %v1063_v18, %v1062_v20  ;;  %v3565_v39 = vadd.f32 %v1069_v56, %v1068_v35  ;;  %v3567_v55 = vadd.f32 %v1075_v22, %v1074_v24  ;;  %v3569_v30 = vadd.f32 %v1081_v54, %v1080_v3  ;;  %v4831_v35 = vld [vmem:[#allocation35_spill] sm:$0xff] }
  0xfb   :  { %4814 = vst [vmem:[#allocation17_spill] sm:$0xff] %v3559_v49  ;;  %4815 = vst [vmem:[#allocation18_spill] sm:$0xff] %v3561_v15  ;;  %v3571_v50 = vadd.f32 %v1087_v44, %v1086_v34  ;;  %v3573_v4 = vadd.f32 %v1093_v14, %v1092_v63  ;;  %v1095_v42 = vmul.f32 %v4823_v43, %v4822_v21  ;;  %v4830_v14 = vld [vmem:[#allocation33_spill] sm:$0xff] }
  0xfc   :  { %4816 = vst [vmem:[#allocation19_spill] sm:$0xff] %v3563_v29  ;;  %4817 = vst [vmem:[#allocation20_spill] sm:$0xff] %v3565_v39  ;;  %v1096_v61 = vmul.f32 %v4825_v31, %v4824_v23  ;;  %v1097_v16 = vmul.f32 %v4823_v43, %v4826_v28  ;;  %v1098_v8 = vmul.f32 %v4825_v31, %v4827_v7 }
  0xfd   :  { %4818 = vst [vmem:[#allocation21_spill] sm:$0xff] %v3567_v55  ;;  %4819 = vst [vmem:[#allocation22_spill] sm:$0xff] %v3569_v30  ;;  %v1099_v54 = vmul.f32 %v4823_v43, %v4828_v41  ;;  %v1100_v44 = vmul.f32 %v4825_v31, %v4829_v9  ;;  %v1101_v20 = vmul.f32 %v4823_v43, %v4830_v14  ;;  %v1103_v3 = vrot.slane %v1095_v42, 4 }
  0xfe   :  { %4820 = vst [vmem:[#allocation23_spill] sm:$0xff] %v3571_v50  ;;  %4821 = vst [vmem:[#allocation24_spill] sm:$0xff] %v3573_v4  ;;  %v1102_v24 = vmul.f32 %v4825_v31, %v4831_v35  ;;  %v1109_v34 = vrot.slane %v1096_v61, 4  ;;  %v1115_v63 = vrot.slane %v1097_v16, 4  ;;  %v1121_v53 = vrot.slane %v1098_v8, 4 }
  0xff   :  { %v1127_v1 = vrot.slane %v1099_v54, 4  ;;  %v1133_v18 = vrot.slane %v1100_v44, 4  ;;  %v1139_v56 = vrot.slane %v1101_v20, 4  ;;  %v1104_v21 = vadd.f32 %v1103_v3, %v1095_v42 }
 0x100   :  { %v1145_v22 = vrot.slane %v1102_v24, 4  ;;  %v1110_v23 = vadd.f32 %v1109_v34, %v1096_v61  ;;  %v1116_v28 = vadd.f32 %v1115_v63, %v1097_v16  ;;  %v1122_v7 = vadd.f32 %v1121_v53, %v1098_v8 }
 0x101   :  { %v1128_v41 = vadd.f32 %v1127_v1, %v1099_v54  ;;  %v1134_v9 = vadd.f32 %v1133_v18, %v1100_v44  ;;  %v1140_v4 = vadd.f32 %v1139_v56, %v1101_v20  ;;  %v1105_v14 = vrot.slane %v1104_v21, 2 }
 0x102   :  { %v1146_v50 = vadd.f32 %v1145_v22, %v1102_v24  ;;  %v1111_v30 = vrot.slane %v1110_v23, 2  ;;  %v1117_v55 = vrot.slane %v1116_v28, 2  ;;  %v1123_v35 = vrot.slane %v1122_v7, 2  ;;  %v4841_v22 = vld [vmem:[#allocation8_spill] sm:$0xff] }
 0x103   :  { %v1129_v39 = vrot.slane %v1128_v41, 2  ;;  %v1135_v29 = vrot.slane %v1134_v9, 2  ;;  %v1141_v15 = vrot.slane %v1140_v4, 2  ;;  %v1106_v57 = vadd.f32 %v1105_v14, %v1104_v21 }
 0x104   :  { %v1147_v49 = vrot.slane %v1146_v50, 2  ;;  %v1112_v48 = vadd.f32 %v1111_v30, %v1110_v23  ;;  %v1118_v36 = vadd.f32 %v1117_v55, %v1116_v28  ;;  %v1124_v32 = vadd.f32 %v1123_v35, %v1122_v7  ;;  %v4842_v23 = vld [vmem:[#allocation59_spill] sm:$0xff]  ;;  %v4843_v28 = vld [vmem:[#allocation9_spill] sm:$0xff] }
 0x105   :  { %v1130_v42 = vadd.f32 %v1129_v39, %v1128_v41  ;;  %v1136_v61 = vadd.f32 %v1135_v29, %v1134_v9  ;;  %v1142_v16 = vadd.f32 %v1141_v15, %v1140_v4  ;;  %v1107_v54 = vrot.slane %v1106_v57, 1  ;;  %v4840_v4 = vld [vmem:[#allocation58_spill] sm:$0xff]  ;;  %v4844_v41 = vld [vmem:[#allocation60_spill] sm:$0xff]  ;;  %v4846_v35 = vld [vmem:[#allocation61_spill] sm:$0xff] }
 0x106   :  { %v1148_v8 = vadd.f32 %v1147_v49, %v1146_v50  ;;  %v1113_v44 = vrot.slane %v1112_v48, 1  ;;  %v1119_v20 = vrot.slane %v1118_v36, 1  ;;  %v1125_v24 = vrot.slane %v1124_v32, 1  ;;  %v4845_v9 = vld [vmem:[#allocation10_spill] sm:$0xff] }
 0x107   :  { %v1131_v3 = vrot.slane %v1130_v42, 1  ;;  %v1137_v34 = vrot.slane %v1136_v61, 1  ;;  %v1143_v63 = vrot.slane %v1142_v16, 1  ;;  %v3591_v1 = vadd.f32 %v1107_v54, %v1106_v57 }
 0x108   :  { %v1149_v53 = vrot.slane %v1148_v8, 1  ;;  %v3593_v18 = vadd.f32 %v1113_v44, %v1112_v48  ;;  %v3595_v56 = vadd.f32 %v1119_v20, %v1118_v36  ;;  %v3597_v55 = vadd.f32 %v1125_v24, %v1124_v32  ;;  %v3614_v36 = vld [vmem:[%s4314_s3] sm:$0xff]  ;;  %v3621_v48 = vld [vmem:[%s4314_s3 + $0x8] sm:$0xff]  ;;  %v4850_v24 = vld [vmem:[#allocation65_spill] sm:$0xff]  ;;  %s2331_s3 = smov [#allocation2]  }
 0x109   :  { %4832 = vst [vmem:[#allocation38_spill] sm:$0xff] %v3591_v1  ;;  %v3599_v39 = vadd.f32 %v1131_v3, %v1130_v42  ;;  %v3601_v15 = vadd.f32 %v1137_v34, %v1136_v61  ;;  %v3603_v49 = vadd.f32 %v1143_v63, %v1142_v16  ;;  %v1157_v32 = vmul.f32 %v3614_v36, %v4823_v43  ;;  %v4847_v42 = vld [vmem:[#allocation11_spill] sm:$0xff]  ;;  %v4848_v44 = vld [vmem:[#allocation62_spill] sm:$0xff]  ;;  %v4851_v3 = vld [vmem:[#allocation13_spill] sm:$0xff]  ;;  %s2155_s11 = sshll.u32 %s2331_s3, 4  ;;  %s2156_s11 = int_to_ptr.vmem [resolvable:$true] %s2155_s11 }
 0x10a   :  { %4833 = vst [vmem:[#allocation70_spill] sm:$0xff] %v3593_v18  ;;  %4834 = vst [vmem:[#allocation39_spill] sm:$0xff] %v3595_v56  ;;  %v3605_v29 = vadd.f32 %v1149_v53, %v1148_v8  ;;  %v1151_v30 = vadd.f32 %v3595_v56, %v3591_v1  ;;  %v1154_v57 = vadd.f32 %v3597_v55, %v3593_v18  ;;  %v4852_v63 = vld [vmem:[#allocation67_spill] sm:$0xff]  ;;  %v4853_v53 = vld [vmem:[#allocation14_spill] sm:$0xff]  ;;  %s2286_s12 = scalar_lea.vmem %s2156_s11, 256  ;;  %p2291_p1 = scmp.lt.s32.totalorder %s2156_s11, %s2156_s11 }
 0x10b   :  { %4835 = vst [vmem:[#allocation72_spill] sm:$0xff] %v3597_v55  ;;  %4836 = vst [vmem:[#allocation40_spill] sm:$0xff] %v3599_v39  ;;  %v1158_v50 = vmul.f32 %v3621_v48, %v4825_v31  ;;  %v1364_v21 = vmul.f32 %v4841_v22, %v4840_v4  ;;  %v1365_v7 = vmul.f32 %v4843_v28, %v4842_v23  ;;  %v1159_v8 = vrot.slane %v1157_v32, 4  ;;  %v4849_v31 = vld [vmem:[#allocation12_spill] sm:$0xff]  ;;  %v4854_v23 = vld [vmem:[#allocation74_spill] sm:$0xff]  ;;  %p2287_p0 = scmp.ne.s32.totalorder %s2156_s11, %s2286_s12  ;;  %p2292_p2 = scmp.lt.s32.totalorder %s2286_s12, %s2286_s12 }
 0x10c   :  { %4837 = vst [vmem:[#allocation41_spill] sm:$0xff] %v3601_v15  ;;  %4838 = vst [vmem:[#allocation31_spill] sm:$0xff] %v3603_v49  ;;  %v1366_v14 = vmul.f32 %v4845_v9, %v4844_v41  ;;  %v1367_v43 = vmul.f32 %v4847_v42, %v4846_v35  ;;  %v1152_v61 = vadd.f32 %v1151_v30, %v3599_v39  ;;  %v1371_v41 = vsub.f32 2.0, %v4854_v23 }
 0x10d   :  { %4839 = vst [vmem:[#allocation32_spill] sm:$0xff] %v3605_v29  ;;  %v1155_v16 = vadd.f32 %v1154_v57, %v3601_v15  ;;  %v1165_v54 = vrot.slane %v1158_v50, 4  ;;  %v1368_v20 = vmul.f32 %v4849_v31, %v4848_v44  ;;  %v1369_v34 = vmul.f32 %v4851_v3, %v4850_v24  ;;  %p2293_p3 = por %p2292_p2, %p2291_p1 }
 0x10e   :  { %v1370_v4 = vmul.f32 %v4853_v53, %v4852_v63  ;;  %v3643_v55 = vadd.f32 %v1152_v61, %v3603_v49  ;;  %v1160_v57 = vadd.f32 %v1159_v8, %v1157_v32  ;;  %v1372_v15 = vsub.f32 2.0, %v1364_v21 }
 0x10f   :  { %v3646_v30 = vadd.f32 %v1155_v16, %v3605_v29  ;;  %v1166_v35 = vadd.f32 %v1165_v54, %v1158_v50  ;;  %v1373_v39 = vsub.f32 2.0, %v1365_v7  ;;  %v1374_v56 = vsub.f32 2.0, %v1366_v14  ;;  %p2294_p4 = pnand %p2293_p3, %p2287_p0 }
 0x110   :  { %4855 = vst [vmem:[#allocation33_spill] sm:$0xff] %v3643_v55  ;;  %v1375_v44 = vsub.f32 2.0, %v1367_v43  ;;  %v1161_v24 = vrot.slane %v1160_v57, 2  ;;  %v1376_v1 = vsub.f32 2.0, %v1368_v20  ;;  %v1377_v63 = vsub.f32 2.0, %v1369_v34 }
 0x111   :  { %4856 = vst [vmem:[#allocation35_spill] sm:$0xff] %v3646_v30  ;;  %v1167_v18 = vrot.slane %v1166_v35, 2  ;;  %v1378_v23 = vsub.f32 2.0, %v1370_v4  ;;  %v1379_v61 = vmul.f32 %v4857_v37, %v1371_v41  ;;  %v1380_v49 = vmul.f32 %v4841_v22, %v1372_v15 }
 0x112   :  { %v1381_v16 = vmul.f32 %v4843_v28, %v1373_v39 }
 0x113   :  { %2297 = shalt.err (!%p2294_p4)
}
 0x114   :  { %2158 = dma.vmem_to_hbm [thread:$0]  %s2156_s11, 256, %s4315_s4, [#allocation3]   ;;  %v1162_v32 = vadd.f32 %v1161_v24, %v1160_v57  ;;  %v1168_v50 = vadd.f32 %v1167_v18, %v1166_v35  ;;  %v1382_v21 = vmul.f32 %v4845_v9, %v1374_v56  ;;  %v1383_v37 = vmul.f32 %v4847_v42, %v1375_v44  ;;  %v4858_v28 = vld [vmem:[#allocation50_spill] sm:$0xff]  ;;  %v4859_v8 = vld [vmem:[#allocation51_spill] sm:$0xff]  ;;  %v4860_v20 = vld [vmem:[#allocation52_spill] sm:$0xff] }
 0x115   :  { %v1384_v15 = vmul.f32 %v4849_v31, %v1376_v1  ;;  %v1385_v39 = vmul.f32 %v4851_v3, %v1377_v63  ;;  %v1386_v22 = vmul.f32 %v4853_v53, %v1378_v23  ;;  %v3660_v7 = vmul.f32 %v4858_v28, %v1379_v61  ;;  %v4861_v56 = vld [vmem:[#allocation53_spill] sm:$0xff]  ;;  %v4862_v42 = vld [vmem:[#allocation54_spill] sm:$0xff]  ;;  %v4863_v31 = vld [vmem:[#allocation55_spill] sm:$0xff] }
 0x116   :  { %v1163_v14 = vrot.slane %v1162_v32, 1  ;;  %v1169_v43 = vrot.slane %v1168_v50, 1  ;;  %v3663_v54 = vmul.f32 %v4859_v8, %v1380_v49  ;;  %v3666_v18 = vmul.f32 %v4860_v20, %v1381_v16  ;;  %v4864_v34 = vld [vmem:[#allocation56_spill] sm:$0xff]  ;;  %v4867_v49 = vld [vmem:[#allocation57_spill] sm:$0xff]  ;;  %v4868_v35 = vld [vmem:[#allocation42_spill] sm:$0xff] }
 0x117   :  { %v3669_v9 = vmul.f32 %v4861_v56, %v1382_v21  ;;  %v3672_v1 = vmul.f32 %v4862_v42, %v1383_v37  ;;  %v3675_v3 = vmul.f32 %v4863_v31, %v1384_v15  ;;  %v3678_v53 = vmul.f32 %v4864_v34, %v1385_v39  ;;  %v4869_v24 = vld [vmem:[#allocation43_spill] sm:$0xff]  ;;  %v4870_v23 = vld [vmem:[#allocation44_spill] sm:$0xff]  ;;  %v4871_v16 = vld [vmem:[#allocation45_spill] sm:$0xff] }
 0x118   :  { %v3680_v4 = vadd.f32 %v1163_v14, %v1162_v32  ;;  %v3682_v41 = vadd.f32 %v1169_v43, %v1168_v50  ;;  %v3685_v57 = vmul.f32 %v4867_v49, %v1386_v22  ;;  %v1395_v44 = vmul.f32 %v3660_v7, %v4868_v35  ;;  %v4872_v37 = vld [vmem:[#allocation46_spill] sm:$0xff]  ;;  %v4873_v50 = vld [vmem:[#allocation47_spill] sm:$0xff]  ;;  %v4874_v39 = vld [vmem:[#allocation48_spill] sm:$0xff] }
 0x119   :  { %v1396_v63 = vmul.f32 %v3663_v54, %v4869_v24  ;;  %v1397_v61 = vmul.f32 %v3666_v18, %v4870_v23  ;;  %v1398_v21 = vmul.f32 %v3669_v9, %v4871_v16  ;;  %v1399_v32 = vmul.f32 %v3672_v1, %v4872_v37  ;;  %v4875_v28 = vld [vmem:[#allocation49_spill] sm:$0xff] }
 0x11a   :  { %4865 = vst [vmem:[#allocation58_spill] sm:$0xff] %v3680_v4  ;;  %4866 = vst [vmem:[#allocation8_spill] sm:$0xff] %v3682_v41  ;;  %v1400_v15 = vmul.f32 %v3675_v3, %v4873_v50  ;;  %v1401_v22 = vmul.f32 %v3678_v53, %v4874_v39  ;;  %v1402_v14 = vmul.f32 %v3685_v57, %v4875_v28  ;;  %v1403_v43 = vrot.slane %v1395_v44, 4 }
 0x11b   :  { %v1409_v8 = vrot.slane %v1396_v63, 4  ;;  %v1415_v20 = vrot.slane %v1397_v61, 4  ;;  %v1421_v56 = vrot.slane %v1398_v21, 4  ;;  %v1427_v42 = vrot.slane %v1399_v32, 4 }
 0x11c   :  { %v1404_v31 = vadd.f32 %v1403_v43, %v1395_v44  ;;  %v1433_v34 = vrot.slane %v1400_v15, 4  ;;  %v1439_v49 = vrot.slane %v1401_v22, 4  ;;  %v1445_v35 = vrot.slane %v1402_v14, 4 }
 0x11d   :  { %v1410_v24 = vadd.f32 %v1409_v8, %v1396_v63  ;;  %v1416_v23 = vadd.f32 %v1415_v20, %v1397_v61  ;;  %v1422_v16 = vadd.f32 %v1421_v56, %v1398_v21  ;;  %v1428_v37 = vadd.f32 %v1427_v42, %v1399_v32 }
 0x11e   :  { %v1405_v50 = vrot.slane %v1404_v31, 2  ;;  %v1434_v29 = vadd.f32 %v1433_v34, %v1400_v15  ;;  %v1440_v41 = vadd.f32 %v1439_v49, %v1401_v22  ;;  %v1446_v39 = vadd.f32 %v1445_v35, %v1402_v14 }
 0x11f   :  { %v1411_v30 = vrot.slane %v1410_v24, 2  ;;  %v1417_v4 = vrot.slane %v1416_v23, 2  ;;  %v1423_v28 = vrot.slane %v1422_v16, 2  ;;  %v1429_v55 = vrot.slane %v1428_v37, 2 }
 0x120   :  { %v1406_v19 = vadd.f32 %v1405_v50, %v1404_v31  ;;  %v1435_v40 = vrot.slane %v1434_v29, 2  ;;  %v1441_v52 = vrot.slane %v1440_v41, 2  ;;  %v1447_v10 = vrot.slane %v1446_v39, 2 }
 0x121   :  { %v1412_v44 = vadd.f32 %v1411_v30, %v1410_v24  ;;  %v1418_v43 = vadd.f32 %v1417_v4, %v1416_v23  ;;  %v1424_v60 = vadd.f32 %v1423_v28, %v1422_v16  ;;  %v1430_v26 = vadd.f32 %v1429_v55, %v1428_v37 }
 0x122   :  { %v1407_v63 = vrot.slane %v1406_v19, 1  ;;  %v1436_v61 = vadd.f32 %v1435_v40, %v1434_v29  ;;  %v1442_v21 = vadd.f32 %v1441_v52, %v1440_v41  ;;  %v1448_v32 = vadd.f32 %v1447_v10, %v1446_v39 }
 0x123   :  { %v1413_v8 = vrot.slane %v1412_v44, 1  ;;  %v1419_v15 = vrot.slane %v1418_v43, 1  ;;  %v1425_v22 = vrot.slane %v1424_v60, 1  ;;  %v1431_v14 = vrot.slane %v1430_v26, 1 }
 0x124   :  { %v3703_v20 = vadd.f32 %v1407_v63, %v1406_v19  ;;  %v1437_v56 = vrot.slane %v1436_v61, 1  ;;  %v1443_v42 = vrot.slane %v1442_v21, 1  ;;  %v1449_v31 = vrot.slane %v1448_v32, 1 }
 0x125   :  { %v3705_v34 = vadd.f32 %v1413_v8, %v1412_v44  ;;  %v3707_v49 = vadd.f32 %v1419_v15, %v1418_v43  ;;  %v3709_v30 = vadd.f32 %v1425_v22, %v1424_v60  ;;  %v3711_v55 = vadd.f32 %v1431_v14, %v1430_v26 }
 0x126   :  { %4876 = vst [vmem:[#allocation59_spill] sm:$0xff] %v3703_v20  ;;  %v3713_v40 = vadd.f32 %v1437_v56, %v1436_v61  ;;  %v3715_v10 = vadd.f32 %v1443_v42, %v1442_v21  ;;  %v3717_v52 = vadd.f32 %v1449_v31, %v1448_v32  ;;  %v1451_v19 = vmul.f32 %v3614_v36, %v3660_v7 }
 0x127   :  { %4877 = vst [vmem:[#allocation9_spill] sm:$0xff] %v3705_v34  ;;  %4878 = vst [vmem:[#allocation60_spill] sm:$0xff] %v3707_v49  ;;  %v1452_v29 = vmul.f32 %v3621_v48, %v3663_v54  ;;  %v1453_v4 = vmul.f32 %v3614_v36, %v3666_v18  ;;  %v1454_v60 = vmul.f32 %v3621_v48, %v3669_v9  ;;  %vm1700_vm0 = vcmask 1041409  }
 0x128   :  { %4879 = vst [vmem:[#allocation10_spill] sm:$0xff] %v3709_v30  ;;  %4880 = vst [vmem:[#allocation61_spill] sm:$0xff] %v3711_v55  ;;  %v1455_v26 = vmul.f32 %v3614_v36, %v3672_v1  ;;  %v1456_v41 = vmul.f32 %v3621_v48, %v3675_v3  ;;  %v1457_v35 = vmul.f32 %v3614_v36, %v3678_v53  ;;  %v1459_v24 = vrot.slane %v1451_v19, 4  ;;  %v4896_v30 = vld [vmem:[#allocation64_spill] sm:$0xff] }
 0x129   :  { %4881 = vst [vmem:[#allocation11_spill] sm:$0xff] %v3713_v40  ;;  %4882 = vst [vmem:[#allocation62_spill] sm:$0xff] %v3715_v10  ;;  %v1458_v7 = vmul.f32 %v3621_v48, %v3685_v57  ;;  %v1465_v54 = vrot.slane %v1452_v29, 4  ;;  %v1471_v23 = vrot.slane %v1453_v4, 4  ;;  %v1477_v16 = vrot.slane %v1454_v60, 4  ;;  %v4894_v10 = vld [vmem:[#allocation63_spill] sm:$0xff] }
 0x12a   :  { %4883 = vst [vmem:[#allocation12_spill] sm:$0xff] %v3717_v52  ;;  %v1483_v18 = vrot.slane %v1455_v26, 4  ;;  %v1460_v37 = vadd.f32 %v1459_v24, %v1451_v19  ;;  %v1489_v50 = vrot.slane %v1456_v41, 4  ;;  %v1495_v9 = vrot.slane %v1457_v35, 4 }
 0x12b   :  { %v1501_v39 = vrot.slane %v1458_v7, 4  ;;  %v1466_v28 = vadd.f32 %v1465_v54, %v1452_v29  ;;  %v1472_v1 = vadd.f32 %v1471_v23, %v1453_v4  ;;  %v1478_v44 = vadd.f32 %v1477_v16, %v1454_v60 }
 0x12c   :  { %v1484_v43 = vadd.f32 %v1483_v18, %v1455_v26  ;;  %v1461_v3 = vrot.slane %v1460_v37, 2  ;;  %v1490_v63 = vadd.f32 %v1489_v50, %v1456_v41  ;;  %v1496_v61 = vadd.f32 %v1495_v9, %v1457_v35  ;;  %v3740_v18 = vld [vmem:[%s4311_s0 + $0x60] sm:$0x3f] }
 0x12d   :  { %v1502_v36 = vadd.f32 %v1501_v39, %v1458_v7  ;;  %v1467_v53 = vrot.slane %v1466_v28, 2  ;;  %v1473_v21 = vrot.slane %v1472_v1, 2  ;;  %v1479_v48 = vrot.slane %v1478_v44, 2 }
 0x12e   :  { %v1485_v57 = vrot.slane %v1484_v43, 2  ;;  %v1462_v32 = vadd.f32 %v1461_v3, %v1460_v37  ;;  %v1491_v8 = vrot.slane %v1490_v63, 2  ;;  %v1497_v15 = vrot.slane %v1496_v61, 2  ;;  %v2278_v3 = vld [vmem:[%s4311_s0 + $0x50] sm:$0x3f] }
 0x12f   :  { %v1503_v22 = vrot.slane %v1502_v36, 2  ;;  %v1468_v14 = vadd.f32 %v1467_v53, %v1466_v28  ;;  %v1474_v56 = vadd.f32 %v1473_v21, %v1472_v1  ;;  %v1480_v42 = vadd.f32 %v1479_v48, %v1478_v44  ;;  %v3753_v28 = vld [vmem:[%s4311_s0 + $0x68] sm:$0x3f] }
 0x130   :  { %v1486_v31 = vadd.f32 %v1485_v57, %v1484_v43  ;;  %v1463_v19 = vrot.slane %v1462_v32, 1  ;;  %v1492_v29 = vadd.f32 %v1491_v8, %v1490_v63  ;;  %v1498_v4 = vadd.f32 %v1497_v15, %v1496_v61  ;;  %v3767_v61 = vld [vmem:[%s4311_s0 + $0x70] sm:$0x3f] }
 0x131   :  { %v1504_v60 = vadd.f32 %v1503_v22, %v1502_v36  ;;  %v1469_v26 = vrot.slane %v1468_v14, 1  ;;  %v1475_v41 = vrot.slane %v1474_v56, 1  ;;  %v1481_v35 = vrot.slane %v1480_v42, 1  ;;  %v2279_v36 = vld [vmem:[%s4311_s0 + $0x58] sm:$0x3f] }
 0x132   :  { %v1487_v7 = vrot.slane %v1486_v31, 1  ;;  %v3735_v24 = vadd.f32 %v1463_v19, %v1462_v32  ;;  %v1493_v54 = vrot.slane %v1492_v29, 1  ;;  %v1499_v23 = vrot.slane %v1498_v4, 1  ;;  %v3775_v32 = vld [vmem:[%s4311_s0 + $0x78] sm:$0x3f] }
 0x133   :  { %v1505_v16 = vrot.slane %v1504_v60, 1  ;;  %v3742_v37 = vadd.f32 %v1469_v26, %v1468_v14  ;;  %v3744_v50 = vadd.f32 %v1475_v41, %v1474_v56  ;;  %v3746_v9 = vadd.f32 %v1481_v35, %v1480_v42  ;;  %4892 = vst [vmem:[#allocation52_spill] sm:$0xff] %v3775_v32 }
 0x134   :  { %4884 = vst [vmem:[#allocation65_spill] sm:$0xff] %v3735_v24  ;;  %v3748_v39 = vadd.f32 %v1487_v7, %v1486_v31  ;;  %v3755_v1 = vadd.f32 %v1493_v54, %v1492_v29  ;;  %v3757_v44 = vadd.f32 %v1499_v23, %v1498_v4  ;;  %v1527_v63 = vrot.slane %v2278_v3, 2  ;;  %v2281_v24 = vld [vmem:[%s4311_s0 + $0x48] sm:$0x3f] }
 0x135   :  { %4885 = vst [vmem:[#allocation13_spill] sm:$0xff] %v3742_v37  ;;  %4886 = vst [vmem:[#allocation67_spill] sm:$0xff] %v3744_v50  ;;  %v3759_v43 = vadd.f32 %v1505_v16, %v1504_v60  ;;  %v1528_v53 = vrot.slane %v2279_v36, 2  ;;  %v1529_v21 = vrot.slane %v2278_v3, 3  ;;  %v1530_v48 = vrot.slane %v2279_v36, 3 }
 0x136   :  { %4887 = vst [vmem:[#allocation14_spill] sm:$0xff] %v3746_v9  ;;  %4888 = vst [vmem:[#allocation74_spill] sm:$0xff] %v3748_v39  ;;  %v1531_v57 = vrot.slane %v2278_v3, 4  ;;  %v1532_v8 = vrot.slane %v2279_v36, 4  ;;  %v1533_v15 = vrot.slane %v2278_v3, 5  ;;  %v1534_v22 = vrot.slane %v2279_v36, 5 }
 0x137   :  { %4889 = vst [vmem:[#allocation69_spill] sm:$0xff] %v3755_v1  ;;  %4890 = vst [vmem:[#allocation50_spill] sm:$0xff] %v3757_v44  ;;  %v1535_v14 = vrot.slane %v3740_v18, 1  ;;  %v1536_v56 = vrot.slane %v3753_v28, 1  ;;  %v1537_v42 = vrot.slane %v3740_v18, 2  ;;  %v1538_v31 = vrot.slane %v3753_v28, 2 }
 0x138   :  { %4891 = vst [vmem:[#allocation51_spill] sm:$0xff] %v3759_v43  ;;  %v1539_v19 = vrot.slane %v3740_v18, 3  ;;  %v1540_v29 = vrot.slane %v3753_v28, 3  ;;  %v1541_v4 = vrot.slane %v3740_v18, 4  ;;  %v1542_v60 = vrot.slane %v3753_v28, 4 }
 0x139   :  { %v1543_v26 = vrot.slane %v3740_v18, 5  ;;  %v1544_v41 = vrot.slane %v3753_v28, 5  ;;  %v1545_v35 = vrot.slane %v3767_v61, 1  ;;  %v1546_v7 = vrot.slane %v3775_v32, 1  ;;  %v2280_v50 = vld [vmem:[%s4311_s0 + $0x40] sm:$0x3f] }
 0x13a   :  { %v1547_v54 = vrot.slane %v3767_v61, 2  ;;  %v1548_v23 = vrot.slane %v3775_v32, 2  ;;  %v1549_v16 = vrot.slane %v3767_v61, 3  ;;  %v1550_v43 = vrot.slane %v3775_v32, 3 }
 0x13b   :  { %v1551_v44 = vrot.slane %v3767_v61, 4  ;;  %v1552_v1 = vrot.slane %v3775_v32, 4  ;;  %v1553_v39 = vrot.slane %v3767_v61, 5  ;;  %v1554_v9 = vrot.slane %v3775_v32, 5 }
 0x13c   :  { %v1603_v37 = vmul.f32 %v2280_v50, %v3399_v0  ;;  %v3805_v52 = vmul.f32 %v2281_v24, %v3401_v5  ;;  %v4895_v40 = vrot.slane %v4894_v10, 1  ;;  %v4897_v34 = vrot.slane %v4896_v30, 1 }
 0x13d   :  { %v4898_v20 = vrot.slane %v4894_v10, 2  ;;  %v4899_v0 = vrot.slane %v4896_v30, 2  ;;  %v4900_v24 = vrot.slane %v4894_v10, 3  ;;  %vm1703_vm1 = vcmask 1042434  }
 0x13e   :  { %4893 = vst [vmem:[#allocation53_spill] sm:$0xff] %v3805_v52  ;;  %v1605_v55 = vmul.f32 %v4895_v40, %v3403_v6  ;;  %v3813_v49 = vmul.f32 %v4897_v34, %v3405_v2  ;;  %v4901_v40 = vrot.slane %v4896_v30, 3  ;;  %v4902_v34 = vrot.slane %v4894_v10, 4 }
 0x13f   :  { %v1607_v50 = vmul.f32 %v4898_v20, %v3407_v62  ;;  %v3821_v32 = vmul.f32 %v4899_v0, %v3409_v25  ;;  %v1609_v5 = vmul.f32 %v4900_v24, %v3411_v13  ;;  %v4903_v20 = vrot.slane %v4896_v30, 4 }
 0x140   :  { %v3829_v6 = vmul.f32 %v4901_v40, %v3413_v45  ;;  %v1611_v2 = vmul.f32 %v4902_v34, %v3431_v38  ;;  %v4904_v0 = vrot.slane %v4894_v10, 5  ;;  %v4905_v24 = vrot.slane %v4896_v30, 5  ;;  %v4906_v34 = vld [vmem:[#allocation66_spill] sm:$0xff] }
 0x141   :  { %v3837_v62 = vmul.f32 %v4903_v20, %v3433_v17  ;;  %v3848_v40 = vmul.f32 %v2278_v3, %v3439_v46  ;;  %v3851_v45 = vmul.f32 %v2279_v36, %v3441_v51  ;;  %v4907_v38 = vrot.slane %v4906_v34, 1  ;;  %v4908_v17 = vld [vmem:[#allocation68_spill] sm:$0xff] }
 0x142   :  { %v1613_v25 = vmul.f32 %v4904_v0, %v3435_v27  ;;  %v3845_v13 = vmul.f32 %v4905_v24, %v3437_v33  ;;  %v4909_v52 = vrot.slane %v4908_v17, 1  ;;  %v3862_v0 = vmul.f32 %v1527_v63, %v3463_v58  ;;  %v4910_v36 = vld [vmem:[#allocation84_spill] sm:$0xff]  ;;  %v4911_v33 = vld [vmem:[#allocation85_spill] sm:$0xff]  ;;  %v4913_v17 = vld [vmem:[#allocation87_spill] sm:$0xff] }
 0x143   :  { %v1617_v20 = vmul.f32 %v4907_v38, %v3443_v12  ;;  %v3865_v30 = vmul.f32 %v1528_v53, %v3465_v59  ;;  %v3868_v3 = vmul.f32 %v1529_v21, %v3467_v47  ;;  %v3871_v24 = vmul.f32 %v1530_v48, %v4910_v36  ;;  %v4912_v38 = vld [vmem:[#allocation86_spill] sm:$0xff]  ;;  %v4914_v63 = vld [vmem:[#allocation88_spill] sm:$0xff]  ;;  %v4915_v53 = vld [vmem:[#allocation89_spill] sm:$0xff] }
 0x144   :  { %v3859_v10 = vmul.f32 %v4909_v52, %v3445_v11  ;;  %v3874_v34 = vmul.f32 %v1531_v57, %v4911_v33  ;;  %v3877_v27 = vmul.f32 %v1532_v8, %v4912_v38  ;;  %v3880_v52 = vmul.f32 %v1533_v15, %v4913_v17  ;;  %v4916_v21 = vld [vmem:[#allocation90_spill] sm:$0xff]  ;;  %v4917_v36 = vld [vmem:[#allocation91_spill] sm:$0xff]  ;;  %v4918_v33 = vld [vmem:[#allocation92_spill] sm:$0xff] }
 0x145   :  { %v3883_v58 = vmul.f32 %v1534_v22, %v4914_v63  ;;  %v3887_v59 = vmul.f32 %v3740_v18, %v4915_v53  ;;  %v3891_v48 = vmul.f32 %v3753_v28, %v4916_v21  ;;  %v3894_v57 = vmul.f32 %v1535_v14, %v4917_v36  ;;  %v4919_v38 = vld [vmem:[#allocation93_spill] sm:$0xff]  ;;  %v4920_v17 = vld [vmem:[#allocation94_spill] sm:$0xff]  ;;  %v4921_v63 = vld [vmem:[#allocation95_spill] sm:$0xff] }
 0x146   :  { %v3897_v8 = vmul.f32 %v1536_v56, %v4918_v33  ;;  %v3900_v15 = vmul.f32 %v1537_v42, %v4919_v38  ;;  %v3903_v22 = vmul.f32 %v1538_v31, %v4920_v17  ;;  %v3906_v47 = vmul.f32 %v1539_v19, %v4921_v63  ;;  %v4922_v18 = vld [vmem:[#allocation96_spill] sm:$0xff]  ;;  %v4923_v28 = vld [vmem:[#allocation15_spill] sm:$0xff]  ;;  %v4925_v56 = vld [vmem:[#allocation97_spill] sm:$0xff] }
 0x147   :  { %v3909_v53 = vmul.f32 %v1540_v29, %v4922_v18  ;;  %v3912_v21 = vmul.f32 %v1541_v4, %v4923_v28  ;;  %v4924_v14 = vld [vmem:[#allocation16_spill] sm:$0xff]  ;;  %v3918_v33 = vmul.f32 %v1543_v26, %v4925_v56  ;;  %v4926_v42 = vld [vmem:[#allocation98_spill] sm:$0xff]  ;;  %v4927_v31 = vld [vmem:[#allocation99_spill] sm:$0xff]  ;;  %vm1706_vm2 = vcmask 1043459  }
 0x148   :  { %v3915_v36 = vmul.f32 %v1542_v60, %v4924_v14  ;;  %v3921_v38 = vmul.f32 %v1544_v41, %v4926_v42  ;;  %v3925_v17 = vmul.f32 %v3767_v61, %v4927_v31  ;;  %v4928_v19 = vld [vmem:[#allocation100_spill] sm:$0xff]  ;;  %v4930_v18 = vld [vmem:[#allocation101_spill] sm:$0xff]  ;;  %v4931_v28 = vld [vmem:[#allocation102_spill] sm:$0xff]  ;;  %vm1709_vm3 = vcmask 1044484  }
 0x149   :  { %v4929_v63 = vld [vmem:[#allocation52_spill] sm:$0xff]  ;;  %v3932_v4 = vmul.f32 %v1545_v35, %v4930_v18  ;;  %v3935_v60 = vmul.f32 %v1546_v7, %v4931_v28  ;;  %v4932_v14 = vld [vmem:[#allocation17_spill] sm:$0xff]  ;;  %v4933_v56 = vld [vmem:[#allocation18_spill] sm:$0xff]  ;;  %vm1712_vm4 = vcmask 1045509   ;;  %vm1792_vm5 = vcmask 1045504  }
 0x14a   :  { %v3929_v29 = vmul.f32 %v4929_v63, %v4928_v19  ;;  %v3938_v26 = vmul.f32 %v1547_v54, %v4932_v14  ;;  %v3941_v41 = vmul.f32 %v1548_v23, %v4933_v56  ;;  %v4934_v42 = vld [vmem:[#allocation19_spill] sm:$0xff]  ;;  %v4935_v61 = vld [vmem:[#allocation20_spill] sm:$0xff]  ;;  %v4936_v63 = vld [vmem:[#allocation21_spill] sm:$0xff]  ;;  %v1699_v23 = vrot.slane %v1605_v55, 7 }
 0x14b   :  { %v3944_v11 = vmul.f32 %v1549_v16, %v4934_v42  ;;  %v3947_v31 = vmul.f32 %v1550_v43, %v4935_v61  ;;  %v3950_v19 = vmul.f32 %v1551_v44, %v4936_v63  ;;  %v4937_v35 = vld [vmem:[#allocation22_spill] sm:$0xff]  ;;  %v4938_v7 = vld [vmem:[#allocation23_spill] sm:$0xff]  ;;  %v4939_v54 = vld [vmem:[#allocation24_spill] sm:$0xff]  ;;  %v1702_v56 = vrot.slane %v1607_v50, 6 }
 0x14c   :  { %v3953_v18 = vmul.f32 %v1552_v1, %v4937_v35  ;;  %v3956_v28 = vmul.f32 %v1553_v39, %v4938_v7  ;;  %v3959_v14 = vmul.f32 %v1554_v9, %v4939_v54  ;;  %v1705_v16 = vrot.slane %v1609_v5, 5 }
 0x14d   :  { %v1701_v43 = vsel %vm1700_vm0, %v1699_v23, %v1603_v37  ;;  %v1708_v61 = vrot.slane %v1611_v2, 4  ;;  %v1711_v1 = vrot.slane %v1613_v25, 3  ;;  %v1714_v39 = vrot.slane %v3813_v49, 7  ;;  %v4940_v37 = vld [vmem:[#allocation53_spill] sm:$0xff] }
 0x14e   :  { %v1704_v44 = vsel %vm1703_vm1, %v1702_v56, %v1701_v43  ;;  %v1716_v9 = vrot.slane %v3821_v32, 6  ;;  %v1718_v55 = vrot.slane %v3829_v6, 5  ;;  %v1720_v50 = vrot.slane %v3837_v62, 4 }
 0x14f   :  { %v1707_v7 = vsel %vm1706_vm2, %v1705_v16, %v1704_v44  ;;  %v1715_v2 = vsel %vm1700_vm0, %v1714_v39, %v4940_v37  ;;  %v1722_v23 = vrot.slane %v3845_v13, 3  ;;  %v1724_v56 = vrot.slane %v1617_v20, 7 }
 0x150   :  { %v1710_v5 = vsel %vm1709_vm3, %v1708_v61, %v1707_v7  ;;  %v1717_v49 = vsel %vm1703_vm1, %v1716_v9, %v1715_v2  ;;  %v1726_v16 = vrot.slane %v3862_v0, 6  ;;  %v1728_v32 = vrot.slane %v3868_v3, 5 }
 0x151   :  { %v3973_v25 = vsel %vm1712_vm4, %v1711_v1, %v1710_v5  ;;  %v1719_v6 = vsel %vm1706_vm2, %v1718_v55, %v1717_v49  ;;  %v1725_v62 = vsel %vm1700_vm0, %v1724_v56, %v3848_v40  ;;  %v1730_v61 = vrot.slane %v3874_v34, 4 }
 0x152   :  { %v1732_v7 = vrot.slane %v3880_v52, 3  ;;  %v1721_v13 = vsel %vm1709_vm3, %v1720_v50, %v1719_v6  ;;  %v1727_v20 = vsel %vm1703_vm1, %v1726_v16, %v1725_v62  ;;  %v1734_v43 = vrot.slane %v3859_v10, 7 }
 0x153   :  { %v1736_v44 = vrot.slane %v3865_v30, 6  ;;  %v1723_v0 = vsel %vm1712_vm4, %v1722_v23, %v1721_v13  ;;  %v1729_v3 = vsel %vm1706_vm2, %v1728_v32, %v1727_v20  ;;  %v1738_v1 = vrot.slane %v3871_v24, 5 }
 0x154   :  { %v1740_v40 = vrot.slane %v3877_v27, 4  ;;  %v1731_v34 = vsel %vm1709_vm3, %v1730_v61, %v1729_v3  ;;  %v1735_v52 = vsel %vm1700_vm0, %v1734_v43, %v3851_v45  ;;  %v1742_v39 = vrot.slane %v3883_v58, 3 }
 0x155   :  { %v1744_v9 = vrot.slane %v3894_v57, 7  ;;  %v1733_v10 = vsel %vm1712_vm4, %v1732_v7, %v1731_v34  ;;  %v1737_v30 = vsel %vm1703_vm1, %v1736_v44, %v1735_v52  ;;  %v1746_v55 = vrot.slane %v3900_v15, 6 }
 0x156   :  { %v1748_v50 = vrot.slane %v3906_v47, 5  ;;  %v1739_v24 = vsel %vm1706_vm2, %v1738_v1, %v1737_v30  ;;  %v1750_v5 = vrot.slane %v3912_v21, 4  ;;  %v1752_v45 = vrot.slane %v3918_v33, 3 }
 0x157   :  { %v1745_v27 = vsel %vm1700_vm0, %v1744_v9, %v3887_v59  ;;  %v1741_v58 = vsel %vm1709_vm3, %v1740_v40, %v1739_v24  ;;  %v1754_v37 = vrot.slane %v3897_v8, 7  ;;  %v1756_v2 = vrot.slane %v3903_v22, 6 }
 0x158   :  { %v1747_v57 = vsel %vm1703_vm1, %v1746_v55, %v1745_v27  ;;  %v1743_v15 = vsel %vm1712_vm4, %v1742_v39, %v1741_v58  ;;  %v1758_v23 = vrot.slane %v3909_v53, 5  ;;  %v1760_v59 = vrot.slane %v3915_v36, 4 }
 0x159   :  { %v1749_v47 = vsel %vm1706_vm2, %v1748_v50, %v1747_v57  ;;  %v1755_v33 = vsel %vm1700_vm0, %v1754_v37, %v3891_v48  ;;  %v1762_v56 = vrot.slane %v3921_v38, 3  ;;  %v1764_v49 = vrot.slane %v3932_v4, 7 }
 0x15a   :  { %v1751_v21 = vsel %vm1709_vm3, %v1750_v5, %v1749_v47  ;;  %v1757_v22 = vsel %vm1703_vm1, %v1756_v2, %v1755_v33  ;;  %v1766_v16 = vrot.slane %v3938_v26, 6  ;;  %v1768_v32 = vrot.slane %v3944_v11, 5 }
 0x15b   :  { %v1753_v8 = vsel %vm1712_vm4, %v1752_v45, %v1751_v21  ;;  %v1759_v53 = vsel %vm1706_vm2, %v1758_v23, %v1757_v22  ;;  %v1765_v36 = vsel %vm1700_vm0, %v1764_v49, %v3925_v17  ;;  %v1770_v6 = vrot.slane %v3950_v19, 4 }
 0x15c   :  { %v1772_v48 = vrot.slane %v3956_v28, 3  ;;  %v1761_v38 = vsel %vm1709_vm3, %v1760_v59, %v1759_v53  ;;  %v1767_v4 = vsel %vm1703_vm1, %v1766_v16, %v1765_v36  ;;  %v1774_v62 = vrot.slane %v3935_v60, 7 }
 0x15d   :  { %v1776_v61 = vrot.slane %v3941_v41, 6  ;;  %v1763_v26 = vsel %vm1712_vm4, %v1762_v56, %v1761_v38  ;;  %v1769_v11 = vsel %vm1706_vm2, %v1768_v32, %v1767_v4  ;;  %v1778_v7 = vrot.slane %v3947_v31, 5 }
 0x15e   :  { %v1780_v17 = vrot.slane %v3953_v18, 4  ;;  %v1771_v19 = vsel %vm1709_vm3, %v1770_v6, %v1769_v11  ;;  %v1775_v28 = vsel %vm1700_vm0, %v1774_v62, %v3929_v29  ;;  %v1782_v13 = vrot.slane %v3959_v14, 3 }
 0x15f   :  { %v1773_v60 = vsel %vm1712_vm4, %v1772_v48, %v1771_v19  ;;  %v1777_v41 = vsel %vm1703_vm1, %v1776_v61, %v1775_v28  ;;  %v1793_v20 = vsel %vm1792_vm5, %v3973_v25, 0.0  ;;  %v1800_v43 = vsel %vm1792_vm5, %v1723_v0, 0.0  ;;  %v2282_v19 = vld [vmem:[%s4313_s2] sm:$0x3]  ;;  %v4941_v28 = vld [vmem:[#allocation33_spill] sm:$0xff] }
 0x160   :  { %v1779_v31 = vsel %vm1706_vm2, %v1778_v7, %v1777_v41  ;;  %v1794_v18 = vrot.slane %v1793_v20, 4  ;;  %v1801_v44 = vrot.slane %v1800_v43, 4  ;;  %v1807_v3 = vsel %vm1792_vm5, %v1733_v10, 0.0 }
 0x161   :  { %v1781_v29 = vsel %vm1709_vm3, %v1780_v17, %v1779_v31  ;;  %v1808_v1 = vrot.slane %v1807_v3, 4  ;;  %v1814_v14 = vsel %vm1792_vm5, %v1743_v15, 0.0  ;;  %v1821_v40 = vsel %vm1792_vm5, %v1753_v8, 0.0  ;;  %v2283_v31 = vld [vmem:[%s4313_s2 + $0x2] sm:$0x3] }
 0x162   :  { %v1783_v34 = vsel %vm1712_vm4, %v1782_v13, %v1781_v29  ;;  %v1795_v52 = vadd.f32 %v1794_v18, %v1793_v20  ;;  %v1802_v39 = vadd.f32 %v1801_v44, %v1800_v43  ;;  %v1815_v25 = vrot.slane %v1814_v14, 4  ;;  %v4942_v13 = vld [vmem:[#allocation58_spill] sm:$0xff]  ;;  %v4944_v29 = vld [vmem:[#allocation8_spill] sm:$0xff] }
 0x163   :  { %v1809_v9 = vadd.f32 %v1808_v1, %v1807_v3  ;;  %v1822_v0 = vrot.slane %v1821_v40, 4  ;;  %v1828_v30 = vsel %vm1792_vm5, %v1763_v26, 0.0  ;;  %v1835_v55 = vsel %vm1792_vm5, %v1773_v60, 0.0  ;;  %v2284_v44 = vld [vmem:[%s4313_s2 + $0x4] sm:$0x3]  ;;  %v4943_v3 = vld [vmem:[#allocation35_spill] sm:$0xff] }
 0x164   :  { %v1796_v50 = vrot.slane %v1795_v52, 2  ;;  %v1803_v10 = vrot.slane %v1802_v39, 2  ;;  %v1816_v24 = vadd.f32 %v1815_v25, %v1814_v14  ;;  %v1829_v27 = vrot.slane %v1828_v30, 4  ;;  %v4945_v14 = vld [vmem:[#allocation59_spill] sm:$0xff]  ;;  %v4946_v25 = vld [vmem:[#allocation60_spill] sm:$0xff] }
 0x165   :  { %v1810_v5 = vrot.slane %v1809_v9, 2  ;;  %v1823_v45 = vadd.f32 %v1822_v0, %v1821_v40  ;;  %v1836_v58 = vrot.slane %v1835_v55, 4  ;;  %v1842_v57 = vsel %vm1792_vm5, %v1783_v34, 0.0  ;;  %v4947_v0 = vld [vmem:[#allocation9_spill] sm:$0xff] }
 0x166   :  { %v1797_v37 = vadd.f32 %v1796_v50, %v1795_v52  ;;  %v1804_v2 = vadd.f32 %v1803_v10, %v1802_v39  ;;  %v1817_v15 = vrot.slane %v1816_v24, 2  ;;  %v1830_v47 = vadd.f32 %v1829_v27, %v1828_v30  ;;  %v2285_v39 = vld [vmem:[%s4313_s2 + $0x6] sm:$0x3]  ;;  %v4949_v10 = vld [vmem:[#allocation61_spill] sm:$0xff]  ;;  %v4950_v27 = vld [vmem:[#allocation11_spill] sm:$0xff] }
 0x167   :  { %v1811_v23 = vadd.f32 %v1810_v5, %v1809_v9  ;;  %v1824_v59 = vrot.slane %v1823_v45, 2  ;;  %v1837_v21 = vadd.f32 %v1836_v58, %v1835_v55  ;;  %v1843_v33 = vrot.slane %v1842_v57, 4  ;;  %v4948_v55 = vld [vmem:[#allocation10_spill] sm:$0xff] }
 0x168   :  { %v1798_v56 = vrot.slane %v1797_v37, 1  ;;  %v1805_v49 = vrot.slane %v1804_v2, 1  ;;  %v1818_v8 = vadd.f32 %v1817_v15, %v1816_v24  ;;  %v1831_v22 = vrot.slane %v1830_v47, 2  ;;  %v4951_v58 = vld [vmem:[#allocation62_spill] sm:$0xff]  ;;  %v4953_v15 = vld [vmem:[#allocation65_spill] sm:$0xff] }
 0x169   :  { %v1812_v16 = vrot.slane %v1811_v23, 1  ;;  %v1825_v32 = vadd.f32 %v1824_v59, %v1823_v45  ;;  %v1838_v53 = vrot.slane %v1837_v21, 2  ;;  %v1844_v36 = vadd.f32 %v1843_v33, %v1842_v57 }
 0x16a   :  { %v4053_v6 = vadd.f32 %v1798_v56, %v1797_v37  ;;  %v4055_v48 = vadd.f32 %v1805_v49, %v1804_v2  ;;  %v1819_v38 = vrot.slane %v1818_v8, 1  ;;  %v1832_v4 = vadd.f32 %v1831_v22, %v1830_v47  ;;  %v4952_v37 = vld [vmem:[#allocation12_spill] sm:$0xff]  ;;  %v4956_v56 = vld [vmem:[#allocation14_spill] sm:$0xff] }
 0x16b   :  { %v4057_v62 = vadd.f32 %v1812_v16, %v1811_v23  ;;  %v1826_v61 = vrot.slane %v1825_v32, 1  ;;  %v1839_v26 = vadd.f32 %v1838_v53, %v1837_v21  ;;  %v1845_v11 = vrot.slane %v1844_v36, 2  ;;  %v4954_v23 = vld [vmem:[#allocation13_spill] sm:$0xff]  ;;  %v4955_v21 = vld [vmem:[#allocation67_spill] sm:$0xff]  ;;  %v4959_v53 = vld [vmem:[#allocation50_spill] sm:$0xff] }
 0x16c   :  { %v4059_v7 = vadd.f32 %v1819_v38, %v1818_v8  ;;  %v1833_v17 = vrot.slane %v1832_v4, 1  ;;  %2268 = vrcp.f32 %v2282_v19  ;;  %v1857_v60 = vadd.f32 %v4942_v13, %v4941_v28  ;;  %v4957_v8 = vld [vmem:[#allocation74_spill] sm:$0xff]  ;;  %v4958_v16 = vld [vmem:[#allocation69_spill] sm:$0xff]  ;;  %v4960_v38 = vld [vmem:[#allocation51_spill] sm:$0xff] }
 0x16d   :  { %v4066_v41 = vadd.f32 %v1826_v61, %v1825_v32  ;;  %v1840_v20 = vrot.slane %v1839_v26, 1  ;;  %v1846_v43 = vadd.f32 %v1845_v11, %v1844_v36  ;;  %2270 = vrcp.f32 %v2283_v31  ;;  %v4961_v61 = vld [vmem:[#allocation38_spill] sm:$0xff]  ;;  %v4963_v19 = vld [vmem:[#allocation39_spill] sm:$0xff]  ;;  %v4964_v13 = vld [vmem:[#allocation72_spill] sm:$0xff] }
 0x16e   :  { %v4071_v18 = vadd.f32 %v1833_v17, %v1832_v4  ;;  %2272 = vrcp.f32 %v2284_v44  ;;  %v1858_v1 = vadd.f32 %v4944_v29, %v4943_v3  ;;  %v1859_v40 = vsub.f32 %v1857_v60, %v4945_v14  ;;  %v4962_v11 = vld [vmem:[#allocation70_spill] sm:$0xff]  ;;  %v4966_v31 = vld [vmem:[#allocation41_spill] sm:$0xff]  ;;  %v4967_v3 = vld [vmem:[#allocation31_spill] sm:$0xff] }
 0x16f   :  { %v4079_v34 = vadd.f32 %v1840_v20, %v1839_v26  ;;  %v1847_v52 = vrot.slane %v1846_v43, 1  ;;  %2274 = vrcp.f32 %v2285_v39  ;;  %v1861_v9 = vsub.f32 %v1857_v60, %v4946_v25  ;;  %v4965_v20 = vld [vmem:[#allocation40_spill] sm:$0xff]  ;;  %v4971_v25 = vld [vmem:[#allocation29_spill] sm:$0xff] }
 0x170   :  { %v1860_v30 = vsub.f32 %v1858_v1, %v4947_v0  ;;  %v1862_v50 = vsub.f32 %v1858_v1, %v4948_v55  ;;  %v1863_v24 = vsub.f32 %v1857_v60, %v4949_v10  ;;  %v1864_v5 = vsub.f32 %v1858_v1, %v4950_v27  ;;  %v4972_v0 = vld [vmem:[#allocation26_spill] sm:$0xff]  ;;  %v4974_v10 = vld [vmem:[#allocation80_spill] sm:$0xff] }
 0x171   :  { %v4089_v45 = vadd.f32 %v1847_v52, %v1846_v43  ;;  %v1865_v57 = vsub.f32 %v1857_v60, %v4951_v58  ;;  %v1866_v2 = vsub.f32 %v1858_v1, %v4952_v37  ;;  %v4094_v47 = vsub.f32 %v1859_v40, %v4953_v15  ;;  %v4968_v1 = vld [vmem:[#allocation32_spill] sm:$0xff]  ;;  %v4969_v40 = vld [vmem:[#allocation25_spill] sm:$0xff]  ;;  %v4970_v52 = vld [vmem:[#allocation27_spill] sm:$0xff] }
 0x172   :  { %v4097_v59 = vsub.f32 %v1860_v30, %v4954_v23  ;;  %v4100_v33 = vsub.f32 %v1861_v9, %v4955_v21  ;;  %v4103_v49 = vsub.f32 %v1862_v50, %v4956_v56  ;;  %v4106_v22 = vsub.f32 %v1863_v24, %v4957_v8  ;;  %v4973_v30 = vld [vmem:[#allocation28_spill] sm:$0xff]  ;;  %v4975_v27 = vld [vmem:[#allocation34_spill] sm:$0xff]  ;;  %v4977_v37 = vld [vmem:[#allocation81_spill] sm:$0xff] }
 0x173   :  { %v4109_v32 = vsub.f32 %v1864_v5, %v4958_v16  ;;  %v4112_v36 = vsub.f32 %v1865_v57, %v4959_v53  ;;  %v4115_v4 = vsub.f32 %v1866_v2, %v4960_v38  ;;  %v1935_v26 = vsub.f32 %v4961_v61, %v4094_v47  ;;  %v4976_v58 = vld [vmem:[#allocation30_spill] sm:$0xff]  ;;  %v4979_v21 = vld [vmem:[#allocation76_spill] sm:$0xff]  ;;  %v4981_v8 = vld [vmem:[#allocation83_spill] sm:$0xff] }
 0x174   :  { %v1936_v17 = vsub.f32 %v4962_v11, %v4097_v59  ;;  %v1937_v28 = vsub.f32 %v4963_v19, %v4100_v33  ;;  %v1938_v60 = vsub.f32 %v4964_v13, %v4103_v49  ;;  %v1939_v43 = vsub.f32 %v4965_v20, %v4106_v22  ;;  %v4978_v15 = vld [vmem:[#allocation82_spill] sm:$0xff]  ;;  %v4982_v16 = vld [vmem:[#allocation84_spill] sm:$0xff]  ;;  %v4984_v19 = vld [vmem:[#allocation77_spill] sm:$0xff] }
 0x175   :  { %v1940_v44 = vsub.f32 %v4966_v31, %v4109_v32  ;;  %v1941_v29 = vsub.f32 %v4967_v3, %v4112_v36  ;;  %v1942_v14 = vsub.f32 %v4968_v1, %v4115_v4  ;;  %v2001_v39 = vsel %vm1700_vm0, %v4970_v52, %v4969_v40  ;;  %v4983_v61 = vld [vmem:[#allocation78_spill] sm:$0xff]  ;;  %v4985_v20 = vld [vmem:[#allocation85_spill] sm:$0xff]  ;;  %v4987_v52 = vld [vmem:[#allocation36_spill] sm:$0xff] }
 0x176   :  { %v2002_v9 = vsel %vm1703_vm1, %v4971_v25, %v2001_v39  ;;  %v2006_v55 = vsel %vm1700_vm0, %v4973_v30, %v4972_v0  ;;  %v2011_v50 = vsel %vm1700_vm0, %v3443_v12, %v3439_v46  ;;  %v2016_v24 = vsel %vm1700_vm0, %v4974_v10, %v3441_v51  ;;  %v4980_v46 = vld [vmem:[#allocation75_spill] sm:$0xff]  ;;  %v4986_v3 = vld [vmem:[#allocation86_spill] sm:$0xff]  ;;  %v4988_v25 = vld [vmem:[#allocation37_spill] sm:$0xff] }
 0x177   :  { %v2003_v5 = vsel %vm1706_vm2, %v4975_v27, %v2002_v9  ;;  %v2007_v57 = vsel %vm1703_vm1, %v4976_v58, %v2006_v55  ;;  %v2012_v2 = vsel %vm1703_vm1, %v4977_v37, %v2011_v50  ;;  %v2017_v23 = vsel %vm1703_vm1, %v4978_v15, %v2016_v24  ;;  %v4989_v0 = vld [vmem:[#allocation79_spill] sm:$0xff] }
 0x178   :  { %v2004_v56 = vsel %vm1709_vm3, %v4979_v21, %v2003_v5  ;;  %v2008_v12 = vsel %vm1706_vm2, %v4980_v46, %v2007_v57  ;;  %v2013_v51 = vsel %vm1706_vm2, %v4981_v8, %v2012_v2  ;;  %v2018_v53 = vsel %vm1706_vm2, %v4982_v16, %v2017_v23  ;;  %v4990_v55 = vld [vmem:[#allocation87_spill] sm:$0xff]  ;;  %v4991_v5 = vld [vmem:[#allocation88_spill] sm:$0xff]  ;;  %v4992_v57 = vld [vmem:[#allocation89_spill] sm:$0xff] }
 0x179   :  { %v2269_v38 = vpop.eup %2268  ;;  %v2005_v11 = vsel %vm1712_vm4, %v4983_v61, %v2004_v56  ;;  %v2009_v13 = vsel %vm1709_vm3, %v4984_v19, %v2008_v12  ;;  %v2014_v31 = vsel %vm1709_vm3, %v4985_v20, %v2013_v51  ;;  %v2019_v1 = vsel %vm1709_vm3, %v4986_v3, %v2018_v53  ;;  %v4993_v37 = vld [vmem:[#allocation91_spill] sm:$0xff] }
 0x17a   :  { %v2271_v40 = vpop.eup %2270  ;;  %v1882_v39 = vrot.slane %v2269_v38, %v4987_v52  ;;  %v1886_v9 = vrot.slane %v2269_v38, %v4988_v25  ;;  %v2010_v30 = vsel %vm1712_vm4, %v4989_v0, %v2009_v13  ;;  %v2015_v50 = vsel %vm1712_vm4, %v4990_v55, %v2014_v31  ;;  %2049 = vst [vmem:[%s4316_s5] sm:$0x3f] %v2005_v11  ;;  %v4996_v55 = vld [vmem:[#allocation92_spill] sm:$0xff] }
 0x17b   :  { %v2273_v10 = vpop.eup %2272  ;;  %v1890_v24 = vrot.slane %v2271_v40, %v4987_v52  ;;  %v1894_v27 = vrot.slane %v2271_v40, %v4988_v25  ;;  %v2020_v58 = vsel %vm1712_vm4, %v4991_v5, %v2019_v1  ;;  %v2021_v2 = vsel %vm1700_vm0, %v4993_v37, %v4992_v57  ;;  %2050 = vst [vmem:[%s4316_s5 + $0x8] sm:$0x3f] %v2010_v30  ;;  %v4995_v30 = vld [vmem:[#allocation90_spill] sm:$0xff]  ;;  %v5006_v37 = vld [vmem:[#allocation96_spill] sm:$0xff] }
 0x17c   :  { %2051 = vst [vmem:[%s4316_s5 + $0x10] sm:$0x3f] %v2015_v50  ;;  %v2275_v15 = vpop.eup %2274  ;;  %v1898_v23 = vrot.slane %v2273_v10, %v4987_v52  ;;  %v1902_v21 = vrot.slane %v2273_v10, %v4988_v25  ;;  %v1919_v56 = vmul.f32 %v1882_v39, %v4094_v47  ;;  %v1920_v46 = vmul.f32 %v1886_v9, %v4097_v59  ;;  %v4997_v10 = vld [vmem:[#allocation99_spill] sm:$0xff] }
 0x17d   :  { %2052 = vst [vmem:[%s4316_s5 + $0x18] sm:$0x3f] %v2020_v58  ;;  %v1906_v12 = vrot.slane %v2275_v15, %v4987_v52  ;;  %v1910_v8 = vrot.slane %v2275_v15, %v4988_v25  ;;  %v1921_v51 = vmul.f32 %v1890_v24, %v4100_v33  ;;  %v1922_v16 = vmul.f32 %v1894_v27, %v4103_v49  ;;  %v4994_v25 = vld [vmem:[#allocation93_spill] sm:$0xff]  ;;  %v5005_v58 = vld [vmem:[#allocation15_spill] sm:$0xff] }
 0x17e   :  { %v1923_v53 = vmul.f32 %v1898_v23, %v4106_v22  ;;  %v1924_v38 = vmul.f32 %v1902_v21, %v4109_v32  ;;  %v1927_v47 = vadd.f32 %v1919_v56, %v4053_v6  ;;  %v1928_v59 = vadd.f32 %v1920_v46, %v4055_v48  ;;  %v5008_v56 = vld [vmem:[#allocation97_spill] sm:$0xff] }
 0x17f   :  { %v1925_v61 = vmul.f32 %v1906_v12, %v4112_v36  ;;  %v1926_v11 = vmul.f32 %v1910_v8, %v4115_v4  ;;  %v1929_v19 = vadd.f32 %v1921_v51, %v4057_v62  ;;  %v1930_v13 = vadd.f32 %v1922_v16, %v4059_v7 }
 0x180   :  { %v1931_v33 = vadd.f32 %v1923_v53, %v4066_v41  ;;  %v1932_v49 = vadd.f32 %v1924_v38, %v4071_v18  ;;  %v1943_v20 = vmul.f32 %v1935_v26, %v1882_v39  ;;  %v1944_v22 = vmul.f32 %v1936_v17, %v1886_v9  ;;  %v4998_v26 = vld [vmem:[#allocation101_spill] sm:$0xff]  ;;  %v4999_v39 = vld [vmem:[#allocation100_spill] sm:$0xff]  ;;  %v5000_v9 = vld [vmem:[#allocation102_spill] sm:$0xff] }
 0x181   :  { %v1933_v32 = vadd.f32 %v1925_v61, %v4079_v34  ;;  %v1934_v31 = vadd.f32 %v1926_v11, %v4089_v45  ;;  %v1945_v3 = vmul.f32 %v1937_v28, %v1890_v24  ;;  %v1946_v1 = vmul.f32 %v1938_v60, %v1894_v27  ;;  %v5001_v60 = vld [vmem:[#allocation95_spill] sm:$0xff]  ;;  %v5004_v27 = vld [vmem:[#allocation18_spill] sm:$0xff] }
 0x182   :  { %v1947_v40 = vmul.f32 %v1939_v43, %v1898_v23  ;;  %v1948_v36 = vmul.f32 %v1940_v44, %v1902_v21  ;;  %v1949_v52 = vmul.f32 %v1941_v29, %v1906_v12  ;;  %v1950_v4 = vmul.f32 %v1942_v14, %v1910_v8  ;;  %v5002_v44 = vld [vmem:[#allocation94_spill] sm:$0xff]  ;;  %v5003_v14 = vld [vmem:[#allocation17_spill] sm:$0xff]  ;;  %v5007_v23 = vld [vmem:[#allocation20_spill] sm:$0xff] }
 0x183   :  { %v2022_v0 = vsel %vm1703_vm1, %v4994_v25, %v2021_v2  ;;  %v2026_v50 = vsel %vm1700_vm0, %v4996_v55, %v4995_v30  ;;  %v2031_v17 = vsel %vm1700_vm0, %v4998_v26, %v4997_v10  ;;  %v2036_v28 = vsel %vm1700_vm0, %v5000_v9, %v4999_v39  ;;  %v5009_v12 = vld [vmem:[#allocation16_spill] sm:$0xff]  ;;  %v5010_v53 = vld [vmem:[#allocation98_spill] sm:$0xff]  ;;  %v5011_v61 = vld [vmem:[#allocation23_spill] sm:$0xff] }
 0x184   :  { %v2023_v43 = vsel %vm1706_vm2, %v5001_v60, %v2022_v0  ;;  %v2027_v29 = vsel %vm1703_vm1, %v5002_v44, %v2026_v50  ;;  %v2032_v24 = vsel %vm1703_vm1, %v5003_v14, %v2031_v17  ;;  %v2037_v5 = vsel %vm1703_vm1, %v5004_v27, %v2036_v28 }
 0x185   :  { %v2024_v57 = vsel %vm1709_vm3, %v5005_v58, %v2023_v43  ;;  %v2028_v2 = vsel %vm1706_vm2, %v5006_v37, %v2027_v29  ;;  %v2033_v15 = vsel %vm1706_vm2, %v4934_v42, %v2032_v24  ;;  %v2038_v21 = vsel %vm1706_vm2, %v5007_v23, %v2037_v5 }
 0x186   :  { %v2025_v46 = vsel %vm1712_vm4, %v5008_v56, %v2024_v57  ;;  %v2029_v8 = vsel %vm1709_vm3, %v5009_v12, %v2028_v2  ;;  %v2034_v51 = vsel %vm1709_vm3, %v4936_v63, %v2033_v15  ;;  %v2039_v16 = vsel %vm1709_vm3, %v4937_v35, %v2038_v21 }
 0x187   :  { %v2030_v38 = vsel %vm1712_vm4, %v5010_v53, %v2029_v8  ;;  %v2035_v42 = vsel %vm1712_vm4, %v5011_v61, %v2034_v51  ;;  %v2040_v11 = vsel %vm1712_vm4, %v4939_v54, %v2039_v16  ;;  %2053 = vst [vmem:[%s4316_s5 + $0x20] sm:$0x3f] %v2025_v46  ;;  %v2065_v25 = vrot.slane %v1943_v20, 7 }
 0x188   :  { %2054 = vst [vmem:[%s4316_s5 + $0x28] sm:$0x3f] %v2030_v38  ;;  %2055 = vst [vmem:[%s4316_s5 + $0x30] sm:$0x3f] %v2035_v42  ;;  %v2066_v63 = vrot.slane %v1944_v22, 7  ;;  %v2067_v35 = vrot.slane %v1945_v3, 7 }
 0x189   :  { %2056 = vst [vmem:[%s4316_s5 + $0x38] sm:$0x3f] %v2040_v11  ;;  %v2068_v54 = vrot.slane %v1946_v1, 7  ;;  %v2069_v0 = vrot.slane %v1947_v40, 7  ;;  %v2070_v30 = vrot.slane %v1948_v36, 7  ;;  %v2071_v55 = vrot.slane %v1949_v52, 7 }
 0x18a   :  { %v2072_v50 = vrot.slane %v1950_v4, 7  ;;  %v2089_v20 = vrot.slane %v4053_v6, 6  ;;  %v2090_v10 = vrot.slane %v4055_v48, 6  ;;  %v2091_v26 = vrot.slane %v4057_v62, 6  ;;  %s2332_s5 = smov [#allocation4]  }
 0x18b   :  { %v2092_v17 = vrot.slane %v4059_v7, 6  ;;  %v2093_v39 = vrot.slane %v4066_v41, 6  ;;  %v2094_v9 = vrot.slane %v4071_v18, 6  ;;  %v2095_v22 = vrot.slane %v4079_v34, 6  ;;  %s2166_s25 = sshll.u32 %s2332_s5, 4  ;;  %s4293_s25 = int_to_ptr.vmem [resolvable:$true] %s2166_s25 }
 0x18c   :  { %v2096_v3 = vrot.slane %v4089_v45, 6  ;;  %vm2105_vm6 = vcmask 1040384   ;;  %vm2114_vm7 = vcmask 1041408   ;;  %vm2123_vm8 = vcmask 1042432   ;;  %s2306_s26 = scalar_lea.vmem %s4293_s25, 1024  ;;  %p2311_p6 = scmp.lt.s32.totalorder %s4293_s25, %s4293_s25 }
 0x18d   :  { %v2106_v1 = vsel %vm2105_vm6, %v1927_v47, %v2065_v25  ;;  %v2107_v40 = vsel %vm2105_vm6, %v1928_v59, %v2066_v63  ;;  %v2108_v36 = vsel %vm2105_vm6, %v1929_v19, %v2067_v35  ;;  %v2109_v52 = vsel %vm2105_vm6, %v1930_v13, %v2068_v54  ;;  %v5012_v59 = vld [vmem:[#allocation71_spill] sm:$0xff]  ;;  %v5013_v13 = vld [vmem:[#allocation73_spill] sm:$0xff]  ;;  %p2307_p5 = scmp.ne.s32.totalorder %s4293_s25, %s2306_s26  ;;  %p2312_p7 = scmp.lt.s32.totalorder %s2306_s26, %s2306_s26 }
 0x18e   :  { %v2110_v6 = vsel %vm2105_vm6, %v1931_v33, %v2069_v0  ;;  %v2111_v4 = vsel %vm2105_vm6, %v1932_v49, %v2070_v30  ;;  %v2112_v48 = vsel %vm2105_vm6, %v1933_v32, %v2071_v55  ;;  %v2113_v28 = vsel %vm2105_vm6, %v1934_v31, %v2072_v50 }
 0x18f   :  { %vm2132_vm9 = vcmask 1043456   ;;  %v2115_v62 = vsel %vm2114_vm7, %v2106_v1, %v2089_v20  ;;  %v2116_v7 = vsel %vm2114_vm7, %v2107_v40, %v2090_v10  ;;  %v2117_v41 = vsel %vm2114_vm7, %v2108_v36, %v2091_v26  ;;  %p2313_p8 = por %p2312_p7, %p2311_p6 }
 0x190   :  { %v2118_v18 = vsel %vm2114_vm7, %v2109_v52, %v2092_v17  ;;  %v2119_v34 = vsel %vm2114_vm7, %v2110_v6, %v2093_v39  ;;  %v2120_v45 = vsel %vm2114_vm7, %v2111_v4, %v2094_v9  ;;  %v2121_v60 = vsel %vm2114_vm7, %v2112_v48, %v2095_v22 }
 0x191   :  { %v2122_v47 = vsel %vm2114_vm7, %v2113_v28, %v2096_v3  ;;  %v2124_v19 = vsel %vm2123_vm8, %v2115_v62, %v5012_v59  ;;  %v2125_v33 = vsel %vm2123_vm8, %v2116_v7, %v5013_v13  ;;  %v2126_v49 = vsel %vm2123_vm8, %v2117_v41, %v5012_v59  ;;  %p2314_p9 = pnand %p2313_p8, %p2307_p5 }
 0x192   :  { %v2127_v32 = vsel %vm2123_vm8, %v2118_v18, %v5013_v13  ;;  %v2128_v31 = vsel %vm2123_vm8, %v2119_v34, %v5012_v59  ;;  %v2129_v43 = vsel %vm2123_vm8, %v2120_v45, %v5013_v13  ;;  %v2130_v44 = vsel %vm2123_vm8, %v2121_v60, %v5012_v59 }
 0x193   :  { %v2131_v29 = vsel %vm2123_vm8, %v2122_v47, %v5013_v13  ;;  %v2133_v14 = vsel %vm2132_vm9, %v2124_v19, 0.0  ;;  %v2134_v24 = vsel %vm2132_vm9, %v2125_v33, 0.0  ;;  %v2135_v27 = vsel %vm2132_vm9, %v2126_v49, 0.0 }
 0x194   :  { %v2136_v5 = vsel %vm2132_vm9, %v2127_v32, 0.0  ;;  %v2137_v58 = vsel %vm2132_vm9, %v2128_v31, 0.0  ;;  %v2138_v57 = vsel %vm2132_vm9, %v2129_v43, 0.0  ;;  %v2139_v37 = vsel %vm2132_vm9, %v2130_v44, 0.0  ;;  %2141 = vst [vmem:[#allocation4] sm:$0xff] %v2133_v14  ;;  %2142 = vst [vmem:[#allocation4 + $0x8] sm:$0xff] %v2134_v24 }
 0x195   :  { %v2140_v2 = vsel %vm2132_vm9, %v2131_v29, 0.0  ;;  %2143 = vst [vmem:[#allocation4 + $0x10] sm:$0xff] %v2135_v27  ;;  %2144 = vst [vmem:[#allocation4 + $0x18] sm:$0xff] %v2136_v5 }
 0x196   :  { %2145 = vst [vmem:[#allocation4 + $0x20] sm:$0xff] %v2137_v58  ;;  %2146 = vst [vmem:[#allocation4 + $0x28] sm:$0xff] %v2138_v57 }
 0x197   :  { %2147 = vst [vmem:[#allocation4 + $0x30] sm:$0xff] %v2139_v37  ;;  %2148 = vst [vmem:[#allocation4 + $0x38] sm:$0xff] %v2140_v2 }
 0x198   :  { %2317 = shalt.err (!%p2314_p9)
}
 0x199   :  { %s2333_s27 = smov 256   ;;  %s2334_s28 = smov 16  }
 0x19a   :  { %2172 = dma.vmem_to_hbm [thread:$0]  %s4293_s25, 1024, %s4317_s6, [#allocation5], %s2333_s27, %s2333_s27, %s2334_s28  }
 0x19b   :  { %2326 = dma.done.wait [#allocation3], 256  }
 0x19c   :  { %2327 = vsyncadd [#allocation3], 4294967040 }
 0x19d   :  { %2328 = dma.done.wait [#allocation5], 1024  }
 0x19e   :  { %2329 = vsyncadd [#allocation5], 4294966272 }
 0x19f   :  { %2181 = vsyncpa [#allocation3], 1 }
 0x1a0   :  { %2182 = vsyncpa [#allocation5], 1 }

</bundles_post_ra>
